<compile_context>
chip_gen: v5e
topology: v5e:2x2
jax: 0.10.0
libtpu: 0.0.40
codegen_flags: <defaults>
</compile_context>

<pallas_src>
import numpy as np
import jax
import jax.numpy as jnp
from jax.experimental import pallas as pl
from jax.experimental.pallas import tpu as pltpu

# Keep both the kernel's and the reference's matmuls at full f32 accuracy.
jax.config.update("jax_default_matmul_precision", "highest")

NEG_SLOPE = 0.01            # LeakyReLU(0.01)
WINDOW = 50
N_FEAT = 3
C1_OUT = 2                  # conv1 output channels
C2_OUT = 20                 # conv2 output channels
LANE_TARGET = 128           # fold enough samples onto lanes to reach >=128


def _leaky(x):
    return jnp.where(x > 0, x, NEG_SLOPE * x)


def actor_kernel(x_ref, pw_ref, w1t_ref, b1_ref, w2s_ref, b2_ref, w3_ref,
                 sel_ref, selt_ref, scal_s, out_ref):
    # x_ref   : (150, N)  price slab, rows = (feature, window-pos), lanes = (sample, asset)
    # pw_ref  : (1, N)    previous portfolio weights, same lane layout
    # w1t_ref : (96, 150) conv1 as a Toeplitz band matrix (rows = (out-chan, out-pos))
    # b1_ref  : (96, 1)   conv1 bias (repeated per output position)
    # w2s_ref : (20, 96)  conv2 weights, stacked to match the (96, N) conv1 output
    # b2_ref  : (20, 1)   conv2 bias
    # w3_ref  : (1, 20)   1x1-conv weights for the 20 conv channels
    # sel_ref : (N, Bc)   lane -> sample selector (0/1)
    # selt_ref: (Bc, N)   sample -> lane broadcaster (0/1)
    # scal_s  : SMEM (3,) = [w3_prev_weight_coeff, conv3_bias, cash_bias]
    hi = jax.lax.Precision.HIGHEST

    # conv1 (kernel (1,3)) + LeakyReLU  -> one MXU matmul, output already stacked (96, N)
    h1 = jnp.dot(w1t_ref[...], x_ref[...],
                 precision=hi, preferred_element_type=jnp.float32) + b1_ref[...]
    h1 = _leaky(h1)

    # conv2 (kernel (1,48), spans the full width) + LeakyReLU -> fused (20,96)@(96,N)
    h2 = jnp.dot(w2s_ref[...], h1,
                 precision=hi, preferred_element_type=jnp.float32) + b2_ref[...]
    h2 = _leaky(h2)

    # 1x1 conv over [conv channels ; prev_weights]  -> (1, N) logits
    logits = jnp.dot(w3_ref[...], h2,
                     precision=hi, preferred_element_type=jnp.float32)
    logits = logits + pw_ref[...] * scal_s[0] + scal_s[1]

    # softmax over [cash_bias, logits...] per sample, cash entry dropped.
    # Chunk-wide max is shift-invariant (exact up to rounding); exact division.
    cash = scal_s[2]
    mx = jnp.maximum(jnp.max(logits, axis=1, keepdims=True), cash)      # (1, 1)
    e = jnp.exp(logits - mx)                                            # (1, N)
    e_cash = jnp.exp(cash - mx)                                         # (1, 1)
    denom = jnp.dot(e, sel_ref[...],
                    precision=hi, preferred_element_type=jnp.float32) + e_cash   # (1, Bc)
    denom_b = jnp.dot(denom, selt_ref[...],
                      precision=hi, preferred_element_type=jnp.float32)          # (1, N)
    out_ref[...] = e / denom_b                                          # dense (1, N) store


def init_params(key):
    """Deterministic synthetic params matching the PyTorch module's shapes/init,
       plus the kernel-ready (Toeplitz / stacked) forms."""
    k1, k2, k3, kb1, kb2, kb3 = jax.random.split(key, 6)
    # Conv1 weight (2, 3, 1, 3), kaiming_normal(relu): fan_in = 9.
    w1 = jax.random.normal(k1, (C1_OUT, N_FEAT, 3), jnp.float32) * np.sqrt(2.0 / 9.0)
    b1 = jax.random.uniform(kb1, (C1_OUT,), jnp.float32, -1.0 / 3.0, 1.0 / 3.0)
    # Conv2 weight (20, 2, 1, 48), fan_in = 96.
    w2 = jax.random.normal(k2, (C2_OUT, C1_OUT, 48), jnp.float32) * np.sqrt(2.0 / 96.0)
    b2 = jax.random.uniform(kb2, (C2_OUT,), jnp.float32,
                            -1.0 / np.sqrt(96.0), 1.0 / np.sqrt(96.0))
    # Conv3 weight (1, 21, 1, 1), fan_in = 21.
    w3 = jax.random.normal(k3, (21,), jnp.float32) * np.sqrt(2.0 / 21.0)
    b3 = jax.random.uniform(kb3, (), jnp.float32,
                            -1.0 / np.sqrt(21.0), 1.0 / np.sqrt(21.0))
    cash = jnp.asarray(0.7, jnp.float32)

    # Kernel-ready conv1 Toeplitz band matrix (96, 150):
    #   row r = oc*48 + u,  col c = ic*50 + (u + kw)  holds  w1[oc, ic, kw]
    wo = WINDOW - 2
    w1_np = np.asarray(w1)
    w1t = np.zeros((C1_OUT * wo, N_FEAT * WINDOW), np.float32)
    for oc in range(C1_OUT):
        for ic in range(N_FEAT):
            for kw in range(3):
                for u in range(wo):
                    w1t[oc * wo + u, ic * WINDOW + u + kw] = w1_np[oc, ic, kw]

    return dict(
        # raw params (used by the pure-JAX reference)
        w1=w1, b1=b1, w2=w2, b2=b2, w3=w3, b3=b3, cash=cash,
        # kernel-ready params
        w1t=jnp.asarray(w1t),                         # (96, 150)
        b1s=jnp.repeat(b1, wo).reshape(C1_OUT * wo, 1),   # (96, 1)
        w2s=w2.reshape(C2_OUT, C1_OUT * 48),          # (20, 96) fused conv2
        b2c=b2.reshape(C2_OUT, 1),                    # (20, 1)
        w3row=w3[:C2_OUT].reshape(1, C2_OUT),         # (1, 20)
        scal=jnp.stack([w3[C2_OUT], b3, cash]),       # SMEM: [w3_pw, b3, cash]
    )


@jax.jit
def actor_forward(price, prev_weights, params):
    """price: (B, 3, M, 50) channel-first; prev_weights: (B, M). Returns (B, M)."""
    b, c, m, w = price.shape
    assert c == N_FEAT and w == WINDOW, "module implies 3 feature channels and window=50"
    price = price.astype(jnp.float32)
    pw = prev_weights.astype(jnp.float32)

    # Samples per grid step: fold the batch onto lanes until Bc*M >= 128.
    bc = min(b, max(1, -(-LANE_TARGET // m)))
    g = -(-b // bc)                       # number of grid steps (>=2 for the demo -> v7x)
    b_pad = g * bc
    if b_pad != b:
        price = jnp.pad(price, ((0, b_pad - b), (0, 0), (0, 0), (0, 0)))
        pw = jnp.pad(pw, ((0, b_pad - b), (0, 0)))
    nlane = bc * m

    # Layout plumbing (lanes = (sample-in-chunk, asset), sublanes = (feature, window)).
    # At large B this transpose should be fused into the producer of `price`; at
    # these sizes it is negligible next to kernel launch overhead.
    x = price.reshape(g, bc, N_FEAT, m, WINDOW)
    x = x.transpose(0, 2, 4, 1, 3).reshape(g, N_FEAT * WINDOW, nlane)   # (G, 150, N)
    pwl = pw.reshape(g, 1, nlane)                                       # (G, 1, N)

    # Per-sample selector matrices for the lane-folded softmax (constant-folded under jit).
    sel = jnp.repeat(jnp.eye(bc, dtype=jnp.float32), m, axis=0)         # (N, Bc)
    selt = sel.T                                                        # (Bc, N)

    smem = pl.BlockSpec(memory_space=pltpu.MemorySpace.SMEM)
    out = pl.pallas_call(
        actor_kernel,
        out_shape=jax.ShapeDtypeStruct((g, 1, nlane), jnp.float32),
        grid=(g,),
        in_specs=[
            pl.BlockSpec((None, N_FEAT * WINDOW, nlane), lambda i: (i, 0, 0)),  # price slab
            pl.BlockSpec((None, 1, nlane), lambda i: (i, 0, 0)),                # prev weights
            pl.BlockSpec((C1_OUT * 48, N_FEAT * WINDOW), lambda i: (0, 0)),     # w1 Toeplitz
            pl.BlockSpec((C1_OUT * 48, 1), lambda i: (0, 0)),                   # b1
            pl.BlockSpec((C2_OUT, C1_OUT * 48), lambda i: (0, 0)),              # w2 stacked
            pl.BlockSpec((C2_OUT, 1), lambda i: (0, 0)),                        # b2
            pl.BlockSpec((1, C2_OUT), lambda i: (0, 0)),                        # w3 row
            pl.BlockSpec((nlane, bc), lambda i: (0, 0)),                        # selector
            pl.BlockSpec((bc, nlane), lambda i: (0, 0)),                        # selector^T
            smem,                                                               # scalars
        ],
        out_specs=pl.BlockSpec((None, 1, nlane), lambda i: (i, 0, 0)),
        compiler_params=pltpu.CompilerParams(dimension_semantics=("parallel",)),
    )(x, pwl, params["w1t"], params["b1s"], params["w2s"], params["b2c"],
      params["w3row"], sel, selt, params["scal"])

    return out.reshape(b_pad, m)[:b]      # (B, M) non-cash asset weights


def actor_ref(price, prev_weights, params):
    """Pure-JAX per-sample reference mirroring the PyTorch forward.
       price: (3, M, 50); prev_weights: (M,)."""
    w1, b1, w2, b2 = params["w1"], params["b1"], params["w2"], params["b2"]
    w3, b3, cash = params["w3"], params["b3"], params["cash"]
    m, wo = price.shape[1], price.shape[2] - 2
    h1 = []
    for oc in range(C1_OUT):
        acc = jnp.zeros((m, wo), jnp.float32) + b1[oc]
        for ic in range(N_FEAT):
            for kw in range(3):
                acc = acc + price[ic, :, kw:kw + wo] * w1[oc, ic, kw]
        h1.append(_leaky(acc))                                        # (M, 48)
    h2 = (h1[0] @ w2[:, 0, :].T + h1[1] @ w2[:, 1, :].T
          + b2.reshape(1, C2_OUT))                                    # (M, 20)
    h2 = _leaky(h2)
    logits = h2 @ w3[:C2_OUT] + prev_weights * w3[C2_OUT] + b3        # (M,)
    full_logits = jnp.concatenate([cash.reshape(1), logits])
    return jax.nn.softmax(full_logits)[1:]


if __name__ == "__main__":
    key = jax.random.PRNGKey(0)
    kp, kx, kw = jax.random.split(key, 3)
    batch, m_assets = 24, 11            # output_dim=11 non-cash assets; window fixed at 50
    params = init_params(kp)
    price = jax.random.normal(kx, (batch, N_FEAT, m_assets, WINDOW), jnp.float32)
    prev_w = jax.nn.softmax(jax.random.normal(kw, (batch, m_assets), jnp.float32), axis=-1)

    out = actor_forward(price, prev_w, params)
    out = jax.block_until_ready(out)

    ref = jax.vmap(lambda p, w: actor_ref(p, w, params))(price, prev_w)
    assert out.shape == (batch, m_assets)
    np.testing.assert_allclose(np.asarray(out), np.asarray(ref), rtol=1e-4, atol=1e-5)
    print("KERNEL_OK")
</pallas_src>

<mosaic_0001>
module attributes {stable_mosaic.version = 11 : i64} {
  func.func @actor_kernel(%arg0: i32, %arg1: memref<1x150x132xf32, #tpu.memory_space<vmem>>, %arg2: memref<1x1x132xf32, #tpu.memory_space<vmem>>, %arg3: memref<96x150xf32, #tpu.memory_space<vmem>>, %arg4: memref<96x1xf32, #tpu.memory_space<vmem>>, %arg5: memref<20x96xf32, #tpu.memory_space<vmem>>, %arg6: memref<20x1xf32, #tpu.memory_space<vmem>>, %arg7: memref<1x20xf32, #tpu.memory_space<vmem>>, %arg8: memref<132x12xf32, #tpu.memory_space<vmem>>, %arg9: memref<12x132xf32, #tpu.memory_space<vmem>>, %arg10: memref<3xf32, #tpu.memory_space<smem>>, %arg11: memref<1x1x132xf32, #tpu.memory_space<vmem>>) attributes {dimension_semantics = [#tpu.dimension_semantics<parallel>], iteration_bounds = array<i64: 2>, scalar_prefetch = 0 : i64, scratch_operands = 0 : i64, tpu.core_type = #tpu.core_type<tc>, window_params = [{transform_indices = @transform_0, window_bounds = array<i64: 1, 150, 132>}, {transform_indices = @transform_1, window_bounds = array<i64: 1, 1, 132>}, {pipeline_mode = #tpu.pipeline_mode<synchronous>, transform_indices = @transform_2, window_bounds = array<i64: 96, 150>}, {pipeline_mode = #tpu.pipeline_mode<synchronous>, transform_indices = @transform_3, window_bounds = array<i64: 96, 1>}, {pipeline_mode = #tpu.pipeline_mode<synchronous>, transform_indices = @transform_4, window_bounds = array<i64: 20, 96>}, {pipeline_mode = #tpu.pipeline_mode<synchronous>, transform_indices = @transform_5, window_bounds = array<i64: 20, 1>}, {pipeline_mode = #tpu.pipeline_mode<synchronous>, transform_indices = @transform_6, window_bounds = array<i64: 1, 20>}, {pipeline_mode = #tpu.pipeline_mode<synchronous>, transform_indices = @transform_7, window_bounds = array<i64: 132, 12>}, {pipeline_mode = #tpu.pipeline_mode<synchronous>, transform_indices = @transform_8, window_bounds = array<i64: 12, 132>}, {transform_indices = @transform_9, window_bounds = array<i64: 3>}, {transform_indices = @transform_10, window_bounds = array<i64: 1, 1, 132>}]} {
    %c0 = arith.constant 0 : index
    %c0_0 = arith.constant 0 : index
    %0 = vector.load %arg3[%c0, %c0_0] : memref<96x150xf32, #tpu.memory_space<vmem>>, vector<96x150xf32>
    %c0_1 = arith.constant 0 : index
    %c0_2 = arith.constant 0 : index
    %c0_3 = arith.constant 0 : index
    %1 = vector.load %arg1[%c0_1, %c0_2, %c0_3] : memref<1x150x132xf32, #tpu.memory_space<vmem>>, vector<1x150x132xf32>
    %2 = vector.shape_cast %1 : vector<1x150x132xf32> to vector<150x132xf32>
    %cst = arith.constant dense<0.000000e+00> : vector<96x132xf32>
    %3 = tpu.matmul %0, %2, %cst {dimension_numbers = #tpu.dot_dimension_numbers<[1], [0], [0], [1], [0, 0, 1, 1], [], []>, precision = #tpu.contract_precision<fp32>} : vector<96x150xf32>, vector<150x132xf32>, vector<96x132xf32> -> vector<96x132xf32>
    %c0_4 = arith.constant 0 : index
    %c0_5 = arith.constant 0 : index
    %4 = vector.load %arg4[%c0_4, %c0_5] : memref<96x1xf32, #tpu.memory_space<vmem>>, vector<96x1xf32>
    %5 = vector.broadcast %4 : vector<96x1xf32> to vector<96x132xf32>
    %6 = arith.addf %3, %5 : vector<96x132xf32>
    %cst_6 = arith.constant 0.000000e+00 : f32
    %7 = vector.broadcast %cst_6 : f32 to vector<96x132xf32>
    %8 = arith.cmpf ogt, %6, %7 : vector<96x132xf32>
    %cst_7 = arith.constant 0.00999999977 : f32
    %9 = vector.broadcast %cst_7 : f32 to vector<96x132xf32>
    %10 = arith.mulf %9, %6 : vector<96x132xf32>
    %11 = arith.select %8, %6, %10 : vector<96x132xi1>, vector<96x132xf32>
    %c0_8 = arith.constant 0 : index
    %c0_9 = arith.constant 0 : index
    %12 = vector.load %arg5[%c0_8, %c0_9] : memref<20x96xf32, #tpu.memory_space<vmem>>, vector<20x96xf32>
    %cst_10 = arith.constant dense<0.000000e+00> : vector<20x132xf32>
    %13 = tpu.matmul %12, %11, %cst_10 {dimension_numbers = #tpu.dot_dimension_numbers<[1], [0], [0], [1], [0, 0, 1, 1], [], []>, precision = #tpu.contract_precision<fp32>} : vector<20x96xf32>, vector<96x132xf32>, vector<20x132xf32> -> vector<20x132xf32>
    %c0_11 = arith.constant 0 : index
    %c0_12 = arith.constant 0 : index
    %14 = vector.load %arg6[%c0_11, %c0_12] : memref<20x1xf32, #tpu.memory_space<vmem>>, vector<20x1xf32>
    %15 = vector.broadcast %14 : vector<20x1xf32> to vector<20x132xf32>
    %16 = arith.addf %13, %15 : vector<20x132xf32>
    %cst_13 = arith.constant 0.000000e+00 : f32
    %17 = vector.broadcast %cst_13 : f32 to vector<20x132xf32>
    %18 = arith.cmpf ogt, %16, %17 : vector<20x132xf32>
    %cst_14 = arith.constant 0.00999999977 : f32
    %19 = vector.broadcast %cst_14 : f32 to vector<20x132xf32>
    %20 = arith.mulf %19, %16 : vector<20x132xf32>
    %21 = arith.select %18, %16, %20 : vector<20x132xi1>, vector<20x132xf32>
    %c0_15 = arith.constant 0 : index
    %c0_16 = arith.constant 0 : index
    %22 = vector.load %arg7[%c0_15, %c0_16] : memref<1x20xf32, #tpu.memory_space<vmem>>, vector<1x20xf32>
    %cst_17 = arith.constant dense<0.000000e+00> : vector<1x132xf32>
    %23 = tpu.matmul %22, %21, %cst_17 {dimension_numbers = #tpu.dot_dimension_numbers<[1], [0], [0], [1], [0, 0, 1, 1], [], []>, precision = #tpu.contract_precision<fp32>} : vector<1x20xf32>, vector<20x132xf32>, vector<1x132xf32> -> vector<1x132xf32>
    %c0_18 = arith.constant 0 : index
    %c0_19 = arith.constant 0 : index
    %c0_20 = arith.constant 0 : index
    %24 = vector.load %arg2[%c0_18, %c0_19, %c0_20] : memref<1x1x132xf32, #tpu.memory_space<vmem>>, vector<1x1x132xf32>
    %25 = vector.shape_cast %24 : vector<1x1x132xf32> to vector<1x132xf32>
    %c0_21 = arith.constant 0 : index
    %26 = memref.load %arg10[%c0_21] : memref<3xf32, #tpu.memory_space<smem>>
    %27 = vector.broadcast %26 : f32 to vector<1x132xf32>
    %28 = arith.mulf %25, %27 : vector<1x132xf32>
    %29 = arith.addf %23, %28 : vector<1x132xf32>
    %c1 = arith.constant 1 : index
    %30 = memref.load %arg10[%c1] : memref<3xf32, #tpu.memory_space<smem>>
    %31 = vector.broadcast %30 : f32 to vector<1x132xf32>
    %32 = arith.addf %29, %31 : vector<1x132xf32>
    %c2 = arith.constant 2 : index
    %33 = memref.load %arg10[%c2] : memref<3xf32, #tpu.memory_space<smem>>
    %cst_22 = arith.constant dense<0xFF800000> : vector<1xf32>
    %34 = vector.multi_reduction <maximumf>, %32, %cst_22 [1] : vector<1x132xf32> to vector<1xf32>
    %35 = vector.shape_cast %34 : vector<1xf32> to vector<1x1xf32>
    %36 = vector.broadcast %33 : f32 to vector<1x1xf32>
    %37 = arith.maximumf %35, %36 : vector<1x1xf32>
    %38 = vector.broadcast %37 : vector<1x1xf32> to vector<1x132xf32>
    %39 = arith.subf %32, %38 : vector<1x132xf32>
    %40 = math.exp %39 : vector<1x132xf32>
    %41 = vector.broadcast %33 : f32 to vector<1x1xf32>
    %42 = arith.subf %41, %37 : vector<1x1xf32>
    %43 = math.exp %42 : vector<1x1xf32>
    %c0_23 = arith.constant 0 : index
    %c0_24 = arith.constant 0 : index
    %44 = vector.load %arg8[%c0_23, %c0_24] : memref<132x12xf32, #tpu.memory_space<vmem>>, vector<132x12xf32>
    %cst_25 = arith.constant dense<0.000000e+00> : vector<1x12xf32>
    %45 = tpu.matmul %40, %44, %cst_25 {dimension_numbers = #tpu.dot_dimension_numbers<[1], [0], [0], [1], [0, 0, 1, 1], [], []>, precision = #tpu.contract_precision<fp32>} : vector<1x132xf32>, vector<132x12xf32>, vector<1x12xf32> -> vector<1x12xf32>
    %46 = vector.broadcast %43 : vector<1x1xf32> to vector<1x12xf32>
    %47 = arith.addf %45, %46 : vector<1x12xf32>
    %c0_26 = arith.constant 0 : index
    %c0_27 = arith.constant 0 : index
    %48 = vector.load %arg9[%c0_26, %c0_27] : memref<12x132xf32, #tpu.memory_space<vmem>>, vector<12x132xf32>
    %cst_28 = arith.constant dense<0.000000e+00> : vector<1x132xf32>
    %49 = tpu.matmul %47, %48, %cst_28 {dimension_numbers = #tpu.dot_dimension_numbers<[1], [0], [0], [1], [0, 0, 1, 1], [], []>, precision = #tpu.contract_precision<fp32>} : vector<1x12xf32>, vector<12x132xf32>, vector<1x132xf32> -> vector<1x132xf32>
    %50 = arith.divf %40, %49 : vector<1x132xf32>
    %c0_29 = arith.constant 0 : index
    %c0_30 = arith.constant 0 : index
    %c0_31 = arith.constant 0 : index
    %51 = vector.load %arg11[%c0_29, %c0_30, %c0_31] : memref<1x1x132xf32, #tpu.memory_space<vmem>>, vector<1x1x132xf32>
    %52 = vector.shape_cast %51 : vector<1x1x132xf32> to vector<1x132xf32>
    %53 = vector.shape_cast %50 : vector<1x132xf32> to vector<1x1x132xf32>
    tpu.vector_store %arg11[%c0_29, %c0_30, %c0_31], %53 {strides = array<i32>} : memref<1x1x132xf32, #tpu.memory_space<vmem>>, vector<1x1x132xf32>,
    return
  }
  func.func @transform_0(%arg0: i32) -> (i32, i32, i32) {
    %c0_i32 = arith.constant 0 : i32
    %c0_i32_0 = arith.constant 0 : i32
    %c0_i32_1 = arith.constant 0 : i32
    return %arg0, %c0_i32, %c0_i32_0 : i32, i32, i32
  }
  func.func @transform_1(%arg0: i32) -> (i32, i32, i32) {
    %c0_i32 = arith.constant 0 : i32
    %c0_i32_0 = arith.constant 0 : i32
    %c0_i32_1 = arith.constant 0 : i32
    return %arg0, %c0_i32, %c0_i32_0 : i32, i32, i32
  }
  func.func @transform_2(%arg0: i32) -> (i32, i32) {
    %c0_i32 = arith.constant 0 : i32
    %c0_i32_0 = arith.constant 0 : i32
    %c0_i32_1 = arith.constant 0 : i32
    return %c0_i32, %c0_i32_0 : i32, i32
  }
  func.func @transform_3(%arg0: i32) -> (i32, i32) {
    %c0_i32 = arith.constant 0 : i32
    %c0_i32_0 = arith.constant 0 : i32
    %c0_i32_1 = arith.constant 0 : i32
    return %c0_i32, %c0_i32_0 : i32, i32
  }
  func.func @transform_4(%arg0: i32) -> (i32, i32) {
    %c0_i32 = arith.constant 0 : i32
    %c0_i32_0 = arith.constant 0 : i32
    %c0_i32_1 = arith.constant 0 : i32
    return %c0_i32, %c0_i32_0 : i32, i32
  }
  func.func @transform_5(%arg0: i32) -> (i32, i32) {
    %c0_i32 = arith.constant 0 : i32
    %c0_i32_0 = arith.constant 0 : i32
    %c0_i32_1 = arith.constant 0 : i32
    return %c0_i32, %c0_i32_0 : i32, i32
  }
  func.func @transform_6(%arg0: i32) -> (i32, i32) {
    %c0_i32 = arith.constant 0 : i32
    %c0_i32_0 = arith.constant 0 : i32
    %c0_i32_1 = arith.constant 0 : i32
    return %c0_i32, %c0_i32_0 : i32, i32
  }
  func.func @transform_7(%arg0: i32) -> (i32, i32) {
    %c0_i32 = arith.constant 0 : i32
    %c0_i32_0 = arith.constant 0 : i32
    %c0_i32_1 = arith.constant 0 : i32
    return %c0_i32, %c0_i32_0 : i32, i32
  }
  func.func @transform_8(%arg0: i32) -> (i32, i32) {
    %c0_i32 = arith.constant 0 : i32
    %c0_i32_0 = arith.constant 0 : i32
    %c0_i32_1 = arith.constant 0 : i32
    return %c0_i32, %c0_i32_0 : i32, i32
  }
  func.func @transform_9(%arg0: i32) -> i32 {
    %c0_i32 = arith.constant 0 : i32
    %c0_i32_0 = arith.constant 0 : i32
    return %c0_i32 : i32
  }
  func.func @transform_10(%arg0: i32) -> (i32, i32, i32) {
    %c0_i32 = arith.constant 0 : i32
    %c0_i32_0 = arith.constant 0 : i32
    %c0_i32_1 = arith.constant 0 : i32
    return %arg0, %c0_i32, %c0_i32_0 : i32, i32, i32
  }
}

</mosaic_0001>

<bundles_post_ra>
// kernel: actor_forward.1
= control target key start
LH: loop header
LB: loop body
LE: loop exit
PB: predicated region body
PF: predicated region fallthrough
CT: control target
= control target key end

     0   :  { %15 = vsyncpa [#allocation3], 0  ;;  %s5260_s13 = smov 0   ;;  %s7973_s0 = inlined_call_operand.vmem [shape: f32[2,150,132], index: 0, kind: input, shape index: {}]   ;;  %s7974_s1 = inlined_call_operand.vmem [shape: f32[2,1,132], index: 1, kind: input, shape index: {}]   ;;  %s7975_s2 = inlined_call_operand.vmem [shape: f32[96,150], index: 2, kind: input, shape index: {}]   ;;  %s7976_s3 = inlined_call_operand.vmem [shape: f32[96,1], index: 3, kind: input, shape index: {}]   ;;  %s7977_s4 = inlined_call_operand.vmem [shape: f32[20,96], index: 4, kind: input, shape index: {}]   ;;  %s7978_s5 = inlined_call_operand.vmem [shape: f32[20,1], index: 5, kind: input, shape index: {}]   ;;  %s7979_s6 = inlined_call_operand.vmem [shape: f32[1,20], index: 6, kind: input, shape index: {}]   ;;  %s7980_s7 = inlined_call_operand.vmem [shape: f32[132,12], index: 7, kind: input, shape index: {}]   ;;  %s7981_s8 = inlined_call_operand.vmem [shape: f32[12,132], index: 8, kind: input, shape index: {}]   ;;  %s7982_s9 = inlined_call_operand.vmem [shape: f32[3], index: 9, kind: input, shape index: {}]   ;;  %s7983_s10 = inlined_call_operand.vmem [shape: f32[2,1,132], index: 10, kind: output, shape index: {}]  }
   0x1 LB: > { %s5128_s14 = sadd.s32 4294967295, %s5201_s13   ;;  %p5130_p0 = scmp.ge.s32.totalorder %s5201_s13, 1  ;;  %s5201_s13 = sphi %s5260_s13, %s21_s13  }
   0x2   : > { %p272_p1 = scmp.lt.s32.totalorder %s5201_s13, 3  ;;  %s305_s17 = sshll.u32 %s7982_s9, 4  ;;  %s306_s17 = int_to_ptr.vmem [resolvable:$true] %s305_s17 }
   0x3   : > { %p5151_p3 = scmp.eq.s32.totalorder %s5128_s14, 0  ;;  %s5203_s18 = smov [#allocation2]  }
   0x4   : > { %p273_p2 = pnand %p5130_p0, %p272_p1 }
   0x6   : > { %p5147_p4 = pneg %p273_p2  ;;  %333 = sbr.rel (%p273_p2) target bundleno = 1627 (0x65b), region = 60 }
   0x8   : > { %p5148_p5 = pnand %p5151_p3, %p5147_p4 }
   0xa   : > { %5150 = dma.vmem_to_smem (!%p5148_p5), %s306_s17, 16, %s5203_s18, [#allocation3]  }
   0xb   : > { %5196 = dma.done.wait (%p5151_p3), [#allocation3], 16  }
   0xc   : > { %5198 = vsyncadd (%p5151_p3), [#allocation3], 4294967280 }
   0xd   : > { %340 = sfence }
   0xe   : > { %p376_p6 = scmp.lt.s32.totalorder %s5128_s14, 1  ;;  %v389_v47 = vld [vmem:[%s7975_s2] sm:$0xff]  ;;  %vm560_vm0 = vcmask 1045504   ;;  %vm523_vm1 = vcmask 179200   ;;  %vm3050_vm14 = vcmask 785408   ;;  %s3782_s23 = sld [smem:[#allocation2]] }
   0xf   : > { %v5397_v57 = vand.u32 4294901760, %v389_v47  ;;  %s7758_s16 = sld [smem:[#allocation2 + $0x1]] }
  0x10   : > { %s8580_s14 = smov (!%p376_p6, %s5128_s14), 1  ;;  %s5139_s28 = sld [smem:[#allocation2 + $0x2]] }
  0x11   : > { %s5142_s19 = smul.u32 304, %s8580_s14  ;;  %8160 = vst [vmem:[#allocation5_spill] sm:$0xff] %v5397_v57  ;;  %s5136_s24 = sshll.u32 %s8580_s14, 1 }
  0x12   : > { %s388_s21 = scalar_lea.vmem %s7983_s10, %s5136_s24 }
  0x13   : > { %s5277_s22 = scalar_lea.vmem %s7973_s0, %s5142_s19 }
  0x14   : > { %v443_v0 = vld [vmem:[%s5277_s22 + $0xf0] sm:$0xff]  ;;  %v441_v1 = vld [vmem:[%s5277_s22 + $0xe0] sm:$0xff] }
  0x15   : > { %v439_v2 = vld [vmem:[%s5277_s22 + $0xd0] sm:$0xff]  ;;  %v5282_v3 = vand.u32 4294901760, %v443_v0  ;;  %v5284_v4 = vand.u32 4294901760, %v441_v1  ;;  %v437_v6 = vld [vmem:[%s5277_s22 + $0xc0] sm:$0xff] }
  0x16   : > { %v5286_v5 = vand.u32 4294901760, %v439_v2  ;;  %v435_v7 = vld [vmem:[%s5277_s22 + $0xb0] sm:$0xff]  ;;  %v433_v8 = vld [vmem:[%s5277_s22 + $0xa0] sm:$0xff]  ;;  %v5291_v9 = vand.u32 4294901760, %v437_v6 }
  0x17   : > { %v5293_v10 = vand.u32 4294901760, %v435_v7  ;;  %v5295_v11 = vand.u32 4294901760, %v433_v8  ;;  %v431_v12 = vld [vmem:[%s5277_s22 + $0x90] sm:$0xff]  ;;  %v429_v13 = vld [vmem:[%s5277_s22 + $0x80] sm:$0xff]  ;;  %568 = vmatpush.msra.mxu0 %v5282_v3  ;;  %v5301_v14 = vsub.f32 %v443_v0, %v5282_v3  ;;  %v5304_v15 = vsub.f32 %v441_v1, %v5284_v4  ;;  %951 = vmatpush.msra.mxu3 %v5282_v3 }
  0x18   : > { %v5308_v16 = vsub.f32 %v439_v2, %v5286_v5  ;;  %v5310_v17 = vand.u32 4294901760, %v431_v12  ;;  %v427_v18 = vld [vmem:[%s5277_s22 + $0x70] sm:$0xff]  ;;  %v5314_v19 = vsub.f32 %v437_v6, %v5291_v9  ;;  %v5319_v21 = vand.u32 4294901760, %v429_v13  ;;  %v425_v26 = vld [vmem:[%s5277_s22 + $0x60] sm:$0xff] }
  0x19   : > { %v5317_v20 = vsub.f32 %v435_v7, %v5293_v10  ;;  %570 = vmatpush.msra.mxu0 %v5284_v4  ;;  %843 = vmatpush.msra.mxu2 %v5301_v14  ;;  %v698_v22 = vand.u32 4294901760, %v5301_v14  ;;  %v704_v23 = vand.u32 4294901760, %v5304_v15  ;;  %v5327_v25 = vsub.f32 %v433_v8, %v5295_v11  ;;  %v423_v36 = vld [vmem:[%s5277_s22 + $0x50] sm:$0xff]  ;;  %v421_v43 = vld [vmem:[%s5277_s22 + $0x40] sm:$0xff] }
  0x1a   : > { %v710_v24 = vand.u32 4294901760, %v5308_v16  ;;  %953 = vmatpush.msra.mxu3 %v5284_v4  ;;  %v716_v27 = vand.u32 4294901760, %v5314_v19  ;;  %v5332_v28 = vand.u32 4294901760, %v427_v18  ;;  %v5335_v29 = vsub.f32 %v431_v12, %v5310_v17  ;;  %v419_v49 = vld [vmem:[%s5277_s22 + $0x30] sm:$0xff]  ;;  %v417_v56 = vld [vmem:[%s5277_s22 + $0x20] sm:$0xff] }
  0x1b   : > { %572 = vmatpush.msra.mxu0 %v5286_v5  ;;  %846 = vmatpush.msra.mxu2 %v5304_v15  ;;  %v699_v30 = vsub.f32 %v5301_v14, %v698_v22  ;;  %v705_v31 = vsub.f32 %v5304_v15, %v704_v23  ;;  %v722_v33 = vand.u32 4294901760, %v5317_v20  ;;  %v5350_v34 = vand.u32 4294901760, %v425_v26  ;;  %v415_v62 = vld [vmem:[%s5277_s22 + $0x10] sm:$0xff]  ;;  %v449_v6 = vld [vmem:[%s5277_s22 + $0x120] sm:$0x3f] }
  0x1c   : > { %v711_v32 = vsub.f32 %v5308_v16, %v710_v24  ;;  %955 = vmatpush.msra.mxu3 %v5286_v5  ;;  %v5353_v35 = vsub.f32 %v429_v13, %v5319_v21  ;;  %v717_v39 = vsub.f32 %v5314_v19, %v716_v27  ;;  %v728_v40 = vand.u32 4294901760, %v5327_v25  ;;  %v413_v12 = vld [vmem:[%s5277_s22] sm:$0xff] }
  0x1d   : > { %574 = vmatpush.msra.mxu0 %v5291_v9  ;;  %v700_v37 = vand.u32 4294901760, %v699_v30  ;;  %849 = vmatpush.msra.mxu2 %v5308_v16  ;;  %v706_v38 = vand.u32 4294901760, %v705_v31  ;;  %v734_v41 = vand.u32 4294901760, %v5335_v29  ;;  %v5365_v42 = vsub.f32 %v427_v18, %v5332_v28  ;;  %v391_v31 = vld [vmem:[%s7975_s2 + $0x10] sm:$0xff] }
  0x1e   : > { %957 = vmatpush.msra.mxu3 %v5291_v9  ;;  %v712_v44 = vand.u32 4294901760, %v711_v32  ;;  %v723_v45 = vsub.f32 %v5317_v20, %v722_v33  ;;  %v5372_v46 = vand.u32 4294901760, %v423_v36  ;;  %v7993_v48 = vand.u32 4294901760, %v5353_v35  ;;  %v457_v16 = vld [vmem:[%s7976_s3 + $0x30] sm:$0xff] }
  0x1f   : > { %576 = vmatpush.msra.mxu0 %v5293_v10  ;;  %701 = vmatpush.msra.mxu1 %v700_v37  ;;  %v718_v50 = vand.u32 4294901760, %v717_v39  ;;  %v729_v51 = vsub.f32 %v5327_v25, %v728_v40  ;;  %v5385_v52 = vand.u32 4294901760, %v421_v43  ;;  %v5388_v53 = vsub.f32 %v425_v26, %v5350_v34 }
  0x20   : > { %852 = vmatpush.msra.mxu2 %v5314_v19  ;;  %959 = vmatpush.msra.mxu3 %v5293_v10  ;;  %v735_v54 = vsub.f32 %v5335_v29, %v734_v41  ;;  %v7989_v55 = vand.u32 4294901760, %v5365_v42  ;;  %v724_v58 = vand.u32 4294901760, %v723_v45  ;;  %v5400_v59 = vand.u32 4294901760, %v419_v49  ;;  %v452_v19 = vld [vmem:[%s7976_s3 + $0x8] sm:$0xff] }
  0x21   : > { %578 = vmatpush.msra.mxu0 %v5295_v11  ;;  %707 = vmatpush.msra.mxu1 %v706_v38  ;;  %v5403_v60 = vsub.f32 %v423_v36, %v5372_v46  ;;  %v741_v61 = vsub.f32 %v5353_v35, %v7993_v48  ;;  %v730_v63 = vand.u32 4294901760, %v729_v51  ;;  %v5412_v0 = vand.u32 4294901760, %v417_v56 }
  0x22   : > { %855 = vmatpush.msra.mxu2 %v5317_v20  ;;  %961 = vmatpush.msra.mxu3 %v5295_v11  ;;  %v7988_v1 = vand.u32 4294901760, %v5388_v53  ;;  %v5416_v2 = vsub.f32 %v421_v43, %v5385_v52  ;;  %v736_v7 = vand.u32 4294901760, %v735_v54  ;;  %v747_v8 = vsub.f32 %v5365_v42, %v7989_v55 }
  0x23   : > { %580 = vmatpush.msra.mxu0 %v5310_v17  ;;  %713 = vmatpush.msra.mxu1 %v712_v44  ;;  %v5426_v13 = vsub.f32 %v389_v47, %v5397_v57  ;;  %v5429_v18 = vand.u32 4294901760, %v415_v62  ;;  %v7986_v26 = vand.u32 4294901760, %v5403_v60  ;;  %v5433_v30 = vsub.f32 %v419_v49, %v5400_v59 }
  0x24   : > { %858 = vmatpush.msra.mxu2 %v5327_v25  ;;  %963 = vmatpush.msra.mxu3 %v5310_v17  ;;  %v742_v32 = vand.u32 4294901760, %v741_v61  ;;  %v562_v36 = vsel %vm560_vm0, %v449_v6, 0  ;;  %v753_v37 = vsub.f32 %v5388_v53, %v7988_v1  ;;  %v5445_v38 = vand.u32 4294901760, %v413_v12  ;;  %v453_v25 = vld [vmem:[%s7976_s3 + $0x10] sm:$0xff] }
  0x25   : > { %582 = vmatpush.msra.mxu0 %v5319_v21  ;;  %719 = vmatpush.msra.mxu1 %v718_v50  ;;  %8161 = vst [vmem:[#allocation6_spill] sm:$0xff] %v5426_v13  ;;  %v7985_v39 = vand.u32 4294901760, %v5416_v2  ;;  %v5449_v43 = vsub.f32 %v417_v56, %v5412_v0  ;;  %v748_v44 = vand.u32 4294901760, %v747_v8  ;;  %v5454_v45 = vand.u32 4294901760, %v5426_v13 }
  0x26   : > { %861 = vmatpush.msra.mxu2 %v5335_v29  ;;  %965 = vmatpush.msra.mxu3 %v5319_v21  ;;  %v5456_v47 = vand.u32 4294901760, %v391_v31  ;;  %v759_v49 = vsub.f32 %v5403_v60, %v7986_v26  ;;  %v7984_v50 = vand.u32 4294901760, %v5433_v30  ;;  %v5464_v51 = vsub.f32 %v415_v62, %v5429_v18 }
  0x27   : > { %584 = vmatpush.msra.mxu0 %v5332_v28  ;;  %725 = vmatpush.msra.mxu1 %v724_v58  ;;  %8162 = vst [vmem:[#allocation7_spill] sm:$0xff] %v5454_v45  ;;  %v5466_v54 = vand.u32 4294901760, %v562_v36  ;;  %v754_v56 = vand.u32 4294901760, %v753_v37  ;;  %v765_v58 = vsub.f32 %v5416_v2, %v7985_v39  ;;  %v7987_v61 = vand.u32 4294901760, %v5449_v43  ;;  %v393_v37 = vld [vmem:[%s7975_s2 + $0x20] sm:$0xff] }
  0x28   : > { %864 = vmatpush.msra.mxu2 %v5353_v35  ;;  %967 = vmatpush.msra.mxu3 %v5332_v28  ;;  %8163 = vst [vmem:[#allocation8_spill] sm:$0xff] %v5456_v47  ;;  %v602_v62 = vsub.f32 %v5426_v13, %v5454_v45  ;;  %v5483_v6 = vsub.f32 %v391_v31, %v5456_v47 }
  0x29   : > { %586 = vmatpush.msra.mxu0 %v5350_v34  ;;  %731 = vmatpush.msra.mxu1 %v730_v63  ;;  %v5476_v63 = vsub.f32 %v413_v12, %v5445_v38  ;;  %v771_v8 = vsub.f32 %v5433_v30, %v7984_v50  ;;  %v7991_v12 = vand.u32 4294901760, %v5464_v51  ;;  %v766_v31 = vand.u32 4294901760, %v765_v58 }
  0x2a   : > { %867 = vmatpush.msra.mxu2 %v5365_v42  ;;  %969 = vmatpush.msra.mxu3 %v5350_v34  ;;  %8164 = vst [vmem:[#allocation9_spill] sm:$0xff] %v5483_v6  ;;  %v5204_v50 = vmov 0   ;;  %v5507_v39 = vand.u32 4294901760, %v602_v62  ;;  %v5510_v26 = vand.u32 4294901760, %v5483_v6 }
  0x2b   : > { %588 = vmatpush.msra.mxu0 %v5372_v46  ;;  %737 = vmatpush.msra.mxu1 %v736_v7  ;;  %v760_v7 = vand.u32 4294901760, %v759_v49  ;;  %v7990_v49 = vand.u32 4294901760, %v5476_v63  ;;  %v772_v58 = vand.u32 4294901760, %v771_v8 }
  0x2c   : > { %870 = vmatpush.msra.mxu2 %v5388_v53  ;;  %971 = vmatpush.msra.mxu3 %v5372_v46  ;;  %8165 = vst [vmem:[#allocation10_spill] sm:$0xff] %v5507_v39 }
  0x2d   : > { %590 = vmatpush.msra.mxu0 %v5385_v52  ;;  %743 = vmatpush.msra.mxu1 %v742_v32  ;;  %v5491_v32 = vsub.f32 %v562_v36, %v5466_v54  ;;  %v777_v36 = vsub.f32 %v5449_v43, %v7987_v61  ;;  %8166 = vst [vmem:[#allocation11_spill] sm:$0xff] %v5510_v26 }
  0x2e   : > { %873 = vmatpush.msra.mxu2 %v5403_v60  ;;  %973 = vmatpush.msra.mxu3 %v5385_v52  ;;  %v783_v61 = vsub.f32 %v5464_v51, %v7991_v12  ;;  %v789_v55 = vsub.f32 %v5476_v63, %v7990_v49  ;;  %v395_v49 = vld [vmem:[%s7975_s2 + $0x30] sm:$0xff] }
  0x2f   : > { %592 = vmatpush.msra.mxu0 %v5400_v59  ;;  %749 = vmatpush.msra.mxu1 %v748_v44  ;;  %v460_v44 = vld [vmem:[%s7976_s3 + $0x48] sm:$0xff]  ;;  %v7992_v1 = vand.u32 4294901760, %v5491_v32  ;;  %v778_v62 = vand.u32 4294901760, %v777_v36 }
  0x30   : > { %876 = vmatpush.msra.mxu2 %v5416_v2  ;;  %975 = vmatpush.msra.mxu3 %v5400_v59 }
  0x31   : > { %594 = vmatpush.msra.mxu0 %v5412_v0  ;;  %755 = vmatpush.msra.mxu1 %v754_v56  ;;  %v5512_v56 = vand.u32 4294901760, %v393_v37  ;;  %v1381_v36 = vsub.f32 %v5491_v32, %v7992_v1  ;;  %v5552_v1 = vand.u32 4294901760, %v395_v49 }
  0x32   : > { %879 = vmatpush.msra.mxu2 %v5433_v30  ;;  %5164 = vset.pattern.permute.xlu1 %v5204_v50 }
  0x33   : > { %8167 = vst [vmem:[#allocation12_spill] sm:$0xff] %v5512_v56  ;;  %596 = vmatpush.msra.mxu0 %v5429_v18  ;;  %761 = vmatpush.msra.mxu1 %v760_v7  ;;  %v610_v7 = vsub.f32 %v5483_v6, %v5510_v26  ;;  %v5529_v8 = vsub.f32 %v393_v37, %v5512_v56 }
  0x34   : > { %882 = vmatpush.msra.mxu2 %v5449_v43  ;;  %510 = vperm.xlu1 %5164, %v460_v44   ;;  %v784_v44 = vand.u32 4294901760, %v783_v61  ;;  %v790_v61 = vand.u32 4294901760, %v789_v55  ;;  %8171 = vst [vmem:[#allocation16_spill] sm:$0xff] %v5552_v1  ;;  %v447_v55 = vld [vmem:[%s5277_s22 + $0x110] sm:$0xff] }
  0x35   : > { %598 = vmatpush.msra.mxu0 %v5445_v38  ;;  %767 = vmatpush.msra.mxu1 %v766_v31  ;;  %8168 = vst [vmem:[#allocation13_spill] sm:$0xff] %v5529_v8  ;;  %v462_v31 = vld [vmem:[%s7976_s3 + $0x58] sm:$0xff]  ;;  %v5544_v37 = vand.u32 4294901760, %v610_v7  ;;  %v5550_v12 = vand.u32 4294901760, %v5529_v8  ;;  %v5558_v7 = vand.u32 4294901760, %v447_v55 }
  0x36   : > { %604 = vmatmul.f32.vlgmr.msra.gmra.mxu0 %v5507_v39  ;;  %885 = vmatpush.msra.mxu2 %v5464_v51 }
  0x37   : > { %773 = vmatpush.msra.mxu1 %v772_v58  ;;  %977 = vmatpush.msra.mxu3 %v5412_v0  ;;  %8169 = vst [vmem:[#allocation14_spill] sm:$0xff] %v5544_v37  ;;  %v459_v58 = vld [vmem:[%s7976_s3 + $0x40] sm:$0xff]  ;;  %v5579_v48 = vsub.f32 %v447_v55, %v5558_v7 }
  0x38   : > { %888 = vmatpush.msra.mxu2 %v5476_v63  ;;  %5163 = vset.pattern.permute.xlu0 %v5204_v50  ;;  %8170 = vst [vmem:[#allocation15_spill] sm:$0xff] %v5550_v12 }
  0x39   : > { %779 = vmatpush.msra.mxu1 %v778_v62  ;;  %979 = vmatpush.msra.mxu3 %v5429_v18  ;;  %v1382_v62 = vand.u32 4294901760, %v1381_v36  ;;  %v5568_v36 = vsub.f32 %v395_v49, %v5552_v1  ;;  %v1386_v14 = vand.u32 4294901760, %v5579_v48  ;;  %v455_v49 = vld [vmem:[%s7976_s3 + $0x20] sm:$0xff] }
  0x3a   : > { %891 = vmatmul.f32.vlgmr.msra.gmra.mxu2 %v5426_v13  ;;  %520 = vperm.xlu0 %5163, %v462_v31   ;;  %v618_v31 = vsub.f32 %v5529_v8, %v5550_v12 }
  0x3b   : > { %785 = vmatpush.msra.mxu1 %v784_v44  ;;  %981 = vmatpush.msra.mxu3 %v5445_v38  ;;  %v458_v44 = vld [vmem:[%s7976_s3 + $0x38] sm:$0xff]  ;;  %8172 = vst [vmem:[#allocation17_spill] sm:$0xff] %v5568_v36  ;;  %v1387_v15 = vsub.f32 %v5579_v48, %v1386_v14 }
  0x3c   : > { %985 = vmatmul.f32.vlgmr.msra.gmra.mxu3 %v5454_v45  ;;  %1263 = vmatpush.msrb.mxu2 %v5466_v54 }
  0x3d   : > { %791 = vmatpush.msra.mxu1 %v790_v61  ;;  %505 = vperm.xlu1 %5164, %v459_v58   ;;  %v461_v61 = vld [vmem:[%s7976_s3 + $0x50] sm:$0xff]  ;;  %v397_v58 = vld [vmem:[%s7975_s2 + $0x40] sm:$0xff] }
  0x3e   : > { %612 = vmatmul.f32.gmra.mxu0 %v5544_v37  ;;  %793 = vmatmul.f32.vlgmr.msra.gmra.mxu1 %v5397_v57 }
  0x3f   : > { %1058 = vmatpush.msrb.mxu0 %v698_v22  ;;  %1383 = vmatpush.msrb.mxu3 %v1382_v62  ;;  %v5586_v22 = vand.u32 4294901760, %v618_v31  ;;  %v5592_v62 = vand.u32 4294901760, %v5568_v36 }
  0x40   : > { %1169 = vmatpush.msrb.mxu1 %v5282_v3  ;;  %5165 = vset.pattern.permute.xlu2 %v5204_v50  ;;  %v5594_v3 = vand.u32 4294901760, %v397_v58  ;;  %v456_v50 = vld [vmem:[%s7976_s3 + $0x28] sm:$0xff] }
  0x41   : > { %1062 = vmatpush.msrb.mxu0 %v704_v23  ;;  %500 = vperm.xlu2 %5165, %v458_v44   ;;  %8173 = vst [vmem:[#allocation18_spill] sm:$0xff] %v5586_v22  ;;  %v1388_v23 = vand.u32 4294901760, %v1387_v15  ;;  %v8192_v15 = vand.u32 4294901760, %v5416_v2 }
  0x42   : > { %896 = vmatmul.f32.gmra.mxu2 %v5483_v6  ;;  %515 = vperm.xlu0 %5163, %v461_v61   ;;  %8174 = vst [vmem:[#allocation19_spill] sm:$0xff] %v5592_v62 }
  0x43   : > { %8175 = vst [vmem:[#allocation20_spill] sm:$0xff] %v5594_v3  ;;  %1171 = vmatpush.msrb.mxu1 %v5284_v4  ;;  %1066 = vmatpush.msrb.mxu0 %v710_v24  ;;  %v626_v4 = vsub.f32 %v5568_v36, %v5592_v62  ;;  %v5613_v24 = vsub.f32 %v397_v58, %v5594_v3 }
  0x44   : > { %991 = vmatmul.f32.gmra.mxu3 %v5510_v26  ;;  %1265 = vmatpush.msrb.mxu2 %v5558_v7 }
  0x45   : > { %485 = vperm.xlu1 %5164, %v455_v49   ;;  %1173 = vmatpush.msrb.mxu1 %v5286_v5  ;;  %8176 = vst [vmem:[#allocation21_spill] sm:$0xff] %v5613_v24  ;;  %v399_v5 = vld [vmem:[%s7975_s2 + $0x50] sm:$0xff]  ;;  %v5627_v55 = vand.u32 4294901760, %v626_v4  ;;  %v8195_v4 = vand.u32 4294901760, %v5449_v43 }
  0x46   : > { %620 = vmatmul.f32.gmra.mxu0 %v5586_v22  ;;  %797 = vmatmul.f32.gmra.mxu1 %v5456_v47 }
  0x47   : > { %1070 = vmatpush.msrb.mxu0 %v716_v27  ;;  %1175 = vmatpush.msrb.mxu1 %v5291_v9  ;;  %8177 = vst [vmem:[#allocation22_spill] sm:$0xff] %v5627_v55  ;;  %v5633_v9 = vand.u32 4294901760, %v5613_v24  ;;  %v5635_v27 = vand.u32 4294901760, %v399_v5 }
  0x48   : > { %1389 = vmatpush.msrb.mxu3 %v1388_v23 }
  0x49   : > { %495 = vperm.xlu2 %5165, %v457_v16   ;;  %1074 = vmatpush.msrb.mxu0 %v722_v33  ;;  %8178 = vst [vmem:[#allocation23_spill] sm:$0xff] %v5633_v9  ;;  %v634_v20 = vsub.f32 %v5613_v24, %v5633_v9  ;;  %v454_v33 = vld [vmem:[%s7976_s3 + $0x18] sm:$0xff] }
  0x4a   : > { %901 = vmatmul.f32.gmra.mxu2 %v5529_v8  ;;  %490 = vperm.xlu0 %5163, %v456_v50   ;;  %8179 = vst [vmem:[#allocation24_spill] sm:$0xff] %v5635_v27  ;;  %v8197_v50 = vand.u32 4294901760, %v5464_v51 }
  0x4b   : > { %1177 = vmatpush.msrb.mxu1 %v5293_v10  ;;  %1078 = vmatpush.msrb.mxu0 %v728_v40  ;;  %v5650_v10 = vsub.f32 %v399_v5, %v5635_v27  ;;  %v8181_v40 = vand.u32 4294901760, %v5353_v35  ;;  %v5664_v31 = vand.u32 4294901760, %v634_v20  ;;  %v8186_v35 = vand.u32 4294901760, %v5388_v53 }
  0x4c   : > { %997 = vmatmul.f32.gmra.mxu3 %v5550_v12  ;;  %v8188_v53 = vand.u32 4294901760, %v5403_v60  ;;  %v8193_v60 = vand.u32 4294901760, %v5433_v30 }
  0x4d   : > { %470 = vperm.xlu1 %5164, %v452_v19   ;;  %1179 = vmatpush.msrb.mxu1 %v5295_v11  ;;  %8180 = vst [vmem:[#allocation25_spill] sm:$0xff] %v5650_v10  ;;  %v401_v11 = vld [vmem:[%s7975_s2 + $0x60] sm:$0xff]  ;;  %v5667_v44 = vand.u32 4294901760, %v5650_v10 }
  0x4e   : > { %628 = vmatmul.f32.gmra.mxu0 %v5627_v55  ;;  %801 = vmatmul.f32.gmra.mxu1 %v5512_v56  ;;  %8182 = vst [vmem:[#allocation26_spill] sm:$0xff] %v5664_v31  ;;  %v5669_v29 = vand.u32 4294901760, %v401_v11 }
  0x4f   : > { %1082 = vmatpush.msrb.mxu0 %v734_v41  ;;  %1181 = vmatpush.msrb.mxu1 %v5310_v17  ;;  %8183 = vst [vmem:[#allocation27_spill] sm:$0xff] %v5667_v44  ;;  %v8185_v17 = vand.u32 4294901760, %v5365_v42  ;;  %v642_v41 = vsub.f32 %v5650_v10, %v5667_v44 }
  0x50   : > { %8184 = vst [vmem:[#allocation28_spill] sm:$0xff] %v5669_v29  ;;  %v5686_v42 = vsub.f32 %v401_v11, %v5669_v29 }
  0x51   : > { %480 = vperm.xlu2 %5165, %v454_v33   ;;  %1086 = vmatpush.msrb.mxu0 %v8181_v40  ;;  %v5696_v61 = vand.u32 4294901760, %v642_v41  ;;  %v411_v41 = vld [vmem:[%s7975_s2 + $0xb0] sm:$0xff] }
  0x52   : > { %906 = vmatmul.f32.gmra.mxu2 %v5568_v36  ;;  %475 = vperm.xlu0 %5163, %v453_v25   ;;  %8187 = vst [vmem:[#allocation29_spill] sm:$0xff] %v5686_v42  ;;  %v5699_v58 = vand.u32 4294901760, %v5686_v42  ;;  %v409_v25 = vld [vmem:[%s7975_s2 + $0xa0] sm:$0xff] }
  0x53   : > { %1183 = vmatpush.msrb.mxu1 %v5319_v21  ;;  %1090 = vmatpush.msrb.mxu0 %v8185_v17  ;;  %v451_v21 = vld [vmem:[%s7976_s3] sm:$0xff]  ;;  %8189 = vst [vmem:[#allocation30_spill] sm:$0xff] %v5696_v61  ;;  %v5784_v40 = vand.u32 4294901760, %v409_v25 }
  0x54   : > { %1003 = vmatmul.f32.gmra.mxu3 %v5592_v62  ;;  %8190 = vst [vmem:[#allocation31_spill] sm:$0xff] %v5699_v58  ;;  %v650_v23 = vsub.f32 %v5686_v42, %v5699_v58 }
  0x55   : > { %1185 = vmatpush.msrb.mxu1 %v5332_v28  ;;  %1094 = vmatpush.msrb.mxu0 %v8186_v35  ;;  %v403_v28 = vld [vmem:[%s7975_s2 + $0x70] sm:$0xff]  ;;  %8209 = vst [vmem:[#allocation44_spill] sm:$0xff] %v5784_v40  ;;  %v5792_v35 = vsub.f32 %v409_v25, %v5784_v40 }
  0x56   : > { %636 = vmatmul.f32.gmra.mxu0 %v5664_v31  ;;  %805 = vmatmul.f32.gmra.mxu1 %v5552_v1  ;;  %v5701_v49 = vand.u32 4294901760, %v403_v28  ;;  %v5729_v5 = vand.u32 4294901760, %v650_v23 }
  0x57   : > { %1187 = vmatpush.msrb.mxu1 %v5350_v34  ;;  %1098 = vmatpush.msrb.mxu0 %v8188_v53  ;;  %v445_v34 = vld [vmem:[%s5277_s22 + $0x100] sm:$0xff]  ;;  %8210 = vst [vmem:[#allocation45_spill] sm:$0xff] %v5792_v35  ;;  %v5803_v53 = vand.u32 4294901760, %v411_v41 }
  0x58   : > { %8191 = vst [vmem:[#allocation32_spill] sm:$0xff] %v5701_v49  ;;  %v5716_v2 = vsub.f32 %v403_v28, %v5701_v49  ;;  %v5801_v28 = vand.u32 4294901760, %v5792_v35 }
  0x59   : > { %465 = vperm.xlu2 %5165, %v451_v21   ;;  %1189 = vmatpush.msrb.mxu1 %v5372_v46  ;;  %v1266_v46 = vand.u32 4294901760, %v445_v34  ;;  %8198 = vst [vmem:[#allocation34_spill] sm:$0xff] %v5729_v5 }
  0x5a   : > { %911 = vmatmul.f32.gmra.mxu2 %v5613_v24  ;;  %1102 = vmatpush.msrb.mxu0 %v8192_v15  ;;  %8194 = vst [vmem:[#allocation33_spill] sm:$0xff] %v5716_v2  ;;  %v5732_v19 = vand.u32 4294901760, %v5716_v2  ;;  %v682_v15 = vsub.f32 %v5792_v35, %v5801_v28 }
  0x5b   : > { %1191 = vmatpush.msrb.mxu1 %v5385_v52  ;;  %v405_v52 = vld [vmem:[%s7975_s2 + $0x80] sm:$0xff]  ;;  %1267 = vmatpush.msrb.mxu2 %v1266_v46  ;;  %v1391_v30 = vsub.f32 %v445_v34, %v1266_v46  ;;  %8212 = vst [vmem:[#allocation47_spill] sm:$0xff] %v5801_v28  ;;  %v5811_v34 = vsub.f32 %v411_v41, %v5803_v53 }
  0x5c   : > { %1009 = vmatmul.f32.gmra.mxu3 %v5633_v9  ;;  %1106 = vmatpush.msrb.mxu0 %v8193_v60  ;;  %8199 = vst [vmem:[#allocation35_spill] sm:$0xff] %v5732_v19  ;;  %v5734_v20 = vand.u32 4294901760, %v405_v52  ;;  %v390_v60 = vld [vmem:[%s7975_s2 + $0x8] sm:$0xff] }
  0x5d   : > { %1193 = vmatpush.msrb.mxu1 %v5400_v59  ;;  %v8196_v59 = vand.u32 4294901760, %v5491_v32  ;;  %v1392_v16 = vand.u32 4294901760, %v1391_v30  ;;  %8213 = vst [vmem:[#allocation48_spill] sm:$0xff] %v5803_v53  ;;  %v5820_v23 = vand.u32 4294901760, %v5811_v34 }
  0x5e   : > { %644 = vmatmul.f32.gmra.mxu0 %v5696_v61  ;;  %809 = vmatmul.f32.gmra.mxu1 %v5594_v3  ;;  %8200 = vst [vmem:[#allocation36_spill] sm:$0xff] %v5734_v20 }
  0x5f   : > { %1110 = vmatpush.msrb.mxu0 %v8195_v4  ;;  %1195 = vmatpush.msrb.mxu1 %v5412_v0  ;;  %v1393_v43 = vsub.f32 %v1391_v30, %v1392_v16  ;;  %v8201_v0 = vand.u32 4294901760, %v5476_v63  ;;  %v5750_v63 = vsub.f32 %v405_v52, %v5734_v20  ;;  %8214 = vst [vmem:[#allocation49_spill] sm:$0xff] %v5811_v34  ;;  %v525_v52 = vsel %vm523_vm1, %v390_v60, 0  ;;  %v396_v60 = vld [vmem:[%s7975_s2 + $0x38] sm:$0xff] }
  0x60   : > { %1636 = vmatpush.msra.mxu2 %v8196_v59  ;;  %8216 = vst [vmem:[#allocation51_spill] sm:$0xff] %v5820_v23  ;;  %v5828_v4 = vand.u32 4294901760, %v525_v52  ;;  %v392_v59 = vld [vmem:[%s7975_s2 + $0x18] sm:$0xff] }
  0x61   : > { %1114 = vmatpush.msrb.mxu0 %v8197_v50  ;;  %1197 = vmatpush.msrb.mxu1 %v5429_v18  ;;  %v1394_v51 = vand.u32 4294901760, %v1393_v43  ;;  %v658_v18 = vsub.f32 %v5716_v2, %v5732_v19  ;;  %8202 = vst [vmem:[#allocation37_spill] sm:$0xff] %v5750_v63  ;;  %v528_v43 = vsel %vm523_vm1, %v392_v59, 0 }
  0x62   : > { %916 = vmatmul.f32.gmra.mxu2 %v5650_v10  ;;  %8217 = vst [vmem:[#allocation52_spill] sm:$0xff] %v5828_v4  ;;  %v5837_v50 = vsub.f32 %v525_v52, %v5828_v4 }
  0x63   : > { %1118 = vmatpush.msrb.mxu0 %v8201_v0  ;;  %1640 = vmatpush.msra.mxu2 %v1386_v14  ;;  %v407_v14 = vld [vmem:[%s7975_s2 + $0x90] sm:$0xff] }
  0x64   : > { %1015 = vmatmul.f32.gmra.mxu3 %v5667_v44  ;;  %1199 = vmatpush.msrb.mxu1 %v5445_v38  ;;  %v5759_v38 = vand.u32 4294901760, %v658_v18  ;;  %v5764_v33 = vand.u32 4294901760, %v407_v14  ;;  %8219 = vst [vmem:[#allocation54_spill] sm:$0xff] %v5837_v50  ;;  %v5844_v0 = vand.u32 4294901760, %v5837_v50  ;;  %v394_v18 = vld [vmem:[%s7975_s2 + $0x28] sm:$0xff] }
  0x65   : > { %1460 = vmatpush.msra.mxu0 %v5491_v32  ;;  %1395 = vmatpush.msrb.mxu3 %v1394_v51  ;;  %v5762_v32 = vand.u32 4294901760, %v5750_v63  ;;  %v5846_v51 = vand.u32 4294901760, %v528_v43  ;;  %v531_v25 = vsel %vm523_vm1, %v394_v18, 0 }
  0x66   : > { %1542 = vmatpush.msra.mxu1 %v5466_v54  ;;  %652 = vmatmul.f32.gmra.mxu0 %v5729_v5  ;;  %8203 = vst [vmem:[#allocation38_spill] sm:$0xff] %v5759_v38  ;;  %v404_v5 = vld [vmem:[%s7975_s2 + $0x78] sm:$0xff] }
  0x67   : > { %813 = vmatmul.f32.gmra.mxu1 %v5635_v27  ;;  %1463 = vmatpush.msra.mxu0 %v5579_v48  ;;  %8204 = vst [vmem:[#allocation39_spill] sm:$0xff] %v5762_v32  ;;  %v666_v48 = vsub.f32 %v5750_v63, %v5762_v32  ;;  %v546_v9 = vsel %vm523_vm1, %v404_v5, 0 }
  0x68   : > { %1708 = vmatpush.msra.mxu3 %v5466_v54  ;;  %1544 = vmatpush.msra.mxu1 %v5558_v7  ;;  %8205 = vst [vmem:[#allocation40_spill] sm:$0xff] %v5764_v33  ;;  %v5773_v54 = vsub.f32 %v407_v14, %v5764_v33  ;;  %v1271_v14 = vsub.f32 %v5837_v50, %v5844_v0  ;;  %v5987_v31 = vand.u32 4294901760, %v546_v9 }
  0x69   : > { %1644 = vmatpush.msra.mxu2 %v1392_v16  ;;  %1466 = vmatpush.msra.mxu0 %v1391_v30  ;;  %v690_v30 = vsub.f32 %v5811_v34, %v5820_v23  ;;  %8220 = vst [vmem:[#allocation55_spill] sm:$0xff] %v5844_v0 }
  0x6a   : > { %921 = vmatmul.f32.gmra.mxu2 %v5686_v42  ;;  %1710 = vmatpush.msra.mxu3 %v5558_v7  ;;  %8206 = vst [vmem:[#allocation41_spill] sm:$0xff] %v5773_v54  ;;  %v5779_v7 = vand.u32 4294901760, %v666_v48  ;;  %v5782_v11 = vand.u32 4294901760, %v5773_v54  ;;  %v5855_v48 = vsub.f32 %v528_v43, %v5846_v51  ;;  %v534_v43 = vsel %vm523_vm1, %v396_v60, 0 }
  0x6b   : > { %1546 = vmatpush.msra.mxu1 %v1266_v46  ;;  %v5834_v16 = vand.u32 4294901760, %v690_v30 }
  0x6c   : > { %1021 = vmatmul.f32.gmra.mxu3 %v5699_v58  ;;  %8207 = vst [vmem:[#allocation42_spill] sm:$0xff] %v5779_v7  ;;  %v674_v17 = vsub.f32 %v5773_v54, %v5782_v11  ;;  %v5864_v41 = vand.u32 4294901760, %v5855_v48 }
  0x6d   : > { %1712 = vmatpush.msra.mxu3 %v1266_v46  ;;  %8208 = vst [vmem:[#allocation43_spill] sm:$0xff] %v5782_v11  ;;  %v5817_v46 = vand.u32 4294901760, %v682_v15  ;;  %v5866_v15 = vand.u32 4294901760, %v531_v25 }
  0x6e   : > { %660 = vmatmul.f32.gmra.mxu0 %v5759_v38  ;;  %v5798_v21 = vand.u32 4294901760, %v674_v17  ;;  %8218 = vst [vmem:[#allocation53_spill] sm:$0xff] %v5834_v16  ;;  %v5861_v17 = vand.u32 4294901760, %v1271_v14  ;;  %v1279_v52 = vsub.f32 %v5855_v48, %v5864_v41 }
  0x6f   : > { %817 = vmatmul.f32.gmra.mxu1 %v5669_v29  ;;  %8215 = vst [vmem:[#allocation50_spill] sm:$0xff] %v5817_v46  ;;  %v5875_v30 = vsub.f32 %v531_v25, %v5866_v15  ;;  %v398_v25 = vld [vmem:[%s7975_s2 + $0x48] sm:$0xff] }
  0x70   : > { %8211 = vst [vmem:[#allocation46_spill] sm:$0xff] %v5798_v21  ;;  %v5883_v18 = vand.u32 4294901760, %v1279_v52  ;;  %v537_v52 = vsel %vm523_vm1, %v398_v25, 0 }
  0x71   : > { %8221 = vst [vmem:[#allocation56_spill] sm:$0xff] %v5855_v48  ;;  %v5886_v14 = vand.u32 4294901760, %v5875_v30 }
  0x72   : > { %926 = vmatmul.f32.gmra.mxu2 %v5716_v2  ;;  %8222 = vst [vmem:[#allocation57_spill] sm:$0xff] %v5861_v17 }
  0x73   : > { %8223 = vst [vmem:[#allocation58_spill] sm:$0xff] %v5864_v41  ;;  %v1287_v60 = vsub.f32 %v5875_v30, %v5886_v14 }
  0x74   : > { %1027 = vmatmul.f32.gmra.mxu3 %v5732_v19  ;;  %8224 = vst [vmem:[#allocation59_spill] sm:$0xff] %v5866_v15 }
  0x75   : > { %8225 = vst [vmem:[#allocation60_spill] sm:$0xff] %v5875_v30 }
  0x76   : > { %668 = vmatmul.f32.gmra.mxu0 %v5779_v7  ;;  %8227 = vst [vmem:[#allocation62_spill] sm:$0xff] %v5883_v18 }
  0x77   : > { %821 = vmatmul.f32.gmra.mxu1 %v5701_v49  ;;  %8228 = vst [vmem:[#allocation63_spill] sm:$0xff] %v5886_v14 }
  0x7a   : > { %931 = vmatmul.f32.gmra.mxu2 %v5750_v63 }
  0x7c   : > { %1033 = vmatmul.f32.gmra.mxu3 %v5762_v32 }
  0x7e   : > { %676 = vmatmul.f32.gmra.mxu0 %v5798_v21 }
  0x7f   : > { %825 = vmatmul.f32.gmra.mxu1 %v5734_v20 }
  0x82   : > { %936 = vmatmul.f32.gmra.mxu2 %v5773_v54 }
  0x84   : > { %1039 = vmatmul.f32.gmra.mxu3 %v5782_v11 }
  0x86   : > { %684 = vmatmul.f32.gmra.mxu0 %v5817_v46 }
  0x87   : > { %829 = vmatmul.f32.gmra.mxu1 %v5764_v33 }
  0x8a   : > { %941 = vmatmul.f32.gmra.mxu2 %v5792_v35  ;;  %v5912_v35 = vand.u32 4294901760, %v537_v52 }
  0x8c   : > { %1045 = vmatmul.f32.gmra.mxu3 %v5801_v28  ;;  %v5907_v28 = vand.u32 4294901760, %v1287_v60  ;;  %8235 = vst [vmem:[#allocation70_spill] sm:$0xff] %v5912_v35  ;;  %v5921_v46 = vsub.f32 %v537_v52, %v5912_v35 }
  0x8e   : > { %692 = vmatmul.f32.gmra.mxu0 %v5834_v16  ;;  %8233 = vst [vmem:[#allocation68_spill] sm:$0xff] %v5907_v28 }
  0x8f   : > { %833 = vmatmul.f32.gmra.mxu1 %v5784_v40  ;;  %8236 = vst [vmem:[#allocation71_spill] sm:$0xff] %v5921_v46 }
  0x92   : > { %946 = vmatmul.f32.gmra.mxu2 %v5811_v34 }
  0x94   : > { %1051 = vmatmul.f32.gmra.mxu3 %v5820_v23 }
  0x96   : > { %1120 = vmatmul.f32.vlgmr.msrb.gmra.mxu0 %v5397_v57 }
  0x97   : > { %837 = vmatmul.f32.gmra.mxu1 %v5803_v53 }
  0x9a   : > { %1273 = vmatmul.f32.vlgmr.msrb.gmra.mxu2 %v5861_v17  ;;  %v5888_v17 = vand.u32 4294901760, %v534_v43 }
  0x9b   : > { %v5877_v59 = vpop.permute.xlu2 %500 }
  0x9c   : > { %8226 = vst [vmem:[#allocation61_spill] sm:$0xff] %v5877_v59  ;;  %1397 = vmatmul.f32.vlgmr.msrb.gmra.mxu3 %v5828_v4  ;;  %v5897_v23 = vsub.f32 %v534_v43, %v5888_v17  ;;  %v400_v43 = vld [vmem:[%s7975_s2 + $0x58] sm:$0xff] }
  0x9d   : > { %8229 = vst [vmem:[#allocation64_spill] sm:$0xff] %v5888_v17  ;;  %v540_v60 = vsel %vm523_vm1, %v400_v43, 0  ;;  %v402_v43 = vld [vmem:[%s7975_s2 + $0x68] sm:$0xff] }
  0x9e   : > { %1124 = vmatmul.f32.gmra.mxu0 %v5456_v47  ;;  %8230 = vst [vmem:[#allocation65_spill] sm:$0xff] %v5897_v23  ;;  %v5936_v32 = vand.u32 4294901760, %v540_v60  ;;  %v543_v19 = vsel %vm523_vm1, %v402_v43, 0 }
  0x9f   : > { %1201 = vmatmul.f32.vlgmr.msrb.gmra.mxu1 %v5397_v57  ;;  %v444_v57 = vld [vmem:[%s5277_s22 + $0xf8] sm:$0xff] }
  0xa0   : > { %8241 = vst [vmem:[#allocation76_spill] sm:$0xff] %v5936_v32  ;;  %v5947_v7 = vsub.f32 %v540_v60, %v5936_v32  ;;  %v5962_v60 = vand.u32 4294901760, %v543_v19 }
  0xa2   : > { %1281 = vmatmul.f32.gmra.mxu2 %v5883_v18  ;;  %v5910_v18 = vand.u32 4294901760, %v5897_v23  ;;  %8243 = vst [vmem:[#allocation78_spill] sm:$0xff] %v5947_v7  ;;  %v5960_v58 = vand.u32 4294901760, %v5947_v7 }
  0xa3   : > { %v5899_v34 = vpop.permute.xlu2 %495  ;;  %8248 = vst [vmem:[#allocation83_spill] sm:$0xff] %v5962_v60 }
  0xa4   : > { %8231 = vst [vmem:[#allocation66_spill] sm:$0xff] %v5899_v34  ;;  %1401 = vmatmul.f32.gmra.mxu3 %v5846_v51  ;;  %v1295_v25 = vsub.f32 %v5897_v23, %v5910_v18  ;;  %v1311_v44 = vsub.f32 %v5947_v7, %v5960_v58 }
  0xa5   : > { %8234 = vst [vmem:[#allocation69_spill] sm:$0xff] %v5910_v18 }
  0xa6   : > { %1128 = vmatmul.f32.gmra.mxu0 %v5512_v56  ;;  %v5905_v16 = vpop.permute.xlu1 %510  ;;  %v5931_v21 = vand.u32 4294901760, %v1295_v25  ;;  %8247 = vst [vmem:[#allocation82_spill] sm:$0xff] %v5960_v58 }
  0xa7   : > { %1205 = vmatmul.f32.gmra.mxu1 %v5456_v47  ;;  %8232 = vst [vmem:[#allocation67_spill] sm:$0xff] %v5905_v16 }
  0xa8   : > { %8239 = vst [vmem:[#allocation74_spill] sm:$0xff] %v5931_v21 }
  0xaa   : > { %1289 = vmatmul.f32.gmra.mxu2 %v5907_v28  ;;  %v5934_v28 = vand.u32 4294901760, %v5921_v46 }
  0xab   : > { %v5923_v11 = vpop.permute.xlu2 %480 }
  0xac   : > { %8237 = vst [vmem:[#allocation72_spill] sm:$0xff] %v5923_v11  ;;  %1405 = vmatmul.f32.gmra.mxu3 %v5866_v15  ;;  %v5927_v54 = vpop.permute.xlu0 %520  ;;  %v1303_v63 = vsub.f32 %v5921_v46, %v5934_v28 }
  0xad   : > { %8238 = vst [vmem:[#allocation73_spill] sm:$0xff] %v5927_v54 }
  0xae   : > { %1132 = vmatmul.f32.gmra.mxu0 %v5552_v1  ;;  %8240 = vst [vmem:[#allocation75_spill] sm:$0xff] %v5934_v28 }
  0xaf   : > { %1209 = vmatmul.f32.gmra.mxu1 %v5512_v56  ;;  %v5938_v52 = vpop.permute.xlu1 %505 }
  0xb0   : > { %8242 = vst [vmem:[#allocation77_spill] sm:$0xff] %v5938_v52 }
  0xb2   : > { %1297 = vmatmul.f32.gmra.mxu2 %v5931_v21  ;;  %v5957_v21 = vand.u32 4294901760, %v1303_v63  ;;  %v5974_v63 = vsub.f32 %v543_v19, %v5962_v60 }
  0xb3   : > { %v605_v25 = vpop.f32.mrf.mxu0  ;;  %v5953_v38 = vpop.permute.xlu2 %465 }
  0xb4   : > { %1409 = vmatmul.f32.gmra.mxu3 %v5888_v17  ;;  %v5951_v2 = vpop.permute.xlu0 %515  ;;  %8245 = vst [vmem:[#allocation80_spill] sm:$0xff] %v5953_v38  ;;  %v606_v43 = vadd.f32 %v605_v25, %v5953_v38  ;;  %v5985_v19 = vand.u32 4294901760, %v5974_v63 }
  0xb5   : > { %8244 = vst [vmem:[#allocation79_spill] sm:$0xff] %v5951_v2 }
  0xb6   : > { %1136 = vmatmul.f32.gmra.mxu0 %v5594_v3  ;;  %8246 = vst [vmem:[#allocation81_spill] sm:$0xff] %v5957_v21 }
  0xb7   : > { %1213 = vmatmul.f32.gmra.mxu1 %v5552_v1  ;;  %v5964_v42 = vpop.permute.xlu1 %485  ;;  %8250 = vst [vmem:[#allocation85_spill] sm:$0xff] %v5974_v63 }
  0xb8   : > { %8249 = vst [vmem:[#allocation84_spill] sm:$0xff] %v5964_v42 }
  0xb9   : > { %8253 = vst [vmem:[#allocation88_spill] sm:$0xff] %v5985_v19 }
  0xba   : > { %1305 = vmatmul.f32.gmra.mxu2 %v5957_v21  ;;  %v5982_v21 = vand.u32 4294901760, %v1311_v44  ;;  %v1319_v44 = vsub.f32 %v5974_v63, %v5985_v19 }
  0xbb   : > { %v613_v10 = vpop.f32.mrf.mxu0  ;;  %v794_v61 = vpop.f32.mrf.mxu1 }
  0xbc   : > { %v795_v24 = vadd.f32 %v794_v61, %v606_v43  ;;  %1413 = vmatmul.f32.gmra.mxu3 %v5912_v35  ;;  %v5978_v25 = vpop.permute.xlu0 %490  ;;  %8252 = vst [vmem:[#allocation87_spill] sm:$0xff] %v5982_v21 }
  0xbd   : > { %8251 = vst [vmem:[#allocation86_spill] sm:$0xff] %v5978_v25  ;;  %v892_v38 = vpop.f32.mrf.mxu2 }
  0xbe   : > { %v893_v1 = vadd.f32 %v892_v38, %v795_v24  ;;  %1140 = vmatmul.f32.gmra.mxu0 %v5635_v27  ;;  %v406_v24 = vld [vmem:[%s7975_s2 + $0x88] sm:$0xff]  ;;  %v6001_v38 = vsub.f32 %v546_v9, %v5987_v31 }
  0xbf   : > { %1217 = vmatmul.f32.gmra.mxu1 %v5594_v3  ;;  %v986_v62 = vpop.f32.mrf.mxu3  ;;  %v5989_v5 = vpop.permute.xlu1 %470  ;;  %v549_v56 = vsel %vm523_vm1, %v406_v24, 0 }
  0xc0   : > { %8254 = vst [vmem:[#allocation89_spill] sm:$0xff] %v5989_v5  ;;  %v5991_v61 = vadd.f32 %v986_v62, %v893_v1  ;;  %v614_v43 = vadd.f32 %v613_v10, %v5989_v5  ;;  %v6012_v9 = vand.u32 4294901760, %v6001_v38  ;;  %v6014_v55 = vand.u32 4294901760, %v549_v56 }
  0xc1   : > { %8255 = vst [vmem:[#allocation90_spill] sm:$0xff] %v6001_v38 }
  0xc2   : > { %1313 = vmatmul.f32.gmra.mxu2 %v5982_v21  ;;  %v6009_v21 = vand.u32 4294901760, %v1319_v44  ;;  %8258 = vst [vmem:[#allocation93_spill] sm:$0xff] %v6012_v9  ;;  %v1327_v44 = vsub.f32 %v6001_v38, %v6012_v9 }
  0xc3   : > { %v621_v3 = vpop.f32.mrf.mxu0  ;;  %v798_v36 = vpop.f32.mrf.mxu1 }
  0xc4   : > { %v799_v1 = vadd.f32 %v798_v36, %v614_v43  ;;  %1417 = vmatmul.f32.gmra.mxu3 %v5936_v32  ;;  %v6005_v10 = vpop.permute.xlu0 %475  ;;  %8257 = vst [vmem:[#allocation92_spill] sm:$0xff] %v6009_v21  ;;  %v408_v43 = vld [vmem:[%s7975_s2 + $0x98] sm:$0xff] }
  0xc5   : > { %v897_v62 = vpop.f32.mrf.mxu2  ;;  %8256 = vst [vmem:[#allocation91_spill] sm:$0xff] %v6005_v10  ;;  %v622_v36 = vadd.f32 %v621_v3, %v6005_v10  ;;  %v552_v8 = vsel %vm523_vm1, %v408_v43, 0  ;;  %v6032_v10 = vand.u32 4294901760, %v1327_v44 }
  0xc6   : > { %v898_v5 = vadd.f32 %v897_v62, %v799_v1  ;;  %1144 = vmatmul.f32.gmra.mxu0 %v5669_v29  ;;  %v6026_v1 = vsub.f32 %v549_v56, %v6014_v55  ;;  %v6037_v56 = vand.u32 4294901760, %v552_v8 }
  0xc7   : > { %1221 = vmatmul.f32.gmra.mxu1 %v5635_v27  ;;  %v992_v12 = vpop.f32.mrf.mxu3  ;;  %8260 = vst [vmem:[#allocation95_spill] sm:$0xff] %v6032_v10 }
  0xc8   : > { %v6016_v24 = vadd.f32 %v992_v12, %v898_v5  ;;  %8259 = vst [vmem:[#allocation94_spill] sm:$0xff] %v6026_v1  ;;  %v6049_v44 = vsub.f32 %v552_v8, %v6037_v56 }
  0xca   : > { %1321 = vmatmul.f32.gmra.mxu2 %v6009_v21  ;;  %v6035_v21 = vand.u32 4294901760, %v6026_v1  ;;  %8262 = vst [vmem:[#allocation97_spill] sm:$0xff] %v6049_v44 }
  0xcb   : > { %v629_v62 = vpop.f32.mrf.mxu0  ;;  %v802_v27 = vpop.f32.mrf.mxu1 }
  0xcc   : > { %v803_v12 = vadd.f32 %v802_v27, %v622_v36  ;;  %1421 = vmatmul.f32.gmra.mxu3 %v5962_v60  ;;  %8261 = vst [vmem:[#allocation96_spill] sm:$0xff] %v6035_v21  ;;  %v630_v22 = vadd.f32 %v629_v62, %v5923_v11  ;;  %v410_v27 = vld [vmem:[%s7975_s2 + $0xa8] sm:$0xff]  ;;  %v1335_v36 = vsub.f32 %v6026_v1, %v6035_v21  ;;  %v6058_v11 = vand.u32 4294901760, %v6049_v44 }
  0xcd   : > { %v902_v3 = vpop.f32.mrf.mxu2 }
  0xce   : > { %v903_v5 = vadd.f32 %v902_v3, %v803_v12  ;;  %1148 = vmatmul.f32.gmra.mxu0 %v5701_v49  ;;  %8264 = vst [vmem:[#allocation99_spill] sm:$0xff] %v6058_v11 }
  0xcf   : > { %1225 = vmatmul.f32.gmra.mxu1 %v5669_v29  ;;  %v998_v47 = vpop.f32.mrf.mxu3  ;;  %v555_v29 = vsel %vm523_vm1, %v410_v27, 0 }
  0xd0   : > { %v6040_v43 = vadd.f32 %v998_v47, %v903_v5  ;;  %v6055_v5 = vand.u32 4294901760, %v1335_v36  ;;  %v6060_v8 = vand.u32 4294901760, %v555_v29 }
  0xd2   : > { %1329 = vmatmul.f32.gmra.mxu2 %v6032_v10  ;;  %8263 = vst [vmem:[#allocation98_spill] sm:$0xff] %v6055_v5  ;;  %v6072_v36 = vsub.f32 %v555_v29, %v6060_v8 }
  0xd3   : > { %v637_v12 = vpop.f32.mrf.mxu0  ;;  %v806_v3 = vpop.f32.mrf.mxu1  ;;  %8265 = vst [vmem:[#allocation100_spill] sm:$0xff] %v6060_v8 }
  0xd4   : > { %v807_v26 = vadd.f32 %v806_v3, %v630_v22  ;;  %1425 = vmatmul.f32.gmra.mxu3 %v5987_v31  ;;  %v638_v6 = vadd.f32 %v637_v12, %v5964_v42  ;;  %v1343_v22 = vsub.f32 %v6049_v44, %v6058_v11  ;;  %8266 = vst [vmem:[#allocation101_spill] sm:$0xff] %v6072_v36 }
  0xd5   : > { %v907_v47 = vpop.f32.mrf.mxu2 }
  0xd6   : > { %v908_v62 = vadd.f32 %v907_v47, %v807_v26  ;;  %1152 = vmatmul.f32.gmra.mxu0 %v5734_v20  ;;  %v412_v26 = vld [vmem:[%s7975_s2 + $0xb8] sm:$0xff]  ;;  %v6078_v42 = vand.u32 4294901760, %v1343_v22 }
  0xd7   : > { %1229 = vmatmul.f32.gmra.mxu1 %v5701_v49  ;;  %v1004_v10 = vpop.f32.mrf.mxu3  ;;  %v558_v49 = vsel %vm523_vm1, %v412_v26, 0  ;;  %v6086_v26 = vand.u32 4294901760, %v444_v57 }
  0xd8   : > { %v6063_v27 = vadd.f32 %v1004_v10, %v908_v62  ;;  %8267 = vst [vmem:[#allocation102_spill] sm:$0xff] %v6078_v42  ;;  %v6083_v29 = vand.u32 4294901760, %v558_v49 }
  0xd9   : > { %1763 = vmatpush.msrb.mxu0 %v6086_v26  ;;  %2146 = vmatpush.msrb.mxu3 %v6086_v26 }
  0xda   : > { %1337 = vmatmul.f32.gmra.mxu2 %v6055_v5  ;;  %v6081_v5 = vand.u32 4294901760, %v6072_v36 }
  0xdb   : > { %v645_v3 = vpop.f32.mrf.mxu0  ;;  %v810_v47 = vpop.f32.mrf.mxu1 }
  0xdc   : > { %v811_v12 = vadd.f32 %v810_v47, %v638_v6  ;;  %1429 = vmatmul.f32.gmra.mxu3 %v6014_v55  ;;  %8268 = vst [vmem:[#allocation103_spill] sm:$0xff] %v6081_v5  ;;  %v646_v6 = vadd.f32 %v645_v3, %v5978_v25  ;;  %v1351_v22 = vsub.f32 %v6072_v36, %v6081_v5  ;;  %v442_v3 = vld [vmem:[%s5277_s22 + $0xe8] sm:$0xff] }
  0xdd   : > { %v912_v10 = vpop.f32.mrf.mxu2 }
  0xde   : > { %v913_v62 = vadd.f32 %v912_v10, %v811_v12  ;;  %1156 = vmatmul.f32.gmra.mxu0 %v5764_v33  ;;  %v6092_v12 = vsub.f32 %v444_v57, %v6086_v26  ;;  %v6100_v10 = vsub.f32 %v558_v49, %v6083_v29  ;;  %v6113_v13 = vand.u32 4294901760, %v1351_v22 }
  0xdf   : > { %1233 = vmatmul.f32.gmra.mxu1 %v5734_v20  ;;  %v1010_v37 = vpop.f32.mrf.mxu3 }
  0xe0   : > { %v6089_v47 = vadd.f32 %v1010_v37, %v913_v62  ;;  %8269 = vst [vmem:[#allocation104_spill] sm:$0xff] %v6100_v10  ;;  %2038 = vmatpush.msrb.mxu2 %v6092_v12  ;;  %v8066_v37 = vand.u32 4294901760, %v6092_v12 }
  0xe1   : > { %8270 = vst [vmem:[#allocation105_spill] sm:$0xff] %v6113_v13 }
  0xe2   : > { %1345 = vmatmul.f32.gmra.mxu2 %v6078_v42  ;;  %v1894_v25 = vsub.f32 %v6092_v12, %v8066_v37  ;;  %v6109_v42 = vand.u32 4294901760, %v442_v3  ;;  %v440_v37 = vld [vmem:[%s5277_s22 + $0xd8] sm:$0xff] }
  0xe3   : > { %v653_v20 = vpop.f32.mrf.mxu0 }
  0xe4   : > { %v814_v45 = vpop.f32.mrf.mxu1  ;;  %1433 = vmatmul.f32.gmra.mxu3 %v6037_v56  ;;  %v1895_v39 = vand.u32 4294901760, %v1894_v25  ;;  %v6119_v5 = vsub.f32 %v442_v3, %v6109_v42  ;;  %1765 = vmatpush.msrb.mxu0 %v6109_v42 }
  0xe5   : > { %v815_v57 = vadd.f32 %v814_v45, %v646_v6  ;;  %v917_v62 = vpop.f32.mrf.mxu2  ;;  %v6116_v45 = vand.u32 4294901760, %v6100_v10  ;;  %2148 = vmatpush.msrb.mxu3 %v6109_v42 }
  0xe6   : > { %1160 = vmatmul.f32.gmra.mxu0 %v5784_v40  ;;  %1896 = vmatpush.msrb.mxu1 %v1895_v39  ;;  %v8073_v22 = vand.u32 4294901760, %v6119_v5 }
  0xe7   : > { %v918_v49 = vadd.f32 %v917_v62, %v815_v57  ;;  %1237 = vmatmul.f32.gmra.mxu1 %v5764_v33  ;;  %8271 = vst [vmem:[#allocation106_spill] sm:$0xff] %v6116_v45  ;;  %v1016_v6 = vpop.f32.mrf.mxu3  ;;  %v654_v57 = vadd.f32 %v653_v20, %v5899_v34  ;;  %2041 = vmatpush.msrb.mxu2 %v6119_v5  ;;  %v6129_v33 = vand.u32 4294901760, %v440_v37 }
  0xe8   : > { %v1359_v25 = vsub.f32 %v6100_v10, %v6116_v45  ;;  %v1900_v20 = vsub.f32 %v6119_v5, %v8073_v22 }
  0xe9   : > { %v6124_v62 = vadd.f32 %v1016_v6, %v918_v49  ;;  %v6138_v49 = vsub.f32 %v440_v37, %v6129_v33  ;;  %1767 = vmatpush.msrb.mxu0 %v6129_v33  ;;  %2150 = vmatpush.msrb.mxu3 %v6129_v33 }
  0xea   : > { %1353 = vmatmul.f32.gmra.mxu2 %v6113_v13  ;;  %v1901_v34 = vand.u32 4294901760, %v1900_v20  ;;  %v6146_v22 = vand.u32 4294901760, %v1359_v25  ;;  %v438_v20 = vld [vmem:[%s5277_s22 + $0xc8] sm:$0xff] }
  0xeb   : > { %v661_v3 = vpop.f32.mrf.mxu0  ;;  %2044 = vmatpush.msrb.mxu2 %v6138_v49  ;;  %v8082_v37 = vand.u32 4294901760, %v6138_v49 }
  0xec   : > { %v818_v11 = vpop.f32.mrf.mxu1  ;;  %1437 = vmatmul.f32.gmra.mxu3 %v6060_v8  ;;  %8272 = vst [vmem:[#allocation107_spill] sm:$0xff] %v6146_v22  ;;  %1902 = vmatpush.msrb.mxu1 %v1901_v34  ;;  %v662_v10 = vadd.f32 %v661_v3, %v5877_v59 }
  0xed   : > { %v819_v39 = vadd.f32 %v818_v11, %v654_v57  ;;  %v922_v6 = vpop.f32.mrf.mxu2  ;;  %v1906_v57 = vsub.f32 %v6138_v49, %v8082_v37 }
  0xee   : > { %1164 = vmatmul.f32.gmra.mxu0 %v5803_v53 }
  0xef   : > { %v923_v13 = vadd.f32 %v922_v6, %v819_v39  ;;  %1241 = vmatmul.f32.gmra.mxu1 %v5784_v40  ;;  %v1022_v45 = vpop.f32.mrf.mxu3  ;;  %v6156_v39 = vand.u32 4294901760, %v438_v20  ;;  %v1907_v25 = vand.u32 4294901760, %v1906_v57  ;;  %v436_v57 = vld [vmem:[%s5277_s22 + $0xb8] sm:$0xff] }
  0xf1   : > { %v6150_v11 = vadd.f32 %v1022_v45, %v923_v13  ;;  %v6160_v8 = vsub.f32 %v438_v20, %v6156_v39  ;;  %1769 = vmatpush.msrb.mxu0 %v6156_v39  ;;  %2152 = vmatpush.msrb.mxu3 %v6156_v39 }
  0xf2   : > { %1361 = vmatmul.f32.gmra.mxu2 %v6146_v22  ;;  %1908 = vmatpush.msrb.mxu1 %v1907_v25 }
  0xf3   : > { %v669_v6 = vpop.f32.mrf.mxu0  ;;  %2047 = vmatpush.msrb.mxu2 %v6160_v8  ;;  %v8085_v45 = vand.u32 4294901760, %v6160_v8 }
  0xf4   : > { %v822_v40 = vpop.f32.mrf.mxu1  ;;  %1441 = vmatmul.f32.gmra.mxu3 %v6083_v29 }
  0xf5   : > { %v823_v13 = vadd.f32 %v822_v40, %v662_v10  ;;  %v927_v34 = vpop.f32.mrf.mxu2  ;;  %v1912_v37 = vsub.f32 %v6160_v8, %v8085_v45  ;;  %v6173_v40 = vand.u32 4294901760, %v436_v57  ;;  %v670_v10 = vadd.f32 %v669_v6, %v5938_v52 }
  0xf6   : > { %1469 = vmatmul.f32.vlgmr.msra.gmra.mxu0 %v5837_v50 }
  0xf7   : > { %v928_v3 = vadd.f32 %v927_v34, %v823_v13  ;;  %1245 = vmatmul.f32.gmra.mxu1 %v5803_v53  ;;  %v1028_v20 = vpop.f32.mrf.mxu3  ;;  %v1913_v59 = vand.u32 4294901760, %v1912_v37  ;;  %v6179_v13 = vsub.f32 %v436_v57, %v6173_v40  ;;  %1771 = vmatpush.msrb.mxu0 %v6173_v40  ;;  %v434_v37 = vld [vmem:[%s5277_s22 + $0xa8] sm:$0xff] }
  0xf8   : > { %2154 = vmatpush.msrb.mxu3 %v6173_v40 }
  0xf9   : > { %v6176_v25 = vadd.f32 %v1028_v20, %v928_v3  ;;  %1914 = vmatpush.msrb.mxu1 %v1913_v59  ;;  %2050 = vmatpush.msrb.mxu2 %v6179_v13  ;;  %v8090_v45 = vand.u32 4294901760, %v6179_v13  ;;  %v6191_v20 = vand.u32 4294901760, %v434_v37 }
  0xfa   : > { %1646 = vmatmul.f32.vlgmr.msra.gmra.mxu2 %v5828_v4 }
  0xfb   : > { %v677_v34 = vpop.f32.mrf.mxu0  ;;  %v1918_v57 = vsub.f32 %v6179_v13, %v8090_v45  ;;  %1773 = vmatpush.msrb.mxu0 %v6191_v20  ;;  %2156 = vmatpush.msrb.mxu3 %v6191_v20  ;;  %v432_v45 = vld [vmem:[%s5277_s22 + $0x98] sm:$0xff] }
  0xfc   : > { %v826_v50 = vpop.f32.mrf.mxu1  ;;  %1714 = vmatmul.f32.vlgmr.msra.gmra.mxu3 %v5828_v4 }
  0xfd   : > { %v827_v6 = vadd.f32 %v826_v50, %v670_v10  ;;  %v932_v3 = vpop.f32.mrf.mxu2  ;;  %v1919_v22 = vand.u32 4294901760, %v1918_v57  ;;  %v6196_v50 = vsub.f32 %v434_v37, %v6191_v20  ;;  %v678_v10 = vadd.f32 %v677_v34, %v5905_v16 }
  0xfe   : > { %1474 = vmatmul.f32.gmra.mxu0 %v5855_v48 }
  0xff   : > { %v933_v52 = vadd.f32 %v932_v3, %v827_v6  ;;  %1550 = vmatmul.f32.vlgmr.msra.gmra.mxu1 %v5844_v0  ;;  %v1034_v59 = vpop.f32.mrf.mxu3  ;;  %2053 = vmatpush.msrb.mxu2 %v6196_v50  ;;  %v8093_v6 = vand.u32 4294901760, %v6196_v50  ;;  %v6206_v3 = vand.u32 4294901760, %v432_v45 }
 0x100   : > { %1920 = vmatpush.msrb.mxu1 %v1919_v22 }
 0x101   : > { %v6201_v4 = vadd.f32 %v1034_v59, %v933_v52  ;;  %v1924_v0 = vsub.f32 %v6196_v50, %v8093_v6  ;;  %v6213_v34 = vsub.f32 %v432_v45, %v6206_v3  ;;  %1775 = vmatpush.msrb.mxu0 %v6206_v3  ;;  %2158 = vmatpush.msrb.mxu3 %v6206_v3 }
 0x102   : > { %1650 = vmatmul.f32.gmra.mxu2 %v5846_v51 }
 0x103   : > { %v685_v37 = vpop.f32.mrf.mxu0  ;;  %v1925_v59 = vand.u32 4294901760, %v1924_v0  ;;  %2056 = vmatpush.msrb.mxu2 %v6213_v34  ;;  %v8099_v45 = vand.u32 4294901760, %v6213_v34  ;;  %v430_v0 = vld [vmem:[%s5277_s22 + $0x88] sm:$0xff] }
 0x104   : > { %v830_v57 = vpop.f32.mrf.mxu1  ;;  %1718 = vmatmul.f32.gmra.mxu3 %v5846_v51  ;;  %v686_v48 = vadd.f32 %v685_v37, %v5951_v2 }
 0x105   : > { %v831_v52 = vadd.f32 %v830_v57, %v678_v10  ;;  %v937_v22 = vpop.f32.mrf.mxu2  ;;  %1926 = vmatpush.msrb.mxu1 %v1925_v59  ;;  %v1930_v10 = vsub.f32 %v6213_v34, %v8099_v45  ;;  %v6229_v57 = vand.u32 4294901760, %v430_v0 }
 0x106   : > { %1479 = vmatmul.f32.gmra.mxu0 %v5875_v30 }
 0x107   : > { %v938_v16 = vadd.f32 %v937_v22, %v831_v52  ;;  %1556 = vmatmul.f32.gmra.mxu1 %v5864_v41  ;;  %v1040_v6 = vpop.f32.mrf.mxu3  ;;  %v1931_v52 = vand.u32 4294901760, %v1930_v10  ;;  %v6233_v30 = vsub.f32 %v430_v0, %v6229_v57  ;;  %1777 = vmatpush.msrb.mxu0 %v6229_v57  ;;  %v428_v10 = vld [vmem:[%s5277_s22 + $0x78] sm:$0xff] }
 0x108   : > { %2160 = vmatpush.msrb.mxu3 %v6229_v57 }
 0x109   : > { %v6223_v53 = vadd.f32 %v1040_v6, %v938_v16  ;;  %1932 = vmatpush.msrb.mxu1 %v1931_v52  ;;  %2059 = vmatpush.msrb.mxu2 %v6233_v30  ;;  %v8102_v37 = vand.u32 4294901760, %v6233_v30 }
 0x10a   : > { %1654 = vmatmul.f32.gmra.mxu2 %v5866_v15 }
 0x10b   : > { %v693_v22 = vpop.f32.mrf.mxu0  ;;  %v1936_v45 = vsub.f32 %v6233_v30, %v8102_v37 }
 0x10c   : > { %v834_v41 = vpop.f32.mrf.mxu1  ;;  %1722 = vmatmul.f32.gmra.mxu3 %v5866_v15 }
 0x10d   : > { %v835_v16 = vadd.f32 %v834_v41, %v686_v48  ;;  %v942_v6 = vpop.f32.mrf.mxu2  ;;  %v6246_v48 = vand.u32 4294901760, %v428_v10  ;;  %v694_v41 = vadd.f32 %v693_v22, %v5927_v54  ;;  %v1937_v2 = vand.u32 4294901760, %v1936_v45  ;;  %v426_v45 = vld [vmem:[%s5277_s22 + $0x68] sm:$0xff] }
 0x10e   : > { %1484 = vmatmul.f32.gmra.mxu0 %v5897_v23 }
 0x10f   : > { %v943_v59 = vadd.f32 %v942_v6, %v835_v16  ;;  %1562 = vmatmul.f32.gmra.mxu1 %v5886_v14  ;;  %v1046_v0 = vpop.f32.mrf.mxu3  ;;  %v6252_v16 = vsub.f32 %v428_v10, %v6246_v48  ;;  %1779 = vmatpush.msrb.mxu0 %v6246_v48 }
 0x110   : > { %2162 = vmatpush.msrb.mxu3 %v6246_v48  ;;  %1938 = vmatpush.msrb.mxu1 %v1937_v2 }
 0x111   : > { %v6249_v52 = vadd.f32 %v1046_v0, %v943_v59  ;;  %2062 = vmatpush.msrb.mxu2 %v6252_v16  ;;  %v8107_v37 = vand.u32 4294901760, %v6252_v16  ;;  %v6264_v0 = vand.u32 4294901760, %v426_v45 }
 0x112   : > { %1658 = vmatmul.f32.gmra.mxu2 %v5888_v17 }
 0x113   : > { %v1121_v14 = vpop.f32.mrf.mxu0  ;;  %v1942_v10 = vsub.f32 %v6252_v16, %v8107_v37  ;;  %v6269_v15 = vsub.f32 %v426_v45, %v6264_v0  ;;  %1781 = vmatpush.msrb.mxu0 %v6264_v0  ;;  %2164 = vmatpush.msrb.mxu3 %v6264_v0 }
 0x114   : > { %v838_v6 = vpop.f32.mrf.mxu1  ;;  %1726 = vmatmul.f32.gmra.mxu3 %v5888_v17  ;;  %v1122_v37 = vadd.f32 %v1121_v14, %v5991_v61 }
 0x115   : > { %v839_v22 = vadd.f32 %v838_v6, %v694_v41  ;;  %v947_v59 = vpop.f32.mrf.mxu2  ;;  %v1943_v23 = vand.u32 4294901760, %v1942_v10  ;;  %v424_v6 = vld [vmem:[%s5277_s22 + $0x58] sm:$0xff]  ;;  %2065 = vmatpush.msrb.mxu2 %v6269_v15 }
 0x116   : > { %1489 = vmatmul.f32.gmra.mxu0 %v5921_v46 }
 0x117   : > { %v948_v54 = vadd.f32 %v947_v59, %v839_v22  ;;  %1568 = vmatmul.f32.gmra.mxu1 %v5910_v18  ;;  %v1052_v2 = vpop.f32.mrf.mxu3  ;;  %v8109_v22 = vand.u32 4294901760, %v6269_v15  ;;  %v6278_v59 = vand.u32 4294901760, %v424_v6 }
 0x118   : > { %1944 = vmatpush.msrb.mxu1 %v1943_v23 }
 0x119   : > { %v6273_v41 = vadd.f32 %v1052_v2, %v948_v54  ;;  %v1948_v18 = vsub.f32 %v6269_v15, %v8109_v22  ;;  %v6286_v54 = vsub.f32 %v424_v6, %v6278_v59  ;;  %1783 = vmatpush.msrb.mxu0 %v6278_v59  ;;  %2166 = vmatpush.msrb.mxu3 %v6278_v59 }
 0x11a   : > { %1662 = vmatmul.f32.gmra.mxu2 %v5912_v35 }
 0x11b   : > { %v1125_v45 = vpop.f32.mrf.mxu0  ;;  %v1949_v61 = vand.u32 4294901760, %v1948_v18  ;;  %2068 = vmatpush.msrb.mxu2 %v6286_v54  ;;  %v8115_v6 = vand.u32 4294901760, %v6286_v54 }
 0x11c   : > { %v1202_v10 = vpop.f32.mrf.mxu1  ;;  %1730 = vmatmul.f32.gmra.mxu3 %v5912_v35  ;;  %v1126_v18 = vadd.f32 %v1125_v45, %v6016_v24 }
 0x11d   : > { %v1203_v23 = vadd.f32 %v1202_v10, %v1122_v37  ;;  %v1274_v14 = vpop.f32.mrf.mxu2  ;;  %1950 = vmatpush.msrb.mxu1 %v1949_v61  ;;  %v1954_v37 = vsub.f32 %v6286_v54, %v8115_v6  ;;  %v422_v10 = vld [vmem:[%s5277_s22 + $0x48] sm:$0xff] }
 0x11e   : > { %1494 = vmatmul.f32.gmra.mxu0 %v5947_v7  ;;  %v6301_v35 = vand.u32 4294901760, %v422_v10 }
 0x11f   : > { %v1275_v2 = vadd.f32 %v1274_v14, %v1203_v23  ;;  %1574 = vmatmul.f32.gmra.mxu1 %v5934_v28  ;;  %v1398_v22 = vpop.f32.mrf.mxu3  ;;  %v1955_v23 = vand.u32 4294901760, %v1954_v37 }
 0x120   : > { %v6306_v7 = vsub.f32 %v422_v10, %v6301_v35  ;;  %1785 = vmatpush.msrb.mxu0 %v6301_v35  ;;  %2168 = vmatpush.msrb.mxu3 %v6301_v35 }
 0x121   : > { %v6295_v46 = vadd.f32 %v1398_v22, %v1275_v2  ;;  %1956 = vmatpush.msrb.mxu1 %v1955_v23  ;;  %v420_v2 = vld [vmem:[%s5277_s22 + $0x38] sm:$0xff] }
 0x122   : > { %1666 = vmatmul.f32.gmra.mxu2 %v5936_v32  ;;  %v8117_v24 = vand.u32 4294901760, %v6306_v7 }
 0x123   : > { %v1129_v14 = vpop.f32.mrf.mxu0  ;;  %2071 = vmatpush.msrb.mxu2 %v6306_v7 }
 0x124   : > { %v1206_v28 = vpop.f32.mrf.mxu1  ;;  %1734 = vmatmul.f32.gmra.mxu3 %v5936_v32  ;;  %v1960_v10 = vsub.f32 %v6306_v7, %v8117_v24 }
 0x125   : > { %v1207_v22 = vadd.f32 %v1206_v28, %v1126_v18  ;;  %v1282_v61 = vpop.f32.mrf.mxu2  ;;  %v6319_v28 = vand.u32 4294901760, %v420_v2 }
 0x126   : > { %1499 = vmatmul.f32.gmra.mxu0 %v5974_v63  ;;  %v1961_v23 = vand.u32 4294901760, %v1960_v10 }
 0x127   : > { %v1283_v45 = vadd.f32 %v1282_v61, %v1207_v22  ;;  %1580 = vmatmul.f32.gmra.mxu1 %v5960_v58  ;;  %v1402_v37 = vpop.f32.mrf.mxu3  ;;  %v6324_v6 = vsub.f32 %v420_v2, %v6319_v28  ;;  %1787 = vmatpush.msrb.mxu0 %v6319_v28  ;;  %v1130_v22 = vadd.f32 %v1129_v14, %v6040_v43  ;;  %v418_v2 = vld [vmem:[%s5277_s22 + $0x28] sm:$0xff] }
 0x128   : > { %2170 = vmatpush.msrb.mxu3 %v6319_v28  ;;  %1962 = vmatpush.msrb.mxu1 %v1961_v23  ;;  %v6337_v43 = vand.u32 4294901760, %v418_v2 }
 0x129   : > { %v6321_v18 = vadd.f32 %v1402_v37, %v1283_v45  ;;  %2074 = vmatpush.msrb.mxu2 %v6324_v6  ;;  %v8119_v45 = vand.u32 4294901760, %v6324_v6 }
 0x12a   : > { %1670 = vmatmul.f32.gmra.mxu2 %v5962_v60  ;;  %1789 = vmatpush.msrb.mxu0 %v6337_v43 }
 0x12b   : > { %v1133_v61 = vpop.f32.mrf.mxu0  ;;  %v1966_v24 = vsub.f32 %v6324_v6, %v8119_v45  ;;  %2172 = vmatpush.msrb.mxu3 %v6337_v43  ;;  %v416_v45 = vld [vmem:[%s5277_s22 + $0x18] sm:$0xff] }
 0x12c   : > { %v1210_v58 = vpop.f32.mrf.mxu1  ;;  %1738 = vmatmul.f32.gmra.mxu3 %v5962_v60 }
 0x12d   : > { %v1211_v37 = vadd.f32 %v1210_v58, %v1130_v22  ;;  %v1290_v10 = vpop.f32.mrf.mxu2  ;;  %v1967_v63 = vand.u32 4294901760, %v1966_v24  ;;  %v6342_v58 = vsub.f32 %v418_v2, %v6337_v43  ;;  %v414_v24 = vld [vmem:[%s5277_s22 + $0x8] sm:$0xff] }
 0x12e   : > { %1504 = vmatmul.f32.gmra.mxu0 %v6001_v38 }
 0x12f   : > { %v1291_v14 = vadd.f32 %v1290_v10, %v1211_v37  ;;  %1586 = vmatmul.f32.gmra.mxu1 %v5985_v19  ;;  %v1406_v23 = vpop.f32.mrf.mxu3  ;;  %2077 = vmatpush.msrb.mxu2 %v6342_v58  ;;  %v8124_v37 = vand.u32 4294901760, %v6342_v58  ;;  %v6351_v10 = vand.u32 4294901760, %v416_v45  ;;  %v1134_v19 = vadd.f32 %v1133_v61, %v6063_v27 }
 0x130   : > { %1968 = vmatpush.msrb.mxu1 %v1967_v63  ;;  %v6364_v63 = vand.u32 4294901760, %v414_v24 }
 0x131   : > { %v6346_v22 = vadd.f32 %v1406_v23, %v1291_v14  ;;  %v1972_v14 = vsub.f32 %v6342_v58, %v8124_v37  ;;  %v6360_v23 = vsub.f32 %v416_v45, %v6351_v10  ;;  %1791 = vmatpush.msrb.mxu0 %v6351_v10  ;;  %2174 = vmatpush.msrb.mxu3 %v6351_v10 }
 0x132   : > { %1674 = vmatmul.f32.gmra.mxu2 %v5987_v31  ;;  %v6371_v45 = vsub.f32 %v414_v24, %v6364_v63 }
 0x133   : > { %v1137_v2 = vpop.f32.mrf.mxu0  ;;  %v1973_v61 = vand.u32 4294901760, %v1972_v14  ;;  %2080 = vmatpush.msrb.mxu2 %v6360_v23  ;;  %1793 = vmatpush.msrb.mxu0 %v6364_v63  ;;  %v8129_v37 = vand.u32 4294901760, %v6360_v23 }
 0x134   : > { %v1214_v38 = vpop.f32.mrf.mxu1  ;;  %1742 = vmatmul.f32.gmra.mxu3 %v5987_v31 }
 0x135   : > { %v1215_v60 = vadd.f32 %v1214_v38, %v1134_v19  ;;  %v1298_v27 = vpop.f32.mrf.mxu2  ;;  %1974 = vmatpush.msrb.mxu1 %v1973_v61  ;;  %v1978_v19 = vsub.f32 %v6360_v23, %v8129_v37  ;;  %2083 = vmatpush.msrb.mxu2 %v6371_v45  ;;  %v1983_v38 = vand.u32 4294901760, %v6371_v45  ;;  %v1138_v61 = vadd.f32 %v1137_v2, %v6089_v47  ;;  %v450_v47 = vld [vmem:[%s5277_s22 + $0x128] sm:$0x3f] }
 0x136   : > { %1509 = vmatmul.f32.gmra.mxu0 %v6026_v1  ;;  %2176 = vmatpush.msrb.mxu3 %v6364_v63  ;;  %v8274_v37 = vand.u32 4294901760, %v6119_v5  ;;  %v8276_v2 = vand.u32 4294901760, %v6160_v8 }
 0x137   : > { %v1299_v32 = vadd.f32 %v1298_v27, %v1215_v60  ;;  %1592 = vmatmul.f32.gmra.mxu1 %v6012_v9  ;;  %v1410_v17 = vpop.f32.mrf.mxu3  ;;  %v8273_v60 = vand.u32 4294901760, %v6092_v12  ;;  %v1979_v24 = vand.u32 4294901760, %v1978_v19  ;;  %v1984_v27 = vsub.f32 %v6371_v45, %v1983_v38  ;;  %v8297_v45 = vld [vmem:[#allocation5_spill] sm:$0xff] }
 0x138   : > { %v8275_v12 = vand.u32 4294901760, %v6138_v49 }
 0x139   : > { %v6380_v14 = vadd.f32 %v1410_v17, %v1299_v32  ;;  %2253 = vmatpush.msra.mxu0 %v8273_v60  ;;  %1980 = vmatpush.msrb.mxu1 %v1979_v24  ;;  %v1985_v9 = vand.u32 4294901760, %v1984_v27 }
 0x13a   : > { %1678 = vmatmul.f32.gmra.mxu2 %v6014_v55 }
 0x13b   : > { %2257 = vmatpush.msra.mxu0 %v8274_v37  ;;  %v1141_v32 = vpop.f32.mrf.mxu0  ;;  %1986 = vmatpush.msrb.mxu1 %v1985_v9  ;;  %v565_v37 = vsel %vm560_vm0, %v450_v47, 0  ;;  %v8277_v9 = vand.u32 4294901760, %v6179_v13  ;;  %v8278_v13 = vand.u32 4294901760, %v6196_v50 }
 0x13c   : > { %v1218_v17 = vpop.f32.mrf.mxu1  ;;  %1746 = vmatmul.f32.gmra.mxu3 %v6014_v55  ;;  %v6404_v49 = vand.u32 4294901760, %v565_v37 }
 0x13d   : > { %v1219_v1 = vadd.f32 %v1218_v17, %v1138_v61  ;;  %2261 = vmatpush.msra.mxu0 %v8275_v12  ;;  %v1306_v19 = vpop.f32.mrf.mxu2  ;;  %2364 = vmatpush.msra.mxu1 %v6086_v26  ;;  %v8279_v17 = vld [vmem:[#allocation99_spill] sm:$0xff] }
 0x13e   : > { %1514 = vmatmul.f32.gmra.mxu0 %v6049_v44  ;;  %v6412_v27 = vsub.f32 %v565_v37, %v6404_v49  ;;  %2458 = vmatpush.msra.mxu2 %v6404_v49 }
 0x13f   : > { %v1307_v60 = vadd.f32 %v1306_v19, %v1219_v1  ;;  %1598 = vmatmul.f32.gmra.mxu1 %v6035_v21  ;;  %v1414_v5 = vpop.f32.mrf.mxu3  ;;  %2265 = vmatpush.msra.mxu0 %v8276_v2  ;;  %v1142_v1 = vadd.f32 %v1141_v32, %v6124_v62  ;;  %v8280_v19 = vand.u32 4294901760, %v6213_v34 }
 0x140   : > { %2366 = vmatpush.msra.mxu1 %v6109_v42  ;;  %v2575_v42 = vand.u32 4294901760, %v6412_v27 }
 0x141   : > { %v6402_v24 = vadd.f32 %v1414_v5, %v1307_v60  ;;  %2269 = vmatpush.msra.mxu0 %v8277_v9  ;;  %v8282_v5 = vld [vmem:[#allocation100_spill] sm:$0xff] }
 0x142   : > { %1682 = vmatmul.f32.gmra.mxu2 %v6037_v56  ;;  %2368 = vmatpush.msra.mxu1 %v6129_v33  ;;  %v2576_v33 = vsub.f32 %v6412_v27, %v2575_v42 }
 0x143   : > { %v1145_v26 = vpop.f32.mrf.mxu0  ;;  %2273 = vmatpush.msra.mxu0 %v8278_v13 }
 0x144   : > { %v1222_v61 = vpop.f32.mrf.mxu1  ;;  %1750 = vmatmul.f32.gmra.mxu3 %v6037_v56  ;;  %2370 = vmatpush.msra.mxu1 %v6156_v39  ;;  %v2577_v60 = vand.u32 4294901760, %v2576_v33  ;;  %v8281_v39 = vand.u32 4294901760, %v6233_v30  ;;  %v1146_v47 = vadd.f32 %v1145_v26, %v6150_v11  ;;  %v8284_v30 = vand.u32 4294901760, %v6269_v15 }
 0x145   : > { %v1223_v8 = vadd.f32 %v1222_v61, %v1142_v1  ;;  %v1314_v62 = vpop.f32.mrf.mxu2  ;;  %2277 = vmatpush.msra.mxu0 %v8280_v19  ;;  %v8286_v1 = vld [vmem:[#allocation103_spill] sm:$0xff] }
 0x146   : > { %1519 = vmatmul.f32.gmra.mxu0 %v6072_v36  ;;  %2372 = vmatpush.msra.mxu1 %v6173_v40  ;;  %v8283_v40 = vand.u32 4294901760, %v6252_v16 }
 0x147   : > { %v1315_v32 = vadd.f32 %v1314_v62, %v1223_v8  ;;  %1604 = vmatmul.f32.gmra.mxu1 %v8279_v17  ;;  %v1418_v12 = vpop.f32.mrf.mxu3  ;;  %2281 = vmatpush.msra.mxu0 %v8281_v39  ;;  %v8292_v62 = vld [vmem:[#allocation10_spill] sm:$0xff] }
 0x148   : > { %2374 = vmatpush.msra.mxu1 %v6191_v20  ;;  %2578 = vmatpush.msra.mxu3 %v2577_v60  ;;  %v8285_v20 = vld [vmem:[#allocation104_spill] sm:$0xff]  ;;  %v8296_v60 = vld [vmem:[#allocation14_spill] sm:$0xff] }
 0x149   : > { %v6429_v50 = vadd.f32 %v1418_v12, %v1315_v32  ;;  %2285 = vmatpush.msra.mxu0 %v8283_v40 }
 0x14a   : > { %1686 = vmatmul.f32.gmra.mxu2 %v8282_v5  ;;  %2376 = vmatpush.msra.mxu1 %v6206_v3  ;;  %v8287_v3 = vand.u32 4294901760, %v6286_v54 }
 0x14b   : > { %v1149_v37 = vpop.f32.mrf.mxu0  ;;  %2289 = vmatpush.msra.mxu0 %v8284_v30 }
 0x14c   : > { %v1226_v2 = vpop.f32.mrf.mxu1  ;;  %1754 = vmatmul.f32.gmra.mxu3 %v8282_v5  ;;  %2378 = vmatpush.msra.mxu1 %v6229_v57  ;;  %v8288_v57 = vand.u32 4294901760, %v6306_v7  ;;  %v1150_v15 = vadd.f32 %v1149_v37, %v6176_v25  ;;  %v8290_v7 = vand.u32 4294901760, %v6342_v58  ;;  %v8291_v25 = vld [vmem:[#allocation106_spill] sm:$0xff] }
 0x14d   : > { %v1227_v34 = vadd.f32 %v1226_v2, %v1146_v47  ;;  %v1322_v9 = vpop.f32.mrf.mxu2  ;;  %2293 = vmatpush.msra.mxu0 %v8287_v3  ;;  %v8294_v58 = vld [vmem:[#allocation6_spill] sm:$0xff]  ;;  %v8301_v3 = vld [vmem:[#allocation8_spill] sm:$0xff] }
 0x14e   : > { %1524 = vmatmul.f32.gmra.mxu0 %v8285_v20  ;;  %2380 = vmatpush.msra.mxu1 %v6246_v48  ;;  %v8289_v48 = vand.u32 4294901760, %v6324_v6 }
 0x14f   : > { %v1323_v11 = vadd.f32 %v1322_v9, %v1227_v34  ;;  %1610 = vmatmul.f32.gmra.mxu1 %v8286_v1  ;;  %v1422_v26 = vpop.f32.mrf.mxu3  ;;  %2297 = vmatpush.msra.mxu0 %v8288_v57  ;;  %v8299_v34 = vld [vmem:[#allocation11_spill] sm:$0xff] }
 0x150   : > { %2382 = vmatpush.msra.mxu1 %v6264_v0 }
 0x151   : > { %v6448_v16 = vadd.f32 %v1422_v26, %v1323_v11  ;;  %2301 = vmatpush.msra.mxu0 %v8289_v48  ;;  %v8300_v26 = vld [vmem:[#allocation18_spill] sm:$0xff]  ;;  %v8302_v48 = vld [vmem:[#allocation13_spill] sm:$0xff] }
 0x152   : > { %1690 = vmatmul.f32.gmra.mxu2 %v6083_v29  ;;  %2384 = vmatpush.msra.mxu1 %v6278_v59  ;;  %v8293_v59 = vand.u32 4294901760, %v6360_v23  ;;  %v8295_v23 = vld [vmem:[#allocation7_spill] sm:$0xff] }
 0x153   : > { %v1153_v61 = vpop.f32.mrf.mxu0  ;;  %2305 = vmatpush.msra.mxu0 %v8290_v7 }
 0x154   : > { %v1230_v8 = vpop.f32.mrf.mxu1  ;;  %1758 = vmatmul.f32.gmra.mxu3 %v6083_v29  ;;  %2386 = vmatpush.msra.mxu1 %v6301_v35  ;;  %v1154_v35 = vadd.f32 %v1153_v61, %v6201_v4  ;;  %v448_v4 = vld [vmem:[%s5277_s22 + $0x118] sm:$0xff] }
 0x155   : > { %v1231_v54 = vadd.f32 %v1230_v8, %v1150_v15  ;;  %v1330_v13 = vpop.f32.mrf.mxu2  ;;  %2309 = vmatpush.msra.mxu0 %v8293_v59  ;;  %v6481_v39 = vand.u32 4294901760, %v448_v4 }
 0x156   : > { %1799 = vmatmul.f32.vlgmr.msrb.gmra.mxu0 %v8292_v62  ;;  %2388 = vmatpush.msra.mxu1 %v6319_v28  ;;  %v8303_v62 = vld [vmem:[#allocation15_spill] sm:$0xff] }
 0x157   : > { %v1331_v0 = vadd.f32 %v1330_v13, %v1231_v54  ;;  %1616 = vmatmul.f32.gmra.mxu1 %v8291_v25  ;;  %v1426_v32 = vpop.f32.mrf.mxu3  ;;  %2313 = vmatpush.msra.mxu0 %v1983_v38  ;;  %v2580_v30 = vsub.f32 %v448_v4, %v6481_v39  ;;  %v8344_v25 = vld [vmem:[#allocation68_spill] sm:$0xff] }
 0x158   : > { %2390 = vmatpush.msra.mxu1 %v6337_v43  ;;  %2460 = vmatpush.msra.mxu2 %v6481_v39 }
 0x159   : > { %v6467_v6 = vadd.f32 %v1426_v32, %v1331_v0  ;;  %2655 = vmatpush.msrb.mxu0 %v6412_v27  ;;  %v2581_v15 = vand.u32 4294901760, %v2580_v30 }
 0x15a   : > { %2086 = vmatmul.f32.vlgmr.msrb.gmra.mxu2 %v8294_v58  ;;  %2392 = vmatpush.msra.mxu1 %v6351_v10  ;;  %v8305_v58 = vld [vmem:[#allocation12_spill] sm:$0xff] }
 0x15b   : > { %v1157_v33 = vpop.f32.mrf.mxu0  ;;  %2658 = vmatpush.msrb.mxu0 %v2580_v30 }
 0x15c   : > { %v1234_v12 = vpop.f32.mrf.mxu1  ;;  %2180 = vmatmul.f32.vlgmr.msrb.gmra.mxu3 %v8295_v23  ;;  %2394 = vmatpush.msra.mxu1 %v6364_v63  ;;  %v1158_v10 = vadd.f32 %v1157_v33, %v6223_v53  ;;  %v8298_v63 = vld [vmem:[#allocation9_spill] sm:$0xff]  ;;  %v2582_v53 = vsub.f32 %v2580_v30, %v2581_v15 }
 0x15d   : > { %v1235_v28 = vadd.f32 %v1234_v12, %v1154_v35  ;;  %v1338_v19 = vpop.f32.mrf.mxu2  ;;  %v8304_v35 = vld [vmem:[#allocation22_spill] sm:$0xff] }
 0x15e   : > { %1807 = vmatmul.f32.gmra.mxu0 %v8296_v60  ;;  %v2583_v7 = vand.u32 4294901760, %v2582_v53  ;;  %v8307_v60 = vld [vmem:[#allocation19_spill] sm:$0xff]  ;;  %v8312_v53 = vld [vmem:[#allocation30_spill] sm:$0xff] }
 0x15f   : > { %v1339_v43 = vadd.f32 %v1338_v19, %v1235_v28  ;;  %1988 = vmatmul.f32.vlgmr.msrb.gmra.mxu1 %v8297_v45  ;;  %v1430_v38 = vpop.f32.mrf.mxu3  ;;  %v8306_v28 = vld [vmem:[#allocation17_spill] sm:$0xff] }
 0x160   : > { %2737 = vmatpush.msrb.mxu1 %v6404_v49  ;;  %2584 = vmatpush.msra.mxu3 %v2583_v7 }
 0x161   : > { %v6484_v47 = vadd.f32 %v1430_v38, %v1339_v43 }
 0x162   : > { %2739 = vmatpush.msrb.mxu1 %v6481_v39  ;;  %2091 = vmatmul.f32.gmra.mxu2 %v8298_v63  ;;  %v8309_v63 = vld [vmem:[#allocation16_spill] sm:$0xff] }
 0x163   : > { %v1161_v37 = vpop.f32.mrf.mxu0 }
 0x164   : > { %v1238_v2 = vpop.f32.mrf.mxu1  ;;  %2186 = vmatmul.f32.gmra.mxu3 %v8299_v34  ;;  %v1162_v8 = vadd.f32 %v1161_v37, %v6249_v52 }
 0x165   : > { %v1239_v40 = vadd.f32 %v1238_v2, %v1158_v10  ;;  %v1346_v9 = vpop.f32.mrf.mxu2  ;;  %v8308_v10 = vld [vmem:[#allocation26_spill] sm:$0xff] }
 0x166   : > { %1815 = vmatmul.f32.gmra.mxu0 %v8300_v26 }
 0x167   : > { %v1347_v11 = vadd.f32 %v1346_v9, %v1239_v40  ;;  %1992 = vmatmul.f32.gmra.mxu1 %v8301_v3  ;;  %v1434_v57 = vpop.f32.mrf.mxu3 }
 0x169   : > { %v6494_v61 = vadd.f32 %v1434_v57, %v1347_v11  ;;  %v8311_v11 = vld [vmem:[#allocation23_spill] sm:$0xff] }
 0x16a   : > { %2096 = vmatmul.f32.gmra.mxu2 %v8302_v48  ;;  %v446_v48 = vld [vmem:[%s5277_s22 + $0x108] sm:$0xff]  ;;  %s384_s22 = scalar_lea.vmem %s7974_s1, %s5136_s24 }
 0x16b   : > { %v1165_v54 = vpop.f32.mrf.mxu0 }
 0x16c   : > { %v1242_v13 = vpop.f32.mrf.mxu1  ;;  %2192 = vmatmul.f32.gmra.mxu3 %v8303_v62  ;;  %v1166_v52 = vadd.f32 %v1165_v54, %v6273_v41  ;;  %v8310_v41 = vld [vmem:[#allocation21_spill] sm:$0xff] }
 0x16d   : > { %v1243_v0 = vadd.f32 %v1242_v13, %v1162_v8  ;;  %v1354_v32 = vpop.f32.mrf.mxu2  ;;  %v8313_v8 = vld [vmem:[#allocation20_spill] sm:$0xff]  ;;  %v2461_v13 = vand.u32 4294901760, %v446_v48 }
 0x16e   : > { %1823 = vmatmul.f32.gmra.mxu0 %v8304_v35  ;;  %v8315_v35 = vld [vmem:[#allocation27_spill] sm:$0xff] }
 0x16f   : > { %v1355_v59 = vadd.f32 %v1354_v32, %v1243_v0  ;;  %1996 = vmatmul.f32.gmra.mxu1 %v8305_v58  ;;  %v1438_v33 = vpop.f32.mrf.mxu3  ;;  %2462 = vmatpush.msra.mxu2 %v2461_v13  ;;  %v8314_v0 = vld [vmem:[#allocation25_spill] sm:$0xff] }
 0x170   : > { %2741 = vmatpush.msrb.mxu1 %v2461_v13 }
 0x171   : > { %v6501_v12 = vadd.f32 %v1438_v33, %v1355_v59  ;;  %2831 = vmatpush.msrb.mxu2 %v2575_v42  ;;  %v8318_v42 = vld [vmem:[#allocation29_spill] sm:$0xff] }
 0x172   : > { %2101 = vmatmul.f32.gmra.mxu2 %v8306_v28 }
 0x173   : > { %v1470_v19 = vpop.f32.mrf.mxu0  ;;  %2835 = vmatpush.msrb.mxu2 %v2581_v15 }
 0x174   : > { %v1246_v23 = vpop.f32.mrf.mxu1  ;;  %2198 = vmatmul.f32.gmra.mxu3 %v8307_v60  ;;  %v1471_v40 = vadd.f32 %v1470_v19, %v6295_v46  ;;  %v8317_v19 = vld [vmem:[#allocation24_spill] sm:$0xff] }
 0x175   : > { %v1247_v43 = vadd.f32 %v1246_v23, %v1166_v52  ;;  %v1362_v4 = vpop.f32.mrf.mxu2  ;;  %v2586_v52 = vsub.f32 %v446_v48, %v2461_v13  ;;  %v8316_v23 = vld [vmem:[#allocation34_spill] sm:$0xff] }
 0x176   : > { %1831 = vmatmul.f32.gmra.mxu0 %v8308_v10 }
 0x177   : > { %v1363_v38 = vadd.f32 %v1362_v4, %v1247_v43  ;;  %2000 = vmatmul.f32.gmra.mxu1 %v8309_v63  ;;  %v1442_v37 = vpop.f32.mrf.mxu3  ;;  %2661 = vmatpush.msrb.mxu0 %v2586_v52 }
 0x179   : > { %v6508_v2 = vadd.f32 %v1442_v37, %v1363_v38 }
 0x17a   : > { %2106 = vmatmul.f32.gmra.mxu2 %v8310_v41 }
 0x17b   : > { %v1475_v34 = vpop.f32.mrf.mxu0 }
 0x17c   : > { %v1551_v9 = vpop.f32.mrf.mxu1  ;;  %2204 = vmatmul.f32.gmra.mxu3 %v8311_v11  ;;  %v1476_v46 = vadd.f32 %v1475_v34, %v6321_v18  ;;  %v2587_v18 = vand.u32 4294901760, %v2586_v52 }
 0x17d   : > { %v1552_v30 = vadd.f32 %v1551_v9, %v1471_v40  ;;  %v1647_v26 = vpop.f32.mrf.mxu2  ;;  %v8319_v40 = vld [vmem:[#allocation31_spill] sm:$0xff]  ;;  %v8320_v9 = vld [vmem:[#allocation38_spill] sm:$0xff] }
 0x17e   : > { %1839 = vmatmul.f32.gmra.mxu0 %v8312_v53  ;;  %v2588_v4 = vsub.f32 %v2586_v52, %v2587_v18  ;;  %2839 = vmatpush.msrb.mxu2 %v2587_v18  ;;  %v8329_v18 = vld [vmem:[#allocation36_spill] sm:$0xff] }
 0x17f   : > { %v1648_v57 = vadd.f32 %v1647_v26, %v1552_v30  ;;  %2004 = vmatmul.f32.gmra.mxu1 %v8313_v8  ;;  %v1715_v54 = vpop.f32.mrf.mxu3  ;;  %v8321_v30 = vld [vmem:[#allocation28_spill] sm:$0xff] }
 0x180   : > { %v2589_v37 = vand.u32 4294901760, %v2588_v4 }
 0x181   : > { %v6516_v7 = vadd.f32 %v1715_v54, %v1648_v57  ;;  %v8322_v57 = vld [vmem:[#allocation33_spill] sm:$0xff] }
 0x182   : > { %2111 = vmatmul.f32.gmra.mxu2 %v8314_v0  ;;  %2590 = vmatpush.msra.mxu3 %v2589_v37  ;;  %v8323_v0 = vld [vmem:[#allocation35_spill] sm:$0xff] }
 0x183   : > { %v1480_v62 = vpop.f32.mrf.mxu0  ;;  %v8331_v37 = vld [vmem:[#allocation43_spill] sm:$0xff]  ;;  %vm2957_vm13 = vcmp.gt.f32.partialorder %v6516_v7, 0.0 }
 0x184   : > { %v1557_v32 = vpop.f32.mrf.mxu1  ;;  %2210 = vmatmul.f32.gmra.mxu3 %v8315_v35  ;;  %v1481_v27 = vadd.f32 %v1480_v62, %v6346_v22 }
 0x185   : > { %v1558_v59 = vadd.f32 %v1557_v32, %v1476_v46  ;;  %v1651_v33 = vpop.f32.mrf.mxu2  ;;  %2903 = vmatpush.msrb.mxu3 %v6404_v49  ;;  %v8325_v49 = vld [vmem:[#allocation32_spill] sm:$0xff] }
 0x186   : > { %1847 = vmatmul.f32.gmra.mxu0 %v8316_v23 }
 0x187   : > { %v1652_v28 = vadd.f32 %v1651_v33, %v1558_v59  ;;  %2008 = vmatmul.f32.gmra.mxu1 %v8317_v19  ;;  %v1719_v43 = vpop.f32.mrf.mxu3  ;;  %2905 = vmatpush.msrb.mxu3 %v6481_v39  ;;  %v8324_v59 = vld [vmem:[#allocation42_spill] sm:$0xff] }
 0x189   : > { %v6525_v60 = vadd.f32 %v1719_v43, %v1652_v28  ;;  %2907 = vmatpush.msrb.mxu3 %v2461_v13  ;;  %v8327_v28 = vld [vmem:[#allocation39_spill] sm:$0xff]  ;;  %v8328_v43 = vld [vmem:[#allocation46_spill] sm:$0xff] }
 0x18a   : > { %2116 = vmatmul.f32.gmra.mxu2 %v8318_v42  ;;  %v8330_v42 = vld [vmem:[#allocation41_spill] sm:$0xff] }
 0x18b   : > { %v1485_v38 = vpop.f32.mrf.mxu0  ;;  %vm2959_vm12 = vcmp.gt.f32.partialorder %v6525_v60, 0.0 }
 0x18c   : > { %v1563_v10 = vpop.f32.mrf.mxu1  ;;  %2216 = vmatmul.f32.gmra.mxu3 %v8319_v40  ;;  %v1486_v22 = vadd.f32 %v1485_v38, %v6380_v14  ;;  %v8326_v14 = vld [vmem:[#allocation37_spill] sm:$0xff]  ;;  %v8332_v40 = vld [vmem:[#allocation50_spill] sm:$0xff] }
 0x18d   : > { %v1564_v15 = vadd.f32 %v1563_v10, %v1481_v27  ;;  %v1655_v41 = vpop.f32.mrf.mxu2 }
 0x18e   : > { %1855 = vmatmul.f32.gmra.mxu0 %v8320_v9  ;;  %v8334_v9 = vld [vmem:[#allocation45_spill] sm:$0xff] }
 0x18f   : > { %v1656_v34 = vadd.f32 %v1655_v41, %v1564_v15  ;;  %2012 = vmatmul.f32.gmra.mxu1 %v8321_v30  ;;  %v1723_v11 = vpop.f32.mrf.mxu3  ;;  %v8333_v41 = vld [vmem:[#allocation40_spill] sm:$0xff] }
 0x191   : > { %v6533_v26 = vadd.f32 %v1723_v11, %v1656_v34 }
 0x192   : > { %2121 = vmatmul.f32.gmra.mxu2 %v8322_v57  ;;  %v8335_v57 = vld [vmem:[#allocation47_spill] sm:$0xff] }
 0x193   : > { %v1490_v53 = vpop.f32.mrf.mxu0  ;;  %vm2961_vm11 = vcmp.gt.f32.partialorder %v6533_v26, 0.0 }
 0x194   : > { %v1569_v48 = vpop.f32.mrf.mxu1  ;;  %v1491_v54 = vadd.f32 %v1490_v53, %v6402_v24  ;;  %2222 = vmatmul.f32.gmra.mxu3 %v8323_v0  ;;  %v8338_v0 = vld [vmem:[#allocation49_spill] sm:$0xff] }
 0x195   : > { %v1570_v46 = vadd.f32 %v1569_v48, %v1486_v22  ;;  %v1659_v62 = vpop.f32.mrf.mxu2  ;;  %v8336_v48 = vld [vmem:[#allocation53_spill] sm:$0xff] }
 0x196   : > { %1863 = vmatmul.f32.gmra.mxu0 %v8324_v59  ;;  %v8339_v59 = vld [vmem:[#allocation51_spill] sm:$0xff] }
 0x197   : > { %v1660_v32 = vadd.f32 %v1659_v62, %v1570_v46  ;;  %2016 = vmatmul.f32.gmra.mxu1 %v8325_v49  ;;  %v1727_v35 = vpop.f32.mrf.mxu3 }
 0x199   : > { %v6542_v39 = vadd.f32 %v1727_v35, %v1660_v32 }
 0x19a   : > { %2126 = vmatmul.f32.gmra.mxu2 %v8326_v14  ;;  %v8340_v14 = vld [vmem:[#allocation48_spill] sm:$0xff] }
 0x19b   : > { %v6545_v33 = vpop.f32.mrf.mxu0  ;;  %vm2963_vm10 = vcmp.gt.f32.partialorder %v6542_v39, 0.0 }
 0x19c   : > { %v1575_v52 = vpop.f32.mrf.mxu1  ;;  %2228 = vmatmul.f32.gmra.mxu3 %v8327_v28 }
 0x19d   : > { %v1576_v13 = vadd.f32 %v1575_v52, %v1491_v54  ;;  %v1663_v24 = vpop.f32.mrf.mxu2  ;;  %v8337_v54 = vld [vmem:[#allocation44_spill] sm:$0xff] }
 0x19e   : > { %1871 = vmatmul.f32.gmra.mxu0 %v8328_v43 }
 0x19f   : > { %v1664_v23 = vadd.f32 %v1663_v24, %v1576_v13  ;;  %2020 = vmatmul.f32.gmra.mxu1 %v8329_v18  ;;  %v1731_v4 = vpop.f32.mrf.mxu3  ;;  %v8341_v13 = vld [vmem:[#allocation57_spill] sm:$0xff] }
 0x1a1   : > { %v6550_v27 = vadd.f32 %v1731_v4, %v1664_v23  ;;  %v8342_v23 = vld [vmem:[#allocation52_spill] sm:$0xff] }
 0x1a2   : > { %2131 = vmatmul.f32.gmra.mxu2 %v8330_v42  ;;  %v8343_v42 = vld [vmem:[#allocation62_spill] sm:$0xff] }
 0x1a3   : > { %v1500_v38 = vpop.f32.mrf.mxu0  ;;  %vm2965_vm9 = vcmp.gt.f32.partialorder %v6550_v27, 0.0 }
 0x1a4   : > { %v1581_v10 = vpop.f32.mrf.mxu1  ;;  %2234 = vmatmul.f32.gmra.mxu3 %v8331_v37 }
 0x1a5   : > { %v6554_v15 = vpop.f32.mrf.mxu2 }
 0x1a6   : > { %1879 = vmatmul.f32.gmra.mxu0 %v8332_v40 }
 0x1a7   : > { %2024 = vmatmul.f32.gmra.mxu1 %v8333_v41  ;;  %v6558_v34 = vpop.f32.mrf.mxu3 }
 0x1aa   : > { %2136 = vmatmul.f32.gmra.mxu2 %v8334_v9 }
 0x1ab   : > { %v1505_v11 = vpop.f32.mrf.mxu0 }
 0x1ac   : > { %v1587_v22 = vpop.f32.mrf.mxu1  ;;  %2240 = vmatmul.f32.gmra.mxu3 %v8335_v57 }
 0x1ad   : > { %v1671_v53 = vpop.f32.mrf.mxu2 }
 0x1ae   : > { %1887 = vmatmul.f32.gmra.mxu0 %v8336_v48 }
 0x1af   : > { %2028 = vmatmul.f32.gmra.mxu1 %v8337_v54  ;;  %v6564_v46 = vpop.f32.mrf.mxu3 }
 0x1b2   : > { %2141 = vmatmul.f32.gmra.mxu2 %v8338_v0 }
 0x1b3   : > { %v1510_v62 = vpop.f32.mrf.mxu0 }
 0x1b4   : > { %v1593_v32 = vpop.f32.mrf.mxu1  ;;  %2246 = vmatmul.f32.gmra.mxu3 %v8339_v59  ;;  %v1511_v0 = vadd.f32 %v1510_v62, %v6484_v47 }
 0x1b5   : > { %v1675_v35 = vpop.f32.mrf.mxu2 }
 0x1b6   : > { %2315 = vmatmul.f32.vlgmr.msra.gmra.mxu0 %v8297_v45 }
 0x1b7   : > { %2032 = vmatmul.f32.gmra.mxu1 %v8340_v14  ;;  %v1743_v52 = vpop.f32.mrf.mxu3 }
 0x1ba   : > { %2468 = vmatmul.f32.vlgmr.msra.gmra.mxu2 %v8341_v13 }
 0x1bb   : > { %v1515_v28 = vpop.f32.mrf.mxu0 }
 0x1bc   : > { %v1599_v24 = vpop.f32.mrf.mxu1  ;;  %2592 = vmatmul.f32.vlgmr.msra.gmra.mxu3 %v8342_v23  ;;  %v1516_v57 = vadd.f32 %v1515_v28, %v6494_v61  ;;  %v8345_v61 = vld [vmem:[#allocation59_spill] sm:$0xff]  ;;  %v1501_v28 = vadd.f32 %v1500_v38, %v6448_v16 }
 0x1bd   : > { %v1679_v43 = vpop.f32.mrf.mxu2  ;;  %v1600_v13 = vadd.f32 %v1599_v24, %v1511_v0  ;;  %v8348_v0 = vld [vmem:[#allocation81_spill] sm:$0xff] }
 0x1be   : > { %2319 = vmatmul.f32.gmra.mxu0 %v8301_v3 }
 0x1bf   : > { %2396 = vmatmul.f32.vlgmr.msra.gmra.mxu1 %v8297_v45  ;;  %v1747_v4 = vpop.f32.mrf.mxu3  ;;  %v1680_v44 = vadd.f32 %v1679_v43, %v1600_v13 }
 0x1c2   : > { %2476 = vmatmul.f32.gmra.mxu2 %v8343_v42  ;;  %v1506_v42 = vadd.f32 %v1505_v11, %v6467_v6  ;;  %v1588_v6 = vadd.f32 %v1587_v22, %v1501_v28 }
 0x1c3   : > { %v1520_v37 = vpop.f32.mrf.mxu0 }
 0x1c4   : > { %v1605_v40 = vpop.f32.mrf.mxu1  ;;  %2596 = vmatmul.f32.gmra.mxu3 %v5846_v51  ;;  %v1521_v45 = vadd.f32 %v1520_v37, %v6501_v12  ;;  %v1748_v37 = vadd.f32 %v1747_v4, %v1680_v44 }
 0x1c5   : > { %v1683_v9 = vpop.f32.mrf.mxu2  ;;  %v1606_v59 = vadd.f32 %v1605_v40, %v1516_v57 }
 0x1c6   : > { %2323 = vmatmul.f32.gmra.mxu0 %v8305_v58  ;;  %v2997_v22 = vmul.f32 0.01, %v1748_v37  ;;  %vm2973_vm4 = vcmp.gt.f32.partialorder %v1748_v37, 0.0 }
 0x1c7   : > { %2400 = vmatmul.f32.gmra.mxu1 %v8301_v3  ;;  %v1751_v48 = vpop.f32.mrf.mxu3  ;;  %v1684_v17 = vadd.f32 %v1683_v9, %v1606_v59  ;;  %v1594_v3 = vadd.f32 %v1593_v32, %v1506_v42  ;;  %v8346_v32 = vld [vmem:[#allocation74_spill] sm:$0xff] }
 0x1c8   : > { %v3021_v57 = vsel %vm2973_vm4, %v1748_v37, %v2997_v22  ;;  %v8349_v42 = vld [vmem:[#allocation70_spill] sm:$0xff] }
 0x1c9   : > { %v1752_v11 = vadd.f32 %v1751_v48, %v1684_v17  ;;  %v1676_v24 = vadd.f32 %v1675_v35, %v1594_v3  ;;  %v6612_v3 = vand.u32 4294901760, %v3021_v57 }
 0x1ca   : > { %2484 = vmatmul.f32.gmra.mxu2 %v8344_v25  ;;  %v1496_v25 = vadd.f32 %v6545_v33, %v6429_v50  ;;  %v8347_v50 = vld [vmem:[#allocation64_spill] sm:$0xff] }
 0x1cb   : > { %v1525_v1 = vpop.f32.mrf.mxu0  ;;  %v1744_v33 = vadd.f32 %v1743_v52, %v1676_v24  ;;  %vm2975_vm3 = vcmp.gt.f32.partialorder %v1752_v11, 0.0  ;;  %v2989_v24 = vmul.f32 0.01, %v6550_v27 }
 0x1cc   : > { %v1611_v20 = vpop.f32.mrf.mxu1  ;;  %2600 = vmatmul.f32.gmra.mxu3 %v8345_v61  ;;  %v1526_v16 = vadd.f32 %v1525_v1, %v6508_v2 }
 0x1cd   : > { %v1612_v36 = vadd.f32 %v1611_v20, %v1521_v45  ;;  %v1687_v21 = vpop.f32.mrf.mxu2  ;;  %v1582_v20 = vadd.f32 %v1581_v10, %v1496_v25  ;;  %v2995_v52 = vmul.f32 0.01, %v1744_v33  ;;  %vm2971_vm5 = vcmp.gt.f32.partialorder %v1744_v33, 0.0 }
 0x1ce   : > { %2327 = vmatmul.f32.gmra.mxu0 %v8309_v63 }
 0x1cf   : > { %v1688_v47 = vadd.f32 %v1687_v21, %v1612_v36  ;;  %2404 = vmatmul.f32.gmra.mxu1 %v8305_v58  ;;  %v1755_v12 = vpop.f32.mrf.mxu3  ;;  %v1672_v21 = vadd.f32 %v1671_v53, %v1588_v6  ;;  %v2999_v58 = vmul.f32 0.01, %v1752_v11  ;;  %v1668_v17 = vadd.f32 %v6554_v15, %v1582_v20 }
 0x1d0   : > { %v3019_v28 = vsel %vm2971_vm5, %v1744_v33, %v2995_v52 }
 0x1d1   : > { %v1756_v62 = vadd.f32 %v1755_v12, %v1688_v47  ;;  %v1740_v2 = vadd.f32 %v6564_v46, %v1672_v21  ;;  %v3023_v35 = vsel %vm2975_vm3, %v1752_v11, %v2999_v58  ;;  %v1736_v15 = vadd.f32 %v6558_v34, %v1668_v17 }
 0x1d2   : > { %2492 = vmatmul.f32.gmra.mxu2 %v8346_v32  ;;  %v6602_v13 = vand.u32 4294901760, %v3023_v35  ;;  %v6631_v37 = vand.u32 4294901760, %v3019_v28  ;;  %v2987_v58 = vmul.f32 0.01, %v6542_v39 }
 0x1d3   : > { %vm2977_vm2 = vcmp.gt.f32.partialorder %v1756_v62, 0.0  ;;  %v3001_v38 = vmul.f32 0.01, %v1756_v62  ;;  %v6591_v43 = vpop.f32.mrf.mxu0  ;;  %v2993_v59 = vmul.f32 0.01, %v1740_v2  ;;  %vm2969_vm7 = vcmp.gt.f32.partialorder %v1740_v2, 0.0 }
 0x1d4   : > { %v1617_v36 = vpop.f32.mrf.mxu1  ;;  %2604 = vmatmul.f32.gmra.mxu3 %v8347_v50  ;;  %v2991_v6 = vmul.f32 0.01, %v1736_v15  ;;  %vm2967_vm8 = vcmp.gt.f32.partialorder %v1736_v15, 0.0  ;;  %v6628_v20 = vsub.f32 %v3023_v35, %v6602_v13  ;;  %v8352_v35 = vld [vmem:[#allocation76_spill] sm:$0xff] }
 0x1d5   : > { %v1618_v40 = vadd.f32 %v1617_v36, %v1526_v16  ;;  %v3025_v10 = vsel %vm2977_vm2, %v1756_v62, %v3001_v38  ;;  %v1691_v44 = vpop.f32.mrf.mxu2  ;;  %v3017_v12 = vsel %vm2969_vm7, %v1740_v2, %v2993_v59  ;;  %v6639_v38 = vsub.f32 %v3021_v57, %v6612_v3  ;;  %v8351_v36 = vld [vmem:[#allocation87_spill] sm:$0xff] }
 0x1d6   : > { %2331 = vmatmul.f32.gmra.mxu0 %v8313_v8  ;;  %v6598_v4 = vand.u32 4294901760, %v3025_v10  ;;  %v3015_v32 = vsel %vm2967_vm8, %v1736_v15, %v2991_v6  ;;  %v6641_v21 = vand.u32 4294901760, %v3017_v12  ;;  %v2985_v2 = vmul.f32 0.01, %v6533_v26 }
 0x1d7   : > { %v1692_v1 = vadd.f32 %v1691_v44, %v1618_v40  ;;  %2408 = vmatmul.f32.gmra.mxu1 %v8309_v63  ;;  %v1759_v53 = vpop.f32.mrf.mxu3  ;;  %v3013_v44 = vsel %vm2965_vm9, %v6550_v27, %v2989_v24  ;;  %v8135_v15 = vand.u32 4294901760, %v6639_v38  ;;  %v2983_v57 = vmul.f32 0.01, %v6525_v60 }
 0x1d8   : > { %v6610_v34 = vsub.f32 %v3025_v10, %v6598_v4  ;;  %v8136_v10 = vand.u32 4294901760, %v6628_v20  ;;  %v6679_v52 = vsub.f32 %v3017_v12, %v6641_v21  ;;  %v2981_v6 = vmul.f32 0.01, %v6516_v7 }
 0x1d9   : > { %v1760_v9 = vadd.f32 %v1759_v53, %v1692_v1  ;;  %v6665_v1 = vsub.f32 %v3019_v28, %v6631_v37  ;;  %v6668_v53 = vand.u32 4294901760, %v3015_v32  ;;  %v3138_v12 = vsub.f32 %v6639_v38, %v8135_v15 }
 0x1da   : > { %2500 = vmatmul.f32.gmra.mxu2 %v8348_v0  ;;  %v6685_v0 = vand.u32 4294901760, %v3013_v44 }
 0x1db   : > { %vm2979_vm6 = vcmp.gt.f32.partialorder %v1760_v9, 0.0  ;;  %v3003_v48 = vmul.f32 0.01, %v1760_v9  ;;  %v6604_v63 = vpop.f32.mrf.mxu0  ;;  %v6707_v24 = vsub.f32 %v3015_v32, %v6668_v53 }
 0x1dc   : > { %v6606_v46 = vpop.f32.mrf.mxu1  ;;  %2608 = vmatmul.f32.gmra.mxu3 %v8349_v42 }
 0x1dd   : > { %v3027_v45 = vsel %vm2979_vm6, %v1760_v9, %v3003_v48  ;;  %v6616_v25 = vpop.f32.mrf.mxu2  ;;  %v3011_v48 = vsel %vm2963_vm10, %v6542_v39, %v2987_v58  ;;  %v8137_v39 = vand.u32 4294901760, %v6665_v1  ;;  %v3007_v58 = vsel %vm2959_vm12, %v6525_v60, %v2983_v57 }
 0x1de   : > { %v6614_v47 = vand.u32 4294901760, %v3027_v45  ;;  %2335 = vmatmul.f32.gmra.mxu0 %v8317_v19  ;;  %v3005_v57 = vsel %vm2957_vm13, %v6516_v7, %v2981_v6  ;;  %v8141_v15 = vand.u32 4294901760, %v6707_v24  ;;  %v8357_v6 = vld [vmem:[#allocation83_spill] sm:$0xff] }
 0x1df   : > { %2412 = vmatmul.f32.gmra.mxu1 %v8313_v8  ;;  %v6623_v62 = vpop.f32.mrf.mxu3  ;;  %v8138_v8 = vand.u32 4294901760, %v6610_v34  ;;  %v3144_v60 = vsub.f32 %v6665_v1, %v8137_v39  ;;  %v6754_v39 = vand.u32 4294901760, %v3005_v57 }
 0x1e0   : > { %v6621_v11 = vsub.f32 %v3027_v45, %v6614_v47  ;;  %8350 = vst [vmem:[#allocation100_spill] sm:$0xff] %v6623_v62  ;;  %3065 = vmatpush.msra.mxu0 %v6614_v47  ;;  %3263 = vmatpush.msra.mxu3 %v6614_v47  ;;  %v3132_v45 = vsub.f32 %v6628_v20, %v8136_v10  ;;  %v6740_v10 = vand.u32 4294901760, %v3007_v58 }
 0x1e1   : > { %v3126_v22 = vsub.f32 %v6610_v34, %v8138_v8  ;;  %v3145_v8 = vand.u32 4294901760, %v3144_v60 }
 0x1e2   : > { %3067 = vmatpush.msra.mxu0 %v6598_v4  ;;  %3208 = vmatpush.msra.mxu2 %v6621_v11  ;;  %v8139_v16 = vand.u32 4294901760, %v6621_v11 }
 0x1e3   : > { %3265 = vmatpush.msra.mxu3 %v6598_v4  ;;  %2508 = vmatmul.f32.gmra.mxu2 %v8351_v36  ;;  %v6646_v40 = vpop.f32.mrf.mxu0  ;;  %v3127_v28 = vand.u32 4294901760, %v3126_v22  ;;  %v6710_v36 = vand.u32 4294901760, %v3011_v48  ;;  %v3133_v22 = vand.u32 4294901760, %v3132_v45 }
 0x1e4   : > { %v6648_v17 = vpop.f32.mrf.mxu1  ;;  %3069 = vmatpush.msra.mxu0 %v6602_v13  ;;  %3211 = vmatpush.msra.mxu2 %v6610_v34  ;;  %v3120_v33 = vsub.f32 %v6621_v11, %v8139_v16 }
 0x1e5   : > { %3267 = vmatpush.msra.mxu3 %v6602_v13  ;;  %v6671_v9 = vpop.f32.mrf.mxu2  ;;  %v6748_v7 = vsub.f32 %v3011_v48, %v6710_v36  ;;  %v3156_v48 = vsub.f32 %v6707_v24, %v8141_v15 }
 0x1e6   : > { %2612 = vmatmul.f32.gmra.mxu3 %v8352_v35  ;;  %8353 = vst [vmem:[#allocation10_spill] sm:$0xff] %v6671_v9  ;;  %3071 = vmatpush.msra.mxu0 %v6612_v3  ;;  %v3121_v27 = vand.u32 4294901760, %v3120_v33 }
 0x1e7   : > { %3214 = vmatpush.msra.mxu2 %v6628_v20  ;;  %3269 = vmatpush.msra.mxu3 %v6612_v3  ;;  %v6689_v59 = vpop.f32.mrf.mxu3 }
 0x1e8   : > { %2339 = vmatmul.f32.gmra.mxu0 %v8321_v30  ;;  %2416 = vmatmul.f32.gmra.mxu1 %v8317_v19  ;;  %8354 = vst [vmem:[#allocation6_spill] sm:$0xff] %v6689_v59  ;;  %v3009_v19 = vsel %vm2961_vm11, %v6533_v26, %v2985_v2  ;;  %v8140_v26 = vand.u32 4294901760, %v6679_v52  ;;  %v6724_v2 = vsub.f32 %v3013_v44, %v6685_v0  ;;  %v3139_v44 = vand.u32 4294901760, %v3138_v12 }
 0x1e9   : > { %3073 = vmatpush.msra.mxu0 %v6631_v37  ;;  %3122 = vmatpush.msra.mxu1 %v3121_v27  ;;  %v6726_v27 = vand.u32 4294901760, %v3009_v19 }
 0x1ea   : > { %3217 = vmatpush.msra.mxu2 %v6639_v38  ;;  %3271 = vmatpush.msra.mxu3 %v6631_v37  ;;  %v8142_v12 = vand.u32 4294901760, %v6724_v2 }
 0x1eb   : > { %3075 = vmatpush.msra.mxu0 %v6641_v21  ;;  %3128 = vmatpush.msra.mxu1 %v3127_v28  ;;  %v6719_v33 = vpop.f32.mrf.mxu0  ;;  %v8355_v28 = vld [vmem:[#allocation92_spill] sm:$0xff]  ;;  %v6759_v16 = vsub.f32 %v3009_v19, %v6726_v27 }
 0x1ec   : > { %3220 = vmatpush.msra.mxu2 %v6665_v1  ;;  %3273 = vmatpush.msra.mxu3 %v6641_v21  ;;  %v6721_v32 = vpop.f32.mrf.mxu1  ;;  %v3162_v15 = vsub.f32 %v6724_v2, %v8142_v12  ;;  %v8361_v12 = vand.u32 4294901760, %v6748_v7 }
 0x1ed   : > { %2516 = vmatmul.f32.gmra.mxu2 %v8355_v28  ;;  %3077 = vmatpush.msra.mxu0 %v6668_v53  ;;  %v6737_v45 = vpop.f32.mrf.mxu2  ;;  %v3150_v28 = vsub.f32 %v6679_v52, %v8140_v26  ;;  %v6768_v26 = vsub.f32 %v3007_v58, %v6740_v10 }
 0x1ee   : > { %3134 = vmatpush.msra.mxu1 %v3133_v22  ;;  %3223 = vmatpush.msra.mxu2 %v6679_v52  ;;  %8356 = vst [vmem:[#allocation7_spill] sm:$0xff] %v6737_v45  ;;  %v3163_v58 = vand.u32 4294901760, %v3162_v15 }
 0x1ef   : > { %3275 = vmatpush.msra.mxu3 %v6668_v53  ;;  %3079 = vmatpush.msra.mxu0 %v6685_v0  ;;  %v6751_v22 = vpop.f32.mrf.mxu3 }
 0x1f0   : > { %2616 = vmatmul.f32.gmra.mxu3 %v8357_v6  ;;  %3140 = vmatpush.msra.mxu1 %v3139_v44  ;;  %8358 = vst [vmem:[#allocation14_spill] sm:$0xff] %v6751_v22  ;;  %v3151_v44 = vand.u32 4294901760, %v3150_v28  ;;  %v3157_v28 = vand.u32 4294901760, %v3156_v48  ;;  %v8360_v22 = vld [vmem:[#allocation95_spill] sm:$0xff] }
 0x1f1   : > { %3226 = vmatpush.msra.mxu2 %v6707_v24  ;;  %3277 = vmatpush.msra.mxu3 %v6685_v0 }
 0x1f2   : > { %2343 = vmatmul.f32.gmra.mxu0 %v8325_v49  ;;  %2420 = vmatmul.f32.gmra.mxu1 %v8321_v30 }
 0x1f3   : > { %3081 = vmatpush.msra.mxu0 %v6710_v36  ;;  %3146 = vmatpush.msra.mxu1 %v3145_v8  ;;  %v6773_v19 = vpop.f32.mrf.mxu0  ;;  %v6782_v8 = vsub.f32 %v3005_v57, %v6754_v39  ;;  %v8143_v57 = vand.u32 4294901760, %v6768_v26 }
 0x1f4   : > { %3229 = vmatpush.msra.mxu2 %v6724_v2  ;;  %3279 = vmatpush.msra.mxu3 %v6710_v36  ;;  %v6775_v30 = vpop.f32.mrf.mxu1 }
 0x1f5   : > { %3083 = vmatpush.msra.mxu0 %v6726_v27  ;;  %3152 = vmatpush.msra.mxu1 %v3151_v44  ;;  %v6787_v60 = vpop.f32.mrf.mxu2  ;;  %v3168_v44 = vsub.f32 %v6748_v7, %v8361_v12  ;;  %v8144_v62 = vand.u32 4294901760, %v6782_v8  ;;  %v3180_v12 = vsub.f32 %v6768_v26, %v8143_v57 }
 0x1f6   : > { %3232 = vmatpush.msra.mxu2 %v6748_v7  ;;  %3281 = vmatpush.msra.mxu3 %v6726_v27  ;;  %8359 = vst [vmem:[#allocation5_spill] sm:$0xff] %v6787_v60  ;;  %v8365_v60 = vld [vmem:[#allocation98_spill] sm:$0xff] }
 0x1f7   : > { %2524 = vmatmul.f32.gmra.mxu2 %v8360_v22  ;;  %3085 = vmatpush.msra.mxu0 %v6740_v10  ;;  %v6796_v59 = vpop.f32.mrf.mxu3  ;;  %v8363_v22 = vand.u32 4294901760, %v6759_v16  ;;  %v3169_v15 = vand.u32 4294901760, %v3168_v44  ;;  %v3186_v57 = vsub.f32 %v6782_v8, %v8144_v62  ;;  %v3181_v45 = vand.u32 4294901760, %v3180_v12  ;;  %v8371_v12 = vld [vmem:[#allocation105_spill] sm:$0xff] }
 0x1f8   : > { %3158 = vmatpush.msra.mxu1 %v3157_v28  ;;  %3235 = vmatpush.msra.mxu2 %v6759_v16  ;;  %8362 = vst [vmem:[#allocation9_spill] sm:$0xff] %v6796_v59  ;;  %v3034_v28 = vld [vmem:[%s7978_s5 + $0x10] sm:$0xf] }
 0x1f9   : > { %3283 = vmatpush.msra.mxu3 %v6740_v10  ;;  %3087 = vmatpush.msra.mxu0 %v6754_v39  ;;  %v3174_v48 = vsub.f32 %v6759_v16, %v8363_v22  ;;  %v3187_v9 = vand.u32 4294901760, %v3186_v57 }
 0x1fa   : > { %2620 = vmatmul.f32.gmra.mxu3 %v5987_v31  ;;  %3164 = vmatpush.msra.mxu1 %v3163_v58 }
 0x1fb   : > { %3238 = vmatpush.msra.mxu2 %v6768_v26  ;;  %3285 = vmatpush.msra.mxu3 %v6754_v39  ;;  %v6815_v22 = vpop.f32.mrf.mxu0  ;;  %v3175_v44 = vand.u32 4294901760, %v3174_v48 }
 0x1fc   : > { %2347 = vmatmul.f32.gmra.mxu0 %v8329_v18  ;;  %2424 = vmatmul.f32.gmra.mxu1 %v8325_v49  ;;  %v6817_v58 = vpop.f32.mrf.mxu1 }
 0x1fd   : > { %3170 = vmatpush.msra.mxu1 %v3169_v15  ;;  %3241 = vmatpush.msra.mxu2 %v6782_v8  ;;  %v6823_v59 = vpop.f32.mrf.mxu2 }
 0x1fe   : > { %8364 = vst [vmem:[#allocation11_spill] sm:$0xff] %v6823_v59  ;;  %3047 = vperm.xlu0 %5163, %v3034_v28  }
 0x1ff   : > { %3176 = vmatpush.msra.mxu1 %v3175_v44  ;;  %2532 = vmatmul.f32.gmra.mxu2 %v8365_v60  ;;  %v6826_v49 = vpop.f32.mrf.mxu3  ;;  %v8368_v44 = vld [vmem:[#allocation102_spill] sm:$0xff] }
 0x200   : > { %8366 = vst [vmem:[#allocation18_spill] sm:$0xff] %v6826_v49 }
 0x201   : > { %3182 = vmatpush.msra.mxu1 %v3181_v45  ;;  %v3033_v45 = vld [vmem:[%s7978_s5 + $0x8] sm:$0xff] }
 0x202   : > { %2624 = vmatmul.f32.gmra.mxu3 %v6014_v55  ;;  %3042 = vperm.xlu1 %5164, %v3033_v45  }
 0x203   : > { %3188 = vmatpush.msra.mxu1 %v3187_v9  ;;  %v6831_v48 = vpop.f32.mrf.mxu0 }
 0x204   : > { %2351 = vmatmul.f32.gmra.mxu0 %v8333_v41  ;;  %2428 = vmatmul.f32.gmra.mxu1 %v8329_v18  ;;  %v6833_v15 = vpop.f32.mrf.mxu1 }
 0x205   : > { %v6835_v28 = vpop.f32.mrf.mxu2 }
 0x206   : > { %8367 = vst [vmem:[#allocation8_spill] sm:$0xff] %v6835_v28 }
 0x207   : > { %2540 = vmatmul.f32.gmra.mxu2 %v8368_v44  ;;  %v6838_v60 = vpop.f32.mrf.mxu3 }
 0x208   : > { %8369 = vst [vmem:[#allocation13_spill] sm:$0xff] %v6838_v60  ;;  %v8373_v60 = vld [vmem:[#allocation107_spill] sm:$0xff] }
 0x20a   : > { %2628 = vmatmul.f32.gmra.mxu3 %v6037_v56 }
 0x20b   : > { %v6846_v18 = vpop.f32.mrf.mxu0 }
 0x20c   : > { %2355 = vmatmul.f32.gmra.mxu0 %v8337_v54  ;;  %2432 = vmatmul.f32.gmra.mxu1 %v8333_v41  ;;  %v6848_v9 = vpop.f32.mrf.mxu1 }
 0x20d   : > { %v6850_v57 = vpop.f32.mrf.mxu2 }
 0x20e   : > { %8370 = vst [vmem:[#allocation15_spill] sm:$0xff] %v6850_v57  ;;  %v8377_v57 = vand.u32 4294901760, %v6610_v34 }
 0x20f   : > { %2548 = vmatmul.f32.gmra.mxu2 %v8371_v12  ;;  %v6853_v44 = vpop.f32.mrf.mxu3  ;;  %v8375_v12 = vld [vmem:[#allocation54_spill] sm:$0xff] }
 0x210   : > { %8372 = vst [vmem:[#allocation22_spill] sm:$0xff] %v6853_v44 }
 0x212   : > { %2632 = vmatmul.f32.gmra.mxu3 %v8282_v5 }
 0x213   : > { %v6858_v45 = vpop.f32.mrf.mxu0 }
 0x214   : > { %2359 = vmatmul.f32.gmra.mxu0 %v8340_v14  ;;  %2436 = vmatmul.f32.gmra.mxu1 %v8337_v54  ;;  %v6860_v62 = vpop.f32.mrf.mxu1  ;;  %v8376_v54 = vand.u32 4294901760, %v6621_v11  ;;  %v8381_v11 = vld [vmem:[#allocation55_spill] sm:$0xff] }
 0x215   : > { %v6862_v41 = vpop.f32.mrf.mxu2 }
 0x217   : > { %2556 = vmatmul.f32.gmra.mxu2 %v8373_v60  ;;  %v6865_v49 = vpop.f32.mrf.mxu3 }
 0x218   : > { %8374 = vst [vmem:[#allocation12_spill] sm:$0xff] %v6865_v49  ;;  %v8380_v49 = vld [vmem:[#allocation56_spill] sm:$0xff] }
 0x21a   : > { %2636 = vmatmul.f32.gmra.mxu3 %v6083_v29 }
 0x21b   : > { %v6870_v44 = vpop.f32.mrf.mxu0 }
 0x21c   : > { %2440 = vmatmul.f32.gmra.mxu1 %v8340_v14  ;;  %2664 = vmatmul.f32.vlgmr.msrb.gmra.mxu0 %v8375_v12  ;;  %v6872_v28 = vpop.f32.mrf.mxu1  ;;  %v8378_v14 = vand.u32 4294901760, %v6628_v20  ;;  %v8379_v12 = vand.u32 4294901760, %v6639_v38 }
 0x21d   : > { %3312 = vmatpush.msrb.mxu0 %v8376_v54  ;;  %v6876_v59 = vpop.f32.mrf.mxu2 }
 0x21f   : > { %3316 = vmatpush.msrb.mxu0 %v8377_v57  ;;  %2841 = vmatmul.f32.vlgmr.msrb.gmra.mxu2 %v8342_v23  ;;  %v6881_v60 = vpop.f32.mrf.mxu3  ;;  %v8382_v57 = vand.u32 4294901760, %v6665_v1  ;;  %v8386_v1 = vld [vmem:[#allocation60_spill] sm:$0xff] }
 0x221   : > { %3320 = vmatpush.msrb.mxu0 %v8378_v14 }
 0x222   : > { %2909 = vmatmul.f32.vlgmr.msrb.gmra.mxu3 %v8342_v23  ;;  %v8383_v23 = vand.u32 4294901760, %v6679_v52  ;;  %v8387_v52 = vld [vmem:[#allocation58_spill] sm:$0xff] }
 0x223   : > { %3324 = vmatpush.msrb.mxu0 %v8379_v12  ;;  %v6890_v54 = vpop.f32.mrf.mxu0 }
 0x224   : > { %2669 = vmatmul.f32.gmra.mxu0 %v8380_v49  ;;  %2745 = vmatmul.f32.vlgmr.msrb.gmra.mxu1 %v8381_v11  ;;  %v6892_v34 = vpop.f32.mrf.mxu1  ;;  %v8384_v49 = vand.u32 4294901760, %v6707_v24  ;;  %v8388_v24 = vand.u32 4294901760, %v6748_v7  ;;  %v8390_v7 = vand.u32 4294901760, %v6768_v26 }
 0x225   : > { %3328 = vmatpush.msrb.mxu0 %v8382_v57  ;;  %3375 = vmatpush.msrb.mxu1 %v6614_v47  ;;  %v6897_v20 = vpop.f32.mrf.mxu2  ;;  %v8385_v47 = vand.u32 4294901760, %v6724_v2  ;;  %v3032_v2 = vld [vmem:[%s7978_s5] sm:$0xff] }
 0x226   : > { %3037 = vperm.xlu2 %5165, %v3032_v2  }
 0x227   : > { %3332 = vmatpush.msrb.mxu0 %v8383_v23  ;;  %3377 = vmatpush.msrb.mxu1 %v6598_v4  ;;  %v6903_v38 = vpop.f32.mrf.mxu3 }
 0x228   : > { %2845 = vmatmul.f32.gmra.mxu2 %v5846_v51 }
 0x229   : > { %3336 = vmatpush.msrb.mxu0 %v8384_v49  ;;  %3379 = vmatpush.msrb.mxu1 %v6602_v13 }
 0x22a   : > { %2913 = vmatmul.f32.gmra.mxu3 %v5846_v51  ;;  %v8389_v51 = vand.u32 4294901760, %v6759_v16  ;;  %v8392_v16 = vld [vmem:[#allocation65_spill] sm:$0xff] }
 0x22b   : > { %3340 = vmatpush.msrb.mxu0 %v8385_v47  ;;  %3381 = vmatpush.msrb.mxu1 %v6612_v3  ;;  %v6914_v4 = vpop.f32.mrf.mxu0 }
 0x22c   : > { %2674 = vmatmul.f32.gmra.mxu0 %v8386_v1  ;;  %2751 = vmatmul.f32.gmra.mxu1 %v8387_v52  ;;  %v6916_v14 = vpop.f32.mrf.mxu1  ;;  %v8404_v1 = vld [vmem:[#allocation85_spill] sm:$0xff]  ;;  %v8405_v52 = vld [vmem:[#allocation82_spill] sm:$0xff] }
 0x22d   : > { %3344 = vmatpush.msrb.mxu0 %v8388_v24  ;;  %3383 = vmatpush.msrb.mxu1 %v6631_v37  ;;  %v6921_v13 = vpop.f32.mrf.mxu2  ;;  %v8391_v37 = vand.u32 4294901760, %v6782_v8 }
 0x22f   : > { %3348 = vmatpush.msrb.mxu0 %v8389_v51  ;;  %3385 = vmatpush.msrb.mxu1 %v6641_v21  ;;  %v6927_v3 = vpop.f32.mrf.mxu3  ;;  %v8393_v21 = vld [vmem:[#allocation63_spill] sm:$0xff] }
 0x230   : > { %2849 = vmatmul.f32.gmra.mxu2 %v8345_v61 }
 0x231   : > { %3352 = vmatpush.msrb.mxu0 %v8390_v7  ;;  %3387 = vmatpush.msrb.mxu1 %v6668_v53  ;;  %v8395_v53 = vld [vmem:[#allocation71_spill] sm:$0xff]  ;;  %v8410_v7 = vld [vmem:[#allocation90_spill] sm:$0xff] }
 0x232   : > { %2917 = vmatmul.f32.gmra.mxu3 %v8345_v61 }
 0x233   : > { %3356 = vmatpush.msrb.mxu0 %v8391_v37  ;;  %3389 = vmatpush.msrb.mxu1 %v6685_v0  ;;  %v6943_v11 = vpop.f32.mrf.mxu0  ;;  %v8396_v0 = vld [vmem:[#allocation69_spill] sm:$0xff]  ;;  %v8411_v37 = vld [vmem:[#allocation88_spill] sm:$0xff] }
 0x234   : > { %2679 = vmatmul.f32.gmra.mxu0 %v8392_v16  ;;  %2757 = vmatmul.f32.gmra.mxu1 %v8393_v21  ;;  %v6941_v12 = vpop.f32.mrf.mxu1 }
 0x235   : > { %3391 = vmatpush.msrb.mxu1 %v6710_v36  ;;  %v6946_v26 = vpop.f32.mrf.mxu2 }
 0x237   : > { %3393 = vmatpush.msrb.mxu1 %v6726_v27  ;;  %v6950_v61 = vpop.f32.mrf.mxu3 }
 0x238   : > { %2853 = vmatmul.f32.gmra.mxu2 %v8347_v50  ;;  %8394 = vst [vmem:[#allocation17_spill] sm:$0xff] %v6950_v61 }
 0x239   : > { %3395 = vmatpush.msrb.mxu1 %v6740_v10  ;;  %v8399_v10 = vld [vmem:[#allocation78_spill] sm:$0xff] }
 0x23a   : > { %2921 = vmatmul.f32.gmra.mxu3 %v8347_v50  ;;  %v8400_v50 = vld [vmem:[#allocation75_spill] sm:$0xff] }
 0x23b   : > { %3397 = vmatpush.msrb.mxu1 %v6754_v39  ;;  %v6957_v8 = vpop.f32.mrf.mxu0 }
 0x23c   : > { %2684 = vmatmul.f32.gmra.mxu0 %v8395_v53  ;;  %2763 = vmatmul.f32.gmra.mxu1 %v8396_v0  ;;  %v6959_v36 = vpop.f32.mrf.mxu1  ;;  %v8415_v0 = vld [vmem:[#allocation94_spill] sm:$0xff] }
 0x23d   : > { %v6961_v57 = vpop.f32.mrf.mxu2 }
 0x23e   : > { %8397 = vst [vmem:[#allocation19_spill] sm:$0xff] %v6961_v57 }
 0x23f   : > { %v6964_v27 = vpop.f32.mrf.mxu3 }
 0x240   : > { %2857 = vmatmul.f32.gmra.mxu2 %v8349_v42  ;;  %8398 = vst [vmem:[#allocation26_spill] sm:$0xff] %v6964_v27 }
 0x242   : > { %2925 = vmatmul.f32.gmra.mxu3 %v8349_v42 }
 0x243   : > { %v6969_v39 = vpop.f32.mrf.mxu0 }
 0x244   : > { %2689 = vmatmul.f32.gmra.mxu0 %v8399_v10  ;;  %2769 = vmatmul.f32.gmra.mxu1 %v8400_v50  ;;  %v6971_v23 = vpop.f32.mrf.mxu1  ;;  %v8416_v10 = vld [vmem:[#allocation93_spill] sm:$0xff] }
 0x245   : > { %8401 = vst [vmem:[#allocation16_spill] sm:$0xff] %v6971_v23  ;;  %v6973_v49 = vpop.f32.mrf.mxu2 }
 0x246   : > { %8402 = vst [vmem:[#allocation21_spill] sm:$0xff] %v6973_v49 }
 0x247   : > { %v6976_v47 = vpop.f32.mrf.mxu3 }
 0x248   : > { %2861 = vmatmul.f32.gmra.mxu2 %v8352_v35  ;;  %8403 = vst [vmem:[#allocation23_spill] sm:$0xff] %v6976_v47 }
 0x24a   : > { %2929 = vmatmul.f32.gmra.mxu3 %v8352_v35 }
 0x24b   : > { %v6981_v42 = vpop.f32.mrf.mxu0 }
 0x24c   : > { %2694 = vmatmul.f32.gmra.mxu0 %v8404_v1  ;;  %2775 = vmatmul.f32.gmra.mxu1 %v8405_v52  ;;  %8406 = vst [vmem:[#allocation30_spill] sm:$0xff] %v6981_v42  ;;  %v6983_v24 = vpop.f32.mrf.mxu1  ;;  %v8486_v42 = vld [vmem:[#allocation89_spill] sm:$0xff] }
 0x24d   : > { %8407 = vst [vmem:[#allocation20_spill] sm:$0xff] %v6983_v24  ;;  %v6985_v51 = vpop.f32.mrf.mxu2 }
 0x24e   : > { %8408 = vst [vmem:[#allocation25_spill] sm:$0xff] %v6985_v51 }
 0x24f   : > { %v6988_v2 = vpop.f32.mrf.mxu3 }
 0x250   : > { %2865 = vmatmul.f32.gmra.mxu2 %v8357_v6  ;;  %8409 = vst [vmem:[#allocation27_spill] sm:$0xff] %v6988_v2 }
 0x252   : > { %2933 = vmatmul.f32.gmra.mxu3 %v8357_v6 }
 0x253   : > { %v6993_v35 = vpop.f32.mrf.mxu0 }
 0x254   : > { %2699 = vmatmul.f32.gmra.mxu0 %v8410_v7  ;;  %2781 = vmatmul.f32.gmra.mxu1 %v8411_v37  ;;  %v6995_v16 = vpop.f32.mrf.mxu1  ;;  %v8420_v7 = vld [vmem:[#allocation97_spill] sm:$0xff]  ;;  %v8421_v37 = vld [vmem:[#allocation96_spill] sm:$0xff] }
 0x255   : > { %8412 = vst [vmem:[#allocation34_spill] sm:$0xff] %v6995_v16  ;;  %v6997_v21 = vpop.f32.mrf.mxu2 }
 0x256   : > { %8413 = vst [vmem:[#allocation24_spill] sm:$0xff] %v6997_v21 }
 0x257   : > { %v7000_v53 = vpop.f32.mrf.mxu3 }
 0x258   : > { %2869 = vmatmul.f32.gmra.mxu2 %v5987_v31  ;;  %8414 = vst [vmem:[#allocation29_spill] sm:$0xff] %v7000_v53 }
 0x25a   : > { %2937 = vmatmul.f32.gmra.mxu3 %v5987_v31  ;;  %v3029_v31 = vld [vmem:[%s7977_s4] sm:$0xff] }
 0x25b   : > { %v7005_v6 = vpop.f32.mrf.mxu0  ;;  %v3052_v47 = vsel %vm3050_vm14, %v3029_v31, 0 }
 0x25c   : > { %2704 = vmatmul.f32.gmra.mxu0 %v8415_v0  ;;  %2787 = vmatmul.f32.gmra.mxu1 %v8416_v10  ;;  %v7007_v50 = vpop.f32.mrf.mxu1 }
 0x25d   : > { %8417 = vst [vmem:[#allocation31_spill] sm:$0xff] %v7007_v50  ;;  %v7009_v1 = vpop.f32.mrf.mxu2  ;;  %v8484_v50 = vld [vmem:[#allocation61_spill] sm:$0xff] }
 0x25e   : > { %8418 = vst [vmem:[#allocation38_spill] sm:$0xff] %v7009_v1 }
 0x25f   : > { %v7012_v52 = vpop.f32.mrf.mxu3 }
 0x260   : > { %2873 = vmatmul.f32.gmra.mxu2 %v6014_v55  ;;  %8419 = vst [vmem:[#allocation28_spill] sm:$0xff] %v7012_v52  ;;  %v8427_v52 = vld [vmem:[#allocation99_spill] sm:$0xff] }
 0x262   : > { %2941 = vmatmul.f32.gmra.mxu3 %v6014_v55  ;;  %v7028_v55 = vand.u32 4294901760, %v3052_v47 }
 0x264   : > { %2709 = vmatmul.f32.gmra.mxu0 %v8420_v7  ;;  %2793 = vmatmul.f32.gmra.mxu1 %v8421_v37  ;;  %8424 = vst [vmem:[#allocation42_spill] sm:$0xff] %v7028_v55  ;;  %v3030_v7 = vld [vmem:[%s7977_s4 + $0x8] sm:$0xff]  ;;  %v8426_v37 = vld [vmem:[#allocation101_spill] sm:$0xff]  ;;  %v7039_v31 = vsub.f32 %v3052_v47, %v7028_v55  ;;  %v3031_v47 = vld [vmem:[%s7977_s4 + $0x10] sm:$0xf] }
 0x265   : > { %v7020_v0 = vpop.f32.mrf.mxu0  ;;  %v7022_v10 = vpop.f32.mrf.mxu1  ;;  %v3055_v49 = vsel %vm3050_vm14, %v3030_v7, 0  ;;  %v8433_v7 = vld [vmem:[#allocation104_spill] sm:$0xff] }
 0x266   : > { %8422 = vst [vmem:[#allocation33_spill] sm:$0xff] %v7022_v10  ;;  %v7025_v53 = vpop.f32.mrf.mxu2  ;;  %v7052_v51 = vand.u32 4294901760, %v3055_v49 }
 0x267   : > { %8423 = vst [vmem:[#allocation35_spill] sm:$0xff] %v7025_v53 }
 0x268   : > { %2877 = vmatmul.f32.gmra.mxu2 %v6037_v56  ;;  %8428 = vst [vmem:[#allocation37_spill] sm:$0xff] %v7039_v31  ;;  %v7065_v1 = vsub.f32 %v3055_v49, %v7052_v51  ;;  %v8440_v49 = vld [vmem:[#allocation106_spill] sm:$0xff] }
 0x269   : > { %v7030_v2 = vpop.f32.mrf.mxu3  ;;  %8431 = vst [vmem:[#allocation36_spill] sm:$0xff] %v7052_v51 }
 0x26a   : > { %8425 = vst [vmem:[#allocation32_spill] sm:$0xff] %v7030_v2  ;;  %2945 = vmatmul.f32.gmra.mxu3 %v6037_v56  ;;  %v7050_v2 = vand.u32 4294901760, %v7039_v31  ;;  %v7072_v16 = vand.u32 4294901760, %v7065_v1 }
 0x26b   : > { %8435 = vst [vmem:[#allocation43_spill] sm:$0xff] %v7065_v1 }
 0x26c   : > { %2714 = vmatmul.f32.gmra.mxu0 %v8426_v37  ;;  %2799 = vmatmul.f32.gmra.mxu1 %v8427_v52  ;;  %8430 = vst [vmem:[#allocation46_spill] sm:$0xff] %v7050_v2  ;;  %v8434_v37 = vld [vmem:[#allocation103_spill] sm:$0xff]  ;;  %v3091_v53 = vsub.f32 %v7039_v31, %v7050_v2 }
 0x26d   : > { %8437 = vst [vmem:[#allocation40_spill] sm:$0xff] %v7072_v16 }
 0x26f   : > { %v7042_v27 = vpop.f32.mrf.mxu0  ;;  %v7044_v21 = vpop.f32.mrf.mxu1 }
 0x270   : > { %2881 = vmatmul.f32.gmra.mxu2 %v8282_v5  ;;  %v7047_v56 = vpop.f32.mrf.mxu2 }
 0x271   : > { %8429 = vst [vmem:[#allocation39_spill] sm:$0xff] %v7047_v56  ;;  %v3058_v56 = vsel %vm3050_vm14, %v3031_v47, 0  ;;  %vm3794_vm14 = vcmask 1043456  }
 0x272   : > { %2949 = vmatmul.f32.gmra.mxu3 %v8282_v5  ;;  %v7069_v5 = vand.u32 4294901760, %v3091_v53  ;;  %v3099_v53 = vsub.f32 %v7065_v1, %v7072_v16 }
 0x273   : > { %v7058_v52 = vpop.f32.mrf.mxu3 }
 0x274   : > { %8432 = vst [vmem:[#allocation41_spill] sm:$0xff] %v7058_v52  ;;  %2719 = vmatmul.f32.gmra.mxu0 %v8433_v7  ;;  %2805 = vmatmul.f32.gmra.mxu1 %v8434_v37  ;;  %v7074_v52 = vand.u32 4294901760, %v3058_v56  ;;  %v7093_v61 = vand.u32 4294901760, %v3099_v53 }
 0x275   : > { %8436 = vst [vmem:[#allocation50_spill] sm:$0xff] %v7069_v5 }
 0x276   : > { %8438 = vst [vmem:[#allocation45_spill] sm:$0xff] %v7074_v52  ;;  %v7088_v47 = vsub.f32 %v3058_v56, %v7074_v52 }
 0x277   : > { %8443 = vst [vmem:[#allocation49_spill] sm:$0xff] %v7093_v61 }
 0x278   : > { %2885 = vmatmul.f32.gmra.mxu2 %v6083_v29  ;;  %8441 = vst [vmem:[#allocation53_spill] sm:$0xff] %v7088_v47 }
 0x279   : > { %v7076_v7 = vpop.f32.mrf.mxu0  ;;  %v7078_v37 = vpop.f32.mrf.mxu1 }
 0x27a   : > { %2953 = vmatmul.f32.gmra.mxu3 %v6083_v29  ;;  %v7081_v23 = vpop.f32.mrf.mxu2  ;;  %v7096_v29 = vand.u32 4294901760, %v7088_v47 }
 0x27b   : > { %8439 = vst [vmem:[#allocation47_spill] sm:$0xff] %v7081_v23 }
 0x27c   : > { %2811 = vmatmul.f32.gmra.mxu1 %v8440_v49  ;;  %3093 = vmatmul.f32.vlgmr.msra.gmra.mxu0 %v7069_v5  ;;  %8444 = vst [vmem:[#allocation51_spill] sm:$0xff] %v7096_v29  ;;  %v3107_v56 = vsub.f32 %v7088_v47, %v7096_v29 }
 0x27d   : > { %v7090_v57 = vpop.f32.mrf.mxu3 }
 0x27e   : > { %8442 = vst [vmem:[#allocation44_spill] sm:$0xff] %v7090_v57 }
 0x280   : > { %3244 = vmatmul.f32.vlgmr.msra.gmra.mxu2 %v7039_v31  ;;  %v7112_v31 = vand.u32 4294901760, %v3107_v56 }
 0x281   : > { %v7098_v24 = vpop.f32.mrf.mxu0  ;;  %v7100_v49 = vpop.f32.mrf.mxu1 }
 0x282   : > { %3289 = vmatmul.f32.vlgmr.msra.gmra.mxu3 %v7050_v2  ;;  %v7103_v5 = vpop.f32.mrf.mxu2  ;;  %8446 = vst [vmem:[#allocation57_spill] sm:$0xff] %v7112_v31 }
 0x284   : > { %3101 = vmatmul.f32.gmra.mxu0 %v7093_v61  ;;  %3190 = vmatmul.f32.vlgmr.msra.gmra.mxu1 %v7028_v55 }
 0x285   : > { %v7109_v53 = vpop.f32.mrf.mxu3 }
 0x286   : > { %8445 = vst [vmem:[#allocation48_spill] sm:$0xff] %v7109_v53 }
 0x288   : > { %3249 = vmatmul.f32.gmra.mxu2 %v7065_v1 }
 0x289   : > { %v7114_v57 = vpop.f32.mrf.mxu0  ;;  %v7116_v23 = vpop.f32.mrf.mxu1 }
 0x28a   : > { %3295 = vmatmul.f32.gmra.mxu3 %v7072_v16  ;;  %v7119_v2 = vpop.f32.mrf.mxu2 }
 0x28c   : > { %3109 = vmatmul.f32.gmra.mxu0 %v7112_v31  ;;  %3194 = vmatmul.f32.gmra.mxu1 %v7052_v51 }
 0x28d   : > { %v7123_v61 = vpop.f32.mrf.mxu3 }
 0x28e   : > { %8447 = vst [vmem:[#allocation52_spill] sm:$0xff] %v7123_v61 }
 0x290   : > { %3254 = vmatmul.f32.gmra.mxu2 %v7088_v47 }
 0x291   : > { %v7126_v53 = vpop.f32.mrf.mxu0  ;;  %v7128_v56 = vpop.f32.mrf.mxu1 }
 0x292   : > { %8448 = vst [vmem:[#allocation62_spill] sm:$0xff] %v7126_v53  ;;  %3301 = vmatmul.f32.gmra.mxu3 %v7096_v29  ;;  %v7131_v1 = vpop.f32.mrf.mxu2 }
 0x293   : > { %8449 = vst [vmem:[#allocation68_spill] sm:$0xff] %v7128_v56 }
 0x294   : > { %8450 = vst [vmem:[#allocation59_spill] sm:$0xff] %v7131_v1  ;;  %3198 = vmatmul.f32.gmra.mxu1 %v7074_v52  ;;  %3358 = vmatmul.f32.vlgmr.msrb.gmra.mxu0 %v7028_v55 }
 0x295   : > { %v7135_v16 = vpop.f32.mrf.mxu3 }
 0x296   : > { %8451 = vst [vmem:[#allocation74_spill] sm:$0xff] %v7135_v16 }
 0x299   : > { %v7137_v31 = vpop.f32.mrf.mxu1  ;;  %v7139_v10 = vpop.f32.mrf.mxu0 }
 0x29a   : > { %8452 = vst [vmem:[#allocation64_spill] sm:$0xff] %v7137_v31  ;;  %v7141_v61 = vpop.f32.mrf.mxu2 }
 0x29b   : > { %8453 = vst [vmem:[#allocation81_spill] sm:$0xff] %v7139_v10 }
 0x29c   : > { %8454 = vst [vmem:[#allocation70_spill] sm:$0xff] %v7141_v61  ;;  %3362 = vmatmul.f32.gmra.mxu0 %v7052_v51  ;;  %3399 = vmatmul.f32.vlgmr.msrb.gmra.mxu1 %v7028_v55 }
 0x29d   : > { %v7145_v47 = vpop.f32.mrf.mxu3 }
 0x29e   : > { %8455 = vst [vmem:[#allocation87_spill] sm:$0xff] %v7145_v47 }
 0x2a1   : > { %v7147_v29 = vpop.f32.mrf.mxu0  ;;  %v7149_v53 = vpop.f32.mrf.mxu1 }
 0x2a2   : > { %8456 = vst [vmem:[#allocation76_spill] sm:$0xff] %v7147_v29  ;;  %v7151_v1 = vpop.f32.mrf.mxu2 }
 0x2a3   : > { %8457 = vst [vmem:[#allocation92_spill] sm:$0xff] %v7149_v53 }
 0x2a4   : > { %8458 = vst [vmem:[#allocation83_spill] sm:$0xff] %v7151_v1  ;;  %3366 = vmatmul.f32.gmra.mxu0 %v7074_v52  ;;  %3403 = vmatmul.f32.gmra.mxu1 %v7052_v51 }
 0x2a5   : > { %v7155_v16 = vpop.f32.mrf.mxu3 }
 0x2a6   : > { %8459 = vst [vmem:[#allocation95_spill] sm:$0xff] %v7155_v16 }
 0x2a9   : > { %v7157_v10 = vpop.f32.mrf.mxu0  ;;  %v7159_v61 = vpop.f32.mrf.mxu1 }
 0x2aa   : > { %8460 = vst [vmem:[#allocation98_spill] sm:$0xff] %v7157_v10 }
 0x2ab   : > { %8461 = vst [vmem:[#allocation102_spill] sm:$0xff] %v7159_v61  ;;  %v7161_v31 = vpop.f32.mrf.mxu2 }
 0x2ac   : > { %8462 = vst [vmem:[#allocation105_spill] sm:$0xff] %v7161_v31  ;;  %3407 = vmatmul.f32.gmra.mxu1 %v7074_v52 }
 0x2ad   : > { %v7164_v55 = vpop.f32.mrf.mxu3 }
 0x2ae   : > { %8463 = vst [vmem:[#allocation107_spill] sm:$0xff] %v7164_v55 }
 0x2b1   : > { %v7166_v29 = vpop.f32.mrf.mxu0  ;;  %v7168_v53 = vpop.f32.mrf.mxu1 }
 0x2b2   : > { %8464 = vst [vmem:[#allocation54_spill] sm:$0xff] %v7166_v29 }
 0x2b3   : > { %8465 = vst [vmem:[#allocation56_spill] sm:$0xff] %v7168_v53  ;;  %v7170_v1 = vpop.f32.mrf.mxu2 }
 0x2b4   : > { %8466 = vst [vmem:[#allocation55_spill] sm:$0xff] %v7170_v1 }
 0x2b5   : > { %v7172_v47 = vpop.f32.mrf.mxu3 }
 0x2b6   : > { %8467 = vst [vmem:[#allocation60_spill] sm:$0xff] %v7172_v47 }
 0x2b9   : > { %v7174_v51 = vpop.f32.mrf.mxu0  ;;  %v7176_v16 = vpop.f32.mrf.mxu1 }
 0x2ba   : > { %8468 = vst [vmem:[#allocation58_spill] sm:$0xff] %v7174_v51 }
 0x2bb   : > { %8469 = vst [vmem:[#allocation65_spill] sm:$0xff] %v7176_v16  ;;  %v7178_v10 = vpop.f32.mrf.mxu2  ;;  %v8480_v16 = vld [vmem:[#allocation67_spill] sm:$0xff] }
 0x2bc   : > { %8470 = vst [vmem:[#allocation63_spill] sm:$0xff] %v7178_v10  ;;  %v1873_v10 = vadd.f32 %v6870_v44, %v8480_v16  ;;  %v1809_v44 = vadd.f32 %v6604_v63, %v8486_v42  ;;  %v8487_v16 = vld [vmem:[#allocation91_spill] sm:$0xff]  ;;  %v8492_v63 = vld [vmem:[#allocation86_spill] sm:$0xff] }
 0x2bd   : > { %v7180_v61 = vpop.f32.mrf.mxu3  ;;  %v1841_v42 = vadd.f32 %v6815_v22, %v8492_v63 }
 0x2be   : > { %8471 = vst [vmem:[#allocation71_spill] sm:$0xff] %v7180_v61 }
 0x2c1   : > { %v7182_v31 = vpop.f32.mrf.mxu0  ;;  %v7184_v52 = vpop.f32.mrf.mxu1 }
 0x2c2   : > { %8472 = vst [vmem:[#allocation69_spill] sm:$0xff] %v7182_v31 }
 0x2c3   : > { %8473 = vst [vmem:[#allocation78_spill] sm:$0xff] %v7184_v52  ;;  %v7186_v55 = vpop.f32.mrf.mxu2  ;;  %v8483_v52 = vld [vmem:[#allocation77_spill] sm:$0xff] }
 0x2c4   : > { %8474 = vst [vmem:[#allocation75_spill] sm:$0xff] %v7186_v55  ;;  %v1865_v55 = vadd.f32 %v6858_v45, %v8483_v52  ;;  %v8489_v52 = vld [vmem:[#allocation66_spill] sm:$0xff] }
 0x2c5   : > { %v7188_v29 = vpop.f32.mrf.mxu3 }
 0x2c6   : > { %8475 = vst [vmem:[#allocation85_spill] sm:$0xff] %v7188_v29  ;;  %v1857_v29 = vadd.f32 %v6846_v18, %v8484_v50  ;;  %v1849_v18 = vadd.f32 %v6831_v48, %v8489_v52  ;;  %v2022_v50 = vadd.f32 %v6872_v28, %v1865_v55 }
 0x2c8   : > { %v2128_v22 = vadd.f32 %v6876_v59, %v2022_v50  ;;  %v8495_v59 = vld [vmem:[#allocation7_spill] sm:$0xff] }
 0x2c9   : > { %v7190_v53 = vpop.f32.mrf.mxu0  ;;  %v7192_v1 = vpop.f32.mrf.mxu1  ;;  %v8498_v50 = vld [vmem:[#allocation11_spill] sm:$0xff] }
 0x2ca   : > { %8476 = vst [vmem:[#allocation82_spill] sm:$0xff] %v7190_v53 }
 0x2cb   : > { %8477 = vst [vmem:[#allocation90_spill] sm:$0xff] %v7192_v1  ;;  %v7194_v47 = vpop.f32.mrf.mxu2  ;;  %v2026_v1 = vadd.f32 %v6892_v34, %v1873_v10  ;;  %v8490_v34 = vld [vmem:[#allocation79_spill] sm:$0xff] }
 0x2cc   : > { %8478 = vst [vmem:[#allocation88_spill] sm:$0xff] %v7194_v47  ;;  %v8485_v47 = vld [vmem:[#allocation80_spill] sm:$0xff]  ;;  %v1881_v10 = vadd.f32 %v6890_v54, %v8490_v34 }
 0x2cd   : > { %v7196_v51 = vpop.f32.mrf.mxu3  ;;  %v8499_v34 = vld [vmem:[#allocation8_spill] sm:$0xff] }
 0x2ce   : > { %8479 = vst [vmem:[#allocation94_spill] sm:$0xff] %v7196_v51  ;;  %v1801_v51 = vadd.f32 %v6591_v43, %v8485_v47  ;;  %v8491_v43 = vld [vmem:[#allocation84_spill] sm:$0xff] }
 0x2cf   : > { %v1833_v47 = vadd.f32 %v6773_v19, %v8491_v43  ;;  %v2014_v19 = vadd.f32 %v6848_v9, %v1849_v18  ;;  %v8494_v9 = vld [vmem:[#allocation10_spill] sm:$0xff] }
 0x2d1   : > { %v7200_v61 = vpop.f32.mrf.mxu0  ;;  %v7202_v31 = vpop.f32.mrf.mxu1 }
 0x2d2   : > { %8481 = vst [vmem:[#allocation93_spill] sm:$0xff] %v7200_v61  ;;  %v1817_v61 = vadd.f32 %v6646_v40, %v8487_v16  ;;  %v2018_v40 = vadd.f32 %v6860_v62, %v1857_v29  ;;  %v1994_v16 = vadd.f32 %v6648_v17, %v1809_v44  ;;  %v2030_v62 = vadd.f32 %v6916_v14, %v1881_v10  ;;  %v8496_v14 = vld [vmem:[#allocation5_spill] sm:$0xff]  ;;  %v8500_v10 = vld [vmem:[#allocation12_spill] sm:$0xff] }
 0x2d3   : > { %8482 = vst [vmem:[#allocation97_spill] sm:$0xff] %v7202_v31  ;;  %v7208_v53 = vpop.f32.mrf.mxu2  ;;  %v8488_v31 = vld [vmem:[#allocation72_spill] sm:$0xff] }
 0x2d4   : > { %v1825_v56 = vadd.f32 %v6719_v33, %v8488_v31  ;;  %v2133_v33 = vadd.f32 %v6897_v20, %v2026_v1  ;;  %v1990_v31 = vadd.f32 %v6606_v46, %v1801_v51  ;;  %v1998_v48 = vadd.f32 %v6721_v32, %v1817_v61 }
 0x2d5   : > { %v7219_v45 = vpop.f32.mrf.mxu3  ;;  %v2006_v20 = vadd.f32 %v6817_v58, %v1833_v47  ;;  %v2010_v46 = vadd.f32 %v6833_v15, %v1841_v42  ;;  %v2123_v17 = vadd.f32 %v6862_v41, %v2018_v40  ;;  %v2093_v29 = vadd.f32 %v8494_v9, %v1994_v16  ;;  %v8497_v15 = vld [vmem:[#allocation15_spill] sm:$0xff]  ;;  %v8501_v40 = vld [vmem:[#allocation100_spill] sm:$0xff]  ;;  %v8503_v16 = vld [vmem:[#allocation14_spill] sm:$0xff] }
 0x2d6   : > { %v2002_v28 = vadd.f32 %v6775_v30, %v1825_v56  ;;  %v2236_v32 = vadd.f32 %v6903_v38, %v2133_v33  ;;  %v8493_v30 = vld [vmem:[#allocation73_spill] sm:$0xff]  ;;  %v2088_v1 = vadd.f32 %v6616_v25, %v1990_v31  ;;  %v2098_v56 = vadd.f32 %v8495_v59, %v1998_v48  ;;  %v8502_v31 = vld [vmem:[#allocation6_spill] sm:$0xff] }
 0x2d7   : > { %v1889_v61 = vadd.f32 %v6914_v4, %v8493_v30  ;;  %v2118_v52 = vadd.f32 %v8497_v15, %v2014_v19  ;;  %v2230_v41 = vadd.f32 %v6881_v60, %v2128_v22  ;;  %v2138_v18 = vadd.f32 %v6921_v13, %v2030_v62  ;;  %v8504_v19 = vld [vmem:[#allocation9_spill] sm:$0xff]  ;;  %v8505_v62 = vld [vmem:[#allocation22_spill] sm:$0xff] }
 0x2d8   : > { %v2103_v44 = vadd.f32 %v8496_v14, %v2002_v28  ;;  %v2353_v38 = vadd.f32 %v7098_v24, %v2236_v32  ;;  %v2108_v4 = vadd.f32 %v8498_v50, %v2006_v20  ;;  %v2113_v25 = vadd.f32 %v8499_v34, %v2010_v46  ;;  %v8506_v46 = vld [vmem:[#allocation18_spill] sm:$0xff]  ;;  %v8514_v50 = vld [vmem:[#allocation52_spill] sm:$0xff]  ;;  %v8515_v34 = vld [vmem:[#allocation17_spill] sm:$0xff] }
 0x2d9   : > { %v7236_v55 = vpop.f32.mrf.mxu0  ;;  %v7238_v54 = vpop.f32.mrf.mxu1  ;;  %v2224_v43 = vadd.f32 %v8500_v10, %v2123_v17  ;;  %v2034_v47 = vadd.f32 %v6941_v12, %v1889_v61  ;;  %v2349_v63 = vadd.f32 %v7076_v7, %v2230_v41  ;;  %v2182_v33 = vadd.f32 %v8501_v40, %v2088_v1  ;;  %v8507_v17 = vld [vmem:[#allocation13_spill] sm:$0xff]  ;;  %v8509_v15 = vld [vmem:[#allocation30_spill] sm:$0xff]  ;;  %v8517_v10 = vld [vmem:[#allocation16_spill] sm:$0xff] }
 0x2da   : > { %v2434_v42 = vadd.f32 %v7116_v23, %v2353_v38  ;;  %v2188_v60 = vadd.f32 %v8502_v31, %v2093_v29  ;;  %v2194_v13 = vadd.f32 %v8503_v16, %v2098_v56  ;;  %v2200_v22 = vadd.f32 %v8504_v19, %v2103_v44  ;;  %v8508_v44 = vld [vmem:[#allocation68_spill] sm:$0xff]  ;;  %v8511_v41 = vld [vmem:[#allocation33_spill] sm:$0xff]  ;;  %v8519_v40 = vld [vmem:[#allocation39_spill] sm:$0xff] }
 0x2db   : > { %v7246_v51 = vpop.f32.mrf.mxu2  ;;  %v2345_v24 = vadd.f32 %v7042_v27, %v2224_v43  ;;  %v2218_v20 = vadd.f32 %v8505_v62, %v2118_v52  ;;  %v2242_v12 = vadd.f32 %v6927_v3, %v2138_v18  ;;  %v2430_v7 = vadd.f32 %v7100_v49, %v2349_v63  ;;  %v8510_v52 = vld [vmem:[#allocation31_spill] sm:$0xff]  ;;  %v8513_v38 = vld [vmem:[#allocation20_spill] sm:$0xff]  ;;  %v8518_v43 = vld [vmem:[#allocation34_spill] sm:$0xff] }
 0x2dc   : > { %v2206_v23 = vadd.f32 %v8506_v46, %v2108_v4  ;;  %v2212_v32 = vadd.f32 %v8507_v17, %v2113_v25  ;;  %v2317_v30 = vadd.f32 %v6943_v11, %v2182_v33  ;;  %v2143_v27 = vadd.f32 %v6946_v26, %v2034_v47  ;;  %v8512_v18 = vld [vmem:[#allocation47_spill] sm:$0xff]  ;;  %v8520_v31 = vld [vmem:[#allocation48_spill] sm:$0xff]  ;;  %v8522_v19 = vld [vmem:[#allocation38_spill] sm:$0xff] }
 0x2dd   : > { %v7255_v58 = vpop.f32.mrf.mxu3  ;;  %v2426_v61 = vadd.f32 %v7078_v37, %v2345_v24  ;;  %v2341_v9 = vadd.f32 %v7020_v0, %v2218_v20  ;;  %v2357_v29 = vadd.f32 %v7114_v57, %v2242_v12  ;;  %v2542_v59 = vadd.f32 %v7119_v2, %v2434_v42  ;;  %v8516_v25 = vld [vmem:[#allocation19_spill] sm:$0xff]  ;;  %v8524_v12 = vld [vmem:[#allocation44_spill] sm:$0xff]  ;;  %v8525_v46 = vld [vmem:[#allocation62_spill] sm:$0xff] }
 0x2de   : > { %v2321_v3 = vadd.f32 %v6957_v8, %v2188_v60  ;;  %v2398_v49 = vadd.f32 %v6959_v36, %v2317_v30  ;;  %v2333_v56 = vadd.f32 %v6993_v35, %v2206_v23  ;;  %v2337_v14 = vadd.f32 %v7005_v6, %v2212_v32  ;;  %v8521_v16 = vld [vmem:[#allocation59_spill] sm:$0xff]  ;;  %v8526_v32 = vld [vmem:[#allocation25_spill] sm:$0xff] }
 0x2df   : > { %v2325_v37 = vadd.f32 %v6969_v39, %v2194_v13  ;;  %v2422_v26 = vadd.f32 %v7044_v21, %v2341_v9  ;;  %v2534_v0 = vadd.f32 %v7103_v5, %v2430_v7  ;;  %v2438_v57 = vadd.f32 %v8508_v44, %v2357_v29  ;;  %v8523_v62 = vld [vmem:[#allocation35_spill] sm:$0xff]  ;;  %v8527_v9 = vld [vmem:[#allocation24_spill] sm:$0xff]  ;;  %v8532_v44 = vld [vmem:[#allocation74_spill] sm:$0xff] }
 0x2e0   : > { %v2329_v2 = vadd.f32 %v8509_v15, %v2200_v22  ;;  %v2414_v8 = vadd.f32 %v8510_v52, %v2333_v56  ;;  %v2418_v36 = vadd.f32 %v8511_v41, %v2337_v14  ;;  %v2526_v35 = vadd.f32 %v8512_v18, %v2426_v61  ;;  %v8530_v14 = vld [vmem:[#allocation26_spill] sm:$0xff] }
 0x2e1   : > { %v2710_v48 = vpop.f32.mrf.mxu0  ;;  %v2794_v28 = vpop.f32.mrf.mxu1  ;;  %v2406_v6 = vadd.f32 %v8513_v38, %v2325_v37  ;;  %v2630_v4 = vadd.f32 %v8514_v50, %v2542_v59  ;;  %v2248_v39 = vadd.f32 %v8515_v34, %v2143_v27  ;;  %v2470_v21 = vadd.f32 %v8516_v25, %v2398_v49  ;;  %v8528_v59 = vld [vmem:[#allocation64_spill] sm:$0xff]  ;;  %v8529_v49 = vld [vmem:[#allocation93_spill] sm:$0xff] }
 0x2e2   : > { %v2402_v5 = vadd.f32 %v8517_v10, %v2321_v3  ;;  %v2410_v47 = vadd.f32 %v8518_v43, %v2329_v2  ;;  %v2518_v33 = vadd.f32 %v8519_v40, %v2422_v26  ;;  %v2626_v60 = vadd.f32 %v8520_v31, %v2534_v0  ;;  %v8531_v26 = vld [vmem:[#allocation41_spill] sm:$0xff]  ;;  %v8540_v43 = vld [vmem:[#allocation58_spill] sm:$0xff] }
 0x2e3   : > { %v2874_v1 = vpop.f32.mrf.mxu2  ;;  %v2550_v13 = vadd.f32 %v8521_v16, %v2438_v57  ;;  %v2711_v24 = vadd.f32 %v2710_v48, %v2630_v4  ;;  %v2502_v22 = vadd.f32 %v8522_v19, %v2414_v8  ;;  %v2510_v20 = vadd.f32 %v8523_v62, %v2418_v36  ;;  %v8533_v2 = vld [vmem:[#allocation21_spill] sm:$0xff]  ;;  %v8534_v8 = vld [vmem:[#allocation28_spill] sm:$0xff]  ;;  %v8546_v62 = vld [vmem:[#allocation90_spill] sm:$0xff] }
 0x2e4   : > { %v2622_v7 = vadd.f32 %v8524_v12, %v2526_v35  ;;  %v2361_v23 = vadd.f32 %v8525_v46, %v2248_v39  ;;  %v2486_v30 = vadd.f32 %v8526_v32, %v2406_v6  ;;  %v2706_v61 = vadd.f32 %v7236_v55, %v2626_v60  ;;  %v8535_v55 = vld [vmem:[#allocation32_spill] sm:$0xff]  ;;  %v8536_v35 = vld [vmem:[#allocation27_spill] sm:$0xff]  ;;  %v8537_v6 = vld [vmem:[#allocation82_spill] sm:$0xff] }
 0x2e5   : > { %v7287_v11 = vpop.f32.mrf.mxu3  ;;  %v2494_v29 = vadd.f32 %v8527_v9, %v2410_v47  ;;  %v2594_v37 = vadd.f32 %v8530_v14, %v2470_v21  ;;  %v2618_v0 = vadd.f32 %v8531_v26, %v2518_v33  ;;  %v2634_v57 = vadd.f32 %v8532_v44, %v2550_v13  ;;  %v8538_v39 = vld [vmem:[#allocation29_spill] sm:$0xff]  ;;  %v8539_v21 = vld [vmem:[#allocation70_spill] sm:$0xff]  ;;  %v8547_v46 = vld [vmem:[#allocation23_spill] sm:$0xff] }
 0x2e6   : > { %v2442_v3 = vadd.f32 %v8528_v59, %v2361_v23  ;;  %v2701_v48 = vadd.f32 %v8529_v49, %v2622_v7  ;;  %v2795_v15 = vadd.f32 %v2794_v28, %v2706_v61  ;;  %v2478_v52 = vadd.f32 %v8533_v2, %v2402_v5  ;;  %v8541_v47 = vld [vmem:[#allocation69_spill] sm:$0xff] }
 0x2e7   : > { %v2610_v41 = vadd.f32 %v8534_v8, %v2502_v22  ;;  %v2614_v36 = vadd.f32 %v8535_v55, %v2510_v20  ;;  %v2602_v38 = vadd.f32 %v8536_v35, %v2486_v30  ;;  %v2696_v50 = vadd.f32 %v8537_v6, %v2618_v0  ;;  %v8542_v33 = vld [vmem:[#allocation81_spill] sm:$0xff]  ;;  %v8548_v30 = vld [vmem:[#allocation87_spill] sm:$0xff]  ;;  %v8553_v0 = vld [vmem:[#allocation56_spill] sm:$0xff] }
 0x2e8   : > { %v2789_v18 = vadd.f32 %v7238_v54, %v2701_v48  ;;  %v2606_v25 = vadd.f32 %v8538_v39, %v2494_v29  ;;  %v2558_v10 = vadd.f32 %v8539_v21, %v2442_v3  ;;  %v2666_v31 = vadd.f32 %v8542_v33, %v2594_v37  ;;  %v8543_v60 = vld [vmem:[#allocation97_spill] sm:$0xff]  ;;  %v8550_v29 = vld [vmem:[#allocation98_spill] sm:$0xff]  ;;  %v8552_v48 = vld [vmem:[#allocation76_spill] sm:$0xff] }
 0x2e9   : > { %v2715_v63 = vpop.f32.mrf.mxu0  ;;  %v2800_v42 = vpop.f32.mrf.mxu1  ;;  %v2686_v28 = vadd.f32 %v8540_v43, %v2610_v41  ;;  %v2691_v5 = vadd.f32 %v8541_v47, %v2614_v36  ;;  %v2783_v54 = vadd.f32 %v8543_v60, %v2696_v50  ;;  %v2875_v16 = vadd.f32 %v2874_v1, %v2795_v15  ;;  %v8551_v59 = vld [vmem:[#allocation65_spill] sm:$0xff]  ;;  %v8555_v15 = vld [vmem:[#allocation88_spill] sm:$0xff]  ;;  %v8556_v36 = vld [vmem:[#allocation83_spill] sm:$0xff] }
 0x2ea   : > { %v2801_v27 = vadd.f32 %v2800_v42, %v2711_v24  ;;  %v2716_v4 = vadd.f32 %v2715_v63, %v2634_v57  ;;  %v8544_v24 = vld [vmem:[#allocation54_spill] sm:$0xff]  ;;  %v2871_v12 = vadd.f32 %v7246_v51, %v2789_v18  ;;  %v2598_v23 = vadd.f32 %v8547_v46, %v2478_v52 }
 0x2eb   : > { %v2878_v17 = vpop.f32.mrf.mxu2  ;;  %v2681_v19 = vadd.f32 %v8544_v24, %v2606_v25  ;;  %v8545_v63 = vld [vmem:[#allocation78_spill] sm:$0xff]  ;;  %v2777_v20 = vadd.f32 %v8546_v62, %v2691_v5  ;;  %v2638_v61 = vadd.f32 %v8548_v30, %v2558_v10  ;;  %v2676_v1 = vadd.f32 %v8550_v29, %v2602_v38  ;;  %v8560_v10 = vld [vmem:[#allocation85_spill] sm:$0xff]  ;;  %v8564_v24 = vld [vmem:[#allocation71_spill] sm:$0xff] }
 0x2ec   : > { %v2879_v34 = vadd.f32 %v2878_v17, %v2801_v27  ;;  %v2771_v22 = vadd.f32 %v8545_v63, %v2686_v28  ;;  %v8549_v27 = vld [vmem:[#allocation92_spill] sm:$0xff]  ;;  %v2671_v14 = vadd.f32 %v8552_v48, %v2598_v23  ;;  %v2867_v37 = vadd.f32 %v7208_v53, %v2783_v54  ;;  %v8557_v35 = vld [vmem:[#allocation102_spill] sm:$0xff]  ;;  %v8558_v53 = vld [vmem:[#allocation63_spill] sm:$0xff] }
 0x2ed   : > { %v2946_v56 = vpop.f32.mrf.mxu3  ;;  %v2747_v9 = vadd.f32 %v8549_v27, %v2666_v31  ;;  %v2765_v3 = vadd.f32 %v8551_v59, %v2681_v19  ;;  %v2943_v51 = vadd.f32 %v7287_v11, %v2875_v16  ;;  %v2759_v44 = vadd.f32 %v8553_v0, %v2676_v1  ;;  %v8561_v47 = vld [vmem:[#allocation94_spill] sm:$0xff]  ;;  %v8562_v31 = vld [vmem:[#allocation95_spill] sm:$0xff]  ;;  %v8563_v54 = vld [vmem:[#allocation105_spill] sm:$0xff] }
 0x2ee   : > { %v2947_v17 = vadd.f32 %v2946_v56, %v2879_v34  ;;  %v8554_v56 = vld [vmem:[#allocation75_spill] sm:$0xff]  ;;  %v2863_v2 = vadd.f32 %v8555_v15, %v2777_v20  ;;  %v2939_v52 = vadd.f32 %v7255_v58, %v2871_v12  ;;  %v2753_v38 = vadd.f32 %v8557_v35, %v2671_v14  ;;  %v8565_v20 = vld [vmem:[#allocation60_spill] sm:$0xff] }
 0x2ef   : > { %v2859_v57 = vadd.f32 %v8554_v56, %v2771_v22  ;;  %v2843_v18 = vadd.f32 %v8556_v36, %v2747_v9  ;;  %v2855_v6 = vadd.f32 %v8558_v53, %v2765_v3  ;;  %v2998_v34 = vmul.f32 0.01, %v2943_v51  ;;  %v8559_v58 = vld [vmem:[#allocation55_spill] sm:$0xff] }
 0x2f0   : > { %v3000_v8 = vmul.f32 0.01, %v2947_v17  ;;  %vm2976_vm0 = vcmp.gt.f32.partialorder %v2947_v17, 0.0  ;;  %v2851_v21 = vadd.f32 %v8559_v58, %v2759_v44  ;;  %vm2974_vm1 = vcmp.gt.f32.partialorder %v2943_v51, 0.0  ;;  %v8566_v29 = vld [vmem:[#allocation107_spill] sm:$0xff] }
 0x2f1   : > { %v2720_v42 = vpop.f32.mrf.mxu0  ;;  %v2806_v40 = vpop.f32.mrf.mxu1  ;;  %v2927_v43 = vadd.f32 %v8560_v10, %v2859_v57  ;;  %v2931_v5 = vadd.f32 %v8561_v47, %v2863_v2  ;;  %v7356_v60 = vadd.f32 %v8562_v31, %v2843_v18  ;;  %v2847_v16 = vadd.f32 %v8563_v54, %v2753_v38 }
 0x2f2   : > { %v2807_v13 = vadd.f32 %v2806_v40, %v2716_v4  ;;  %v2721_v41 = vadd.f32 %v2720_v42, %v2638_v61  ;;  %v2935_v4 = vadd.f32 %v7219_v45, %v2867_v37  ;;  %v2996_v42 = vmul.f32 0.01, %v2939_v52 }
 0x2f3   : > { %v2882_v7 = vpop.f32.mrf.mxu2  ;;  %v3024_v40 = vsel %vm2976_vm0, %v2947_v17, %v3000_v8  ;;  %vm2972_vm2 = vcmp.gt.f32.partialorder %v2939_v52, 0.0  ;;  %v2923_v19 = vadd.f32 %v8564_v24, %v2855_v6  ;;  %v3022_v22 = vsel %vm2974_vm1, %v2943_v51, %v2998_v34 }
 0x2f4   : > { %v2883_v32 = vadd.f32 %v2882_v7, %v2807_v13  ;;  %v2994_v63 = vmul.f32 0.01, %v2935_v4  ;;  %v2919_v12 = vadd.f32 %v8565_v20, %v2851_v21  ;;  %v2990_v7 = vmul.f32 0.01, %v2927_v43 }
 0x2f5   : > { %v2950_v49 = vpop.f32.mrf.mxu3  ;;  %vm2970_vm3 = vcmp.gt.f32.partialorder %v2935_v4, 0.0  ;;  %v7363_v46 = vand.u32 4294901760, %v3024_v40  ;;  %v2992_v23 = vmul.f32 0.01, %v2931_v5  ;;  %v3020_v17 = vsel %vm2972_vm2, %v2939_v52, %v2996_v42 }
 0x2f6   : > { %v2951_v26 = vadd.f32 %v2950_v49, %v2883_v32  ;;  %vm2966_vm5 = vcmp.gt.f32.partialorder %v2927_v43, 0.0  ;;  %vm2968_vm6 = vcmp.gt.f32.partialorder %v2931_v5, 0.0  ;;  %v7365_v30 = vand.u32 4294901760, %v3022_v22 }
 0x2f7   : > { %v2915_v1 = vadd.f32 %v8566_v29, %v2847_v16  ;;  %v2988_v59 = vmul.f32 0.01, %v2923_v19  ;;  %v3018_v3 = vsel %vm2970_vm3, %v2935_v4, %v2994_v63  ;;  %vm2964_vm7 = vcmp.gt.f32.partialorder %v2923_v19, 0.0 }
 0x2f8   : > { %vm2978_vm15 = vcmp.gt.f32.partialorder %v2951_v26, 0.0  ;;  %v3002_v55 = vmul.f32 0.01, %v2951_v26  ;;  %v7375_v48 = vand.u32 4294901760, %v3020_v17  ;;  %v7380_v37 = vsub.f32 %v3024_v40, %v7363_v46 }
 0x2f9   : > { %v2812_v11 = vpop.f32.mrf.mxu1  ;;  %v7349_v50 = vpop.f32.mrf.mxu0  ;;  %vm2962_vm8 = vcmp.gt.f32.partialorder %v2919_v12, 0.0  ;;  %v2986_v51 = vmul.f32 0.01, %v2919_v12  ;;  %v3016_v0 = vsel %vm2968_vm6, %v2931_v5, %v2992_v23  ;;  %v7384_v44 = vand.u32 4294901760, %v3018_v3 }
 0x2fa   : > { %v3026_v39 = vsel %vm2978_vm15, %v2951_v26, %v3002_v55  ;;  %v2813_v25 = vadd.f32 %v2812_v11, %v2721_v41  ;;  %v3014_v26 = vsel %vm2966_vm5, %v2927_v43, %v2990_v7  ;;  %v7392_v57 = vsub.f32 %v3022_v22, %v7365_v30 }
 0x2fb   : > { %v2886_v28 = vpop.f32.mrf.mxu2  ;;  %v7359_v45 = vand.u32 4294901760, %v3026_v39  ;;  %vm2960_vm9 = vcmp.gt.f32.partialorder %v2915_v1, 0.0  ;;  %v2984_v2 = vmul.f32 0.01, %v2915_v1  ;;  %v3012_v52 = vsel %vm2964_vm7, %v2923_v19, %v2988_v59 }
 0x2fc   : > { %v2887_v33 = vadd.f32 %v2886_v28, %v2813_v25  ;;  %v7396_v8 = vand.u32 4294901760, %v3016_v0  ;;  %v7402_v55 = vsub.f32 %v3020_v17, %v7375_v48  ;;  %v3482_v36 = vand.u32 4294901760, %v7380_v37 }
 0x2fd   : > { %v2954_v13 = vpop.f32.mrf.mxu3  ;;  %v7372_v9 = vsub.f32 %v3026_v39, %v7359_v45  ;;  %vm2958_vm10 = vcmp.gt.f32.partialorder %v7356_v60, 0.0  ;;  %v2982_v18 = vmul.f32 0.01, %v7356_v60  ;;  %v3010_v35 = vsel %vm2962_vm8, %v2919_v12, %v2986_v51 }
 0x2fe   : > { %v2955_v62 = vadd.f32 %v2954_v13, %v2887_v33  ;;  %v7408_v38 = vand.u32 4294901760, %v3014_v26  ;;  %v7424_v34 = vsub.f32 %v3018_v3, %v7384_v44  ;;  %v3488_v39 = vand.u32 4294901760, %v7392_v57 }
 0x2ff   : > { %v3476_v15 = vand.u32 4294901760, %v7372_v9  ;;  %v3008_v25 = vsel %vm2960_vm9, %v2915_v1, %v2984_v2  ;;  %v7428_v58 = vand.u32 4294901760, %v3012_v52  ;;  %v3483_v43 = vsub.f32 %v7380_v37, %v3482_v36  ;;  %v7493_v1 = vpop.permute.xlu1 %3042 }
 0x300   : > { %vm2980_vm4 = vcmp.gt.f32.partialorder %v2955_v62, 0.0  ;;  %v3004_v32 = vmul.f32 0.01, %v2955_v62  ;;  %v7439_v28 = vsub.f32 %v3016_v0, %v7396_v8  ;;  %v3494_v47 = vand.u32 4294901760, %v7402_v55 }
 0x301   : > { %v7367_v61 = vpop.f32.mrf.mxu0  ;;  %v7369_v27 = vpop.f32.mrf.mxu1  ;;  %v3477_v4 = vsub.f32 %v7372_v9, %v3476_v15  ;;  %v3006_v5 = vsel %vm2958_vm10, %v7356_v60, %v2982_v18  ;;  %v7445_v42 = vand.u32 4294901760, %v3010_v35  ;;  %v3489_v33 = vsub.f32 %v7392_v57, %v3488_v39 }
 0x302   : > { %v3028_v49 = vsel %vm2980_vm4, %v2955_v62, %v3004_v32  ;;  %v7453_v31 = vsub.f32 %v3014_v26, %v7408_v38  ;;  %v3500_v54 = vand.u32 4294901760, %v7424_v34  ;;  %v7456_v16 = vand.u32 4294901760, %v3008_v25  ;;  %v7486_v32 = vpop.permute.xlu2 %3037 }
 0x303   : > { %v7377_v14 = vand.u32 4294901760, %v3028_v49  ;;  %v7431_v21 = vpop.f32.mrf.mxu2  ;;  %v3478_v40 = vand.u32 4294901760, %v3477_v4  ;;  %v3484_v13 = vand.u32 4294901760, %v3483_v43  ;;  %v3495_v24 = vsub.f32 %v7402_v55, %v3494_v47 }
 0x304   : > { %v7467_v19 = vsub.f32 %v3012_v52, %v7428_v58  ;;  %v3506_v63 = vand.u32 4294901760, %v7439_v28  ;;  %v7470_v22 = vand.u32 4294901760, %v3006_v5  ;;  %v3490_v12 = vand.u32 4294901760, %v3489_v33 }
 0x305   : > { %v7387_v56 = vsub.f32 %v3028_v49, %v7377_v14  ;;  %3416 = vmatpush.msrb.mxu2 %v7377_v14  ;;  %3614 = vmatpush.msra.mxu1 %v7377_v14  ;;  %v7460_v60 = vpop.f32.mrf.mxu3  ;;  %v3501_v7 = vsub.f32 %v7424_v34, %v3500_v54  ;;  %v7483_v23 = vsub.f32 %v3010_v35, %v7445_v42  ;;  %v3512_v17 = vand.u32 4294901760, %v7453_v31 }
 0x306   : > { %v7491_v29 = vsub.f32 %v3008_v25, %v7456_v16  ;;  %v3095_v59 = vadd.f32 %v7349_v50, %v7486_v32  ;;  %v3496_v3 = vand.u32 4294901760, %v3495_v24  ;;  %v3507_v49 = vsub.f32 %v7439_v28, %v3506_v63 }
 0x307   : > { %3418 = vmatpush.msrb.mxu2 %v7359_v45  ;;  %3559 = vmatpush.msra.mxu0 %v7387_v56  ;;  %v3470_v41 = vand.u32 4294901760, %v7387_v56  ;;  %v3518_v51 = vand.u32 4294901760, %v7467_v19  ;;  %v3103_v26 = vadd.f32 %v7367_v61, %v7493_v1  ;;  %v7507_v0 = vsub.f32 %v3006_v5, %v7470_v22 }
 0x308   : > { %3616 = vmatpush.msra.mxu1 %v7359_v45  ;;  %v3192_v50 = vadd.f32 %v7369_v27, %v3095_v59  ;;  %v3502_v52 = vand.u32 4294901760, %v3501_v7  ;;  %v3513_v18 = vsub.f32 %v7453_v31, %v3512_v17  ;;  %v3524_v61 = vand.u32 4294901760, %v7483_v23 }
 0x309   : > { %v7411_v53 = vpop.f32.mrf.mxu0  ;;  %v7413_v6 = vpop.f32.mrf.mxu1  ;;  %3420 = vmatpush.msrb.mxu2 %v7363_v46  ;;  %3562 = vmatpush.msra.mxu0 %v7372_v9  ;;  %v3471_v11 = vsub.f32 %v7387_v56, %v3470_v41  ;;  %v3508_v27 = vand.u32 4294901760, %v3507_v49  ;;  %v3530_v4 = vand.u32 4294901760, %v7491_v29  ;;  %v8570_v9 = vld [vmem:[#allocation42_spill] sm:$0xff]  ;;  %vm3790_vm15 = vcmask 162816  }
 0x30a   : > { %3618 = vmatpush.msra.mxu1 %v7363_v46  ;;  %v3196_v35 = vadd.f32 %v7413_v6, %v3103_v26  ;;  %v3246_v6 = vadd.f32 %v7431_v21, %v3192_v50  ;;  %v3514_v43 = vand.u32 4294901760, %v3513_v18  ;;  %v3525_v5 = vsub.f32 %v7483_v23, %v3524_v61  ;;  %v8568_v18 = vld [vmem:[#allocation37_spill] sm:$0xff] }
 0x30b   : > { %3422 = vmatpush.msrb.mxu2 %v7365_v30  ;;  %3565 = vmatpush.msra.mxu0 %v7380_v37  ;;  %v3472_v10 = vand.u32 4294901760, %v3471_v11  ;;  %v3250_v2 = vpop.f32.mrf.mxu2  ;;  %v3519_v11 = vsub.f32 %v7467_v19, %v3518_v51  ;;  %vm4150_vm3 = vcmask 1040384   ;;  %vm4152_vm4 = vcmask 24576  }
 0x30c   : > { %3620 = vmatpush.msra.mxu1 %v7365_v30  ;;  %v3251_v33 = vadd.f32 %v3250_v2, %v3196_v35  ;;  %v3291_v59 = vadd.f32 %v7460_v60, %v3246_v6  ;;  %v3526_v49 = vand.u32 4294901760, %v3525_v5  ;;  %vm4185_vm5 = vcmask 31744  }
 0x30d   : > { %3424 = vmatpush.msrb.mxu2 %v7375_v48  ;;  %3473 = vmatpush.msrb.mxu3 %v3472_v10  ;;  %v3296_v25 = vpop.f32.mrf.mxu3  ;;  %v3520_v24 = vand.u32 4294901760, %v3519_v11  ;;  %vm4683_vm6 = vcmask 97280  }
 0x30e   : > { %3568 = vmatpush.msra.mxu0 %v7392_v57  ;;  %3622 = vmatpush.msra.mxu1 %v7375_v48  ;;  %v3297_v50 = vadd.f32 %v3296_v25, %v3251_v33 }
 0x30f   : > { %3426 = vmatpush.msrb.mxu2 %v7384_v44  ;;  %3479 = vmatpush.msrb.mxu3 %v3478_v40  ;;  %v3536_v40 = vand.u32 4294901760, %v7507_v0 }
 0x310   : > { %3571 = vmatpush.msra.mxu0 %v7402_v55  ;;  %3624 = vmatpush.msra.mxu1 %v7384_v44 }
 0x311   : > { %v7474_v62 = vpop.f32.mrf.mxu1  ;;  %v7476_v20 = vpop.f32.mrf.mxu0  ;;  %3428 = vmatpush.msrb.mxu2 %v7396_v8  ;;  %3485 = vmatpush.msrb.mxu3 %v3484_v13  ;;  %v3537_v26 = vsub.f32 %v7507_v0, %v3536_v40 }
 0x312   : > { %3574 = vmatpush.msra.mxu0 %v7424_v34  ;;  %3626 = vmatpush.msra.mxu1 %v7396_v8  ;;  %v7533_v13 = vpop.permute.xlu0 %3047  ;;  %v8574_v34 = vld [vmem:[#allocation36_spill] sm:$0xff] }
 0x313   : > { %3430 = vmatpush.msrb.mxu2 %v7408_v38  ;;  %3491 = vmatpush.msrb.mxu3 %v3490_v12  ;;  %v3531_v12 = vsub.f32 %v7491_v29, %v3530_v4  ;;  %v3111_v7 = vadd.f32 %v7411_v53, %v7533_v13  ;;  %v3360_v53 = vadd.f32 %v7476_v20, %v3291_v59  ;;  %v3538_v56 = vand.u32 4294901760, %v3537_v26 }
 0x314   : > { %3577 = vmatpush.msra.mxu0 %v7439_v28  ;;  %3628 = vmatpush.msra.mxu1 %v7408_v38 }
 0x315   : > { %3432 = vmatpush.msrb.mxu2 %v7428_v58  ;;  %3497 = vmatpush.msrb.mxu3 %v3496_v3  ;;  %v8567_v3 = vld [vmem:[#allocation50_spill] sm:$0xff]  ;;  %v3200_v2 = vadd.f32 %v7474_v62, %v3111_v7  ;;  %v3532_v60 = vand.u32 4294901760, %v3531_v12  ;;  %v3302_v6 = vpop.f32.mrf.mxu3  ;;  %v3780_v12 = vld [vmem:[%s7979_s6] sm:$0x1] }
 0x316   : > { %3580 = vmatpush.msra.mxu0 %v7453_v31  ;;  %3630 = vmatpush.msra.mxu1 %v7428_v58  ;;  %v3792_v7 = vsel %vm3790_vm15, %v3780_v12, 0 }
 0x317   : > { %3434 = vmatpush.msrb.mxu2 %v7445_v42  ;;  %3503 = vmatpush.msrb.mxu3 %v3502_v52  ;;  %v3255_v52 = vpop.f32.mrf.mxu2  ;;  %v7608_v59 = vand.u32 4294901760, %v3792_v7 }
 0x318   : > { %3583 = vmatpush.msra.mxu0 %v7467_v19  ;;  %3632 = vmatpush.msra.mxu1 %v7445_v42 }
 0x319   : > { %v3400_v10 = vpop.f32.mrf.mxu1  ;;  %3436 = vmatpush.msrb.mxu2 %v7456_v16  ;;  %3509 = vmatpush.msrb.mxu3 %v3508_v27  ;;  %v3363_v21 = vpop.f32.mrf.mxu0  ;;  %v8569_v27 = vld [vmem:[#allocation46_spill] sm:$0xff] }
 0x31a   : > { %3586 = vmatpush.msra.mxu0 %v7483_v23  ;;  %3634 = vmatpush.msra.mxu1 %v7456_v16  ;;  %v3364_v35 = vadd.f32 %v3363_v21, %v3297_v50  ;;  %v3401_v11 = vadd.f32 %v3400_v10, %v3360_v53  ;;  %v8571_v10 = vld [vmem:[#allocation49_spill] sm:$0xff] }
 0x31b   : > { %3438 = vmatpush.msrb.mxu2 %v7470_v22  ;;  %3515 = vmatpush.msrb.mxu3 %v3514_v43 }
 0x31c   : > { %3589 = vmatpush.msra.mxu0 %v7491_v29  ;;  %3636 = vmatpush.msra.mxu1 %v7470_v22  ;;  %vm3762_vm12 = vcmp.gt.f32.partialorder %v3401_v11, 0.0 }
 0x31d   : > { %3444 = vmatmul.f32.vlgmr.msrb.gmra.mxu2 %v8567_v3  ;;  %3521 = vmatpush.msrb.mxu3 %v3520_v24 }
 0x31e   : > { %3663 = vmatpush.msra.mxu2 %v3470_v41  ;;  %3592 = vmatpush.msra.mxu0 %v7507_v0  ;;  %v3256_v41 = vadd.f32 %v3255_v52, %v3200_v2 }
 0x31f   : > { %3527 = vmatpush.msrb.mxu3 %v3526_v49  ;;  %3595 = vmatmul.f32.vlgmr.msra.gmra.mxu0 %v8568_v18  ;;  %v7612_v49 = vsub.f32 %v3792_v7, %v7608_v59 }
 0x320   : > { %3667 = vmatpush.msra.mxu2 %v3476_v15  ;;  %3640 = vmatmul.f32.vlgmr.msra.gmra.mxu1 %v8569_v27  ;;  %v3768_v15 = vmul.f32 0.01, %v3401_v11  ;;  %v3303_v5 = vadd.f32 %v3302_v6, %v3256_v41 }
 0x321   : > { %v3404_v62 = vpop.f32.mrf.mxu1  ;;  %3533 = vmatpush.msrb.mxu3 %v3532_v60  ;;  %v3367_v43 = vpop.f32.mrf.mxu0  ;;  %v7615_v26 = vand.u32 4294901760, %v7612_v49 }
 0x322   : > { %3671 = vmatpush.msra.mxu2 %v3482_v36  ;;  %v3405_v20 = vadd.f32 %v3404_v62, %v3364_v35  ;;  %v8572_v36 = vld [vmem:[#allocation43_spill] sm:$0xff]  ;;  %v3368_v57 = vadd.f32 %v3367_v43, %v3303_v5  ;;  %v3774_v33 = vsel %vm3762_vm12, %v3401_v11, %v3768_v15 }
 0x323   : > { %3539 = vmatpush.msrb.mxu3 %v3538_v56  ;;  %v3823_v53 = vsub.f32 %v7612_v49, %v7615_v26 }
 0x324   : > { %vm3764_vm11 = vcmp.gt.f32.partialorder %v3405_v20, 0.0  ;;  %v3770_v25 = vmul.f32 0.01, %v3405_v20  ;;  %3675 = vmatpush.msra.mxu2 %v3488_v39  ;;  %3541 = vmatmul.f32.vlgmr.msrb.gmra.mxu3 %v8570_v9  ;;  %v8573_v39 = vld [vmem:[#allocation40_spill] sm:$0xff] }
 0x325   : > { %3452 = vmatmul.f32.gmra.mxu2 %v8571_v10  ;;  %3726 = vmatpush.msra.mxu3 %v7377_v14  ;;  %v3824_v60 = vand.u32 4294901760, %v3823_v53 }
 0x326   : > { %3679 = vmatpush.msra.mxu2 %v3494_v47  ;;  %v3776_v37 = vsel %vm3764_vm11, %v3405_v20, %v3770_v25 }
 0x327   : > { %3728 = vmatpush.msra.mxu3 %v7359_v45  ;;  %3600 = vmatmul.f32.gmra.mxu0 %v8572_v36  ;;  %v3816_v21 = vand.u32 4294901760, %v3776_v37  ;;  %v3818_v45 = vand.u32 4294901760, %v3774_v33 }
 0x328   : > { %3683 = vmatpush.msra.mxu2 %v3500_v54  ;;  %3646 = vmatmul.f32.gmra.mxu1 %v8573_v39  ;;  %v8575_v54 = vld [vmem:[#allocation57_spill] sm:$0xff] }
 0x329   : > { %3730 = vmatpush.msra.mxu3 %v7363_v46  ;;  %v3408_v14 = vpop.f32.mrf.mxu1  ;;  %v3849_v28 = vsub.f32 %v3776_v37, %v3816_v21  ;;  %v3855_v31 = vsub.f32 %v3774_v33, %v3818_v45 }
 0x32a   : > { %3687 = vmatpush.msra.mxu2 %v3506_v63  ;;  %v3409_v55 = vadd.f32 %v3408_v14, %v3368_v57  ;;  %v8576_v63 = vld [vmem:[#allocation53_spill] sm:$0xff] }
 0x32b   : > { %3732 = vmatpush.msra.mxu3 %v7365_v30  ;;  %v3850_v19 = vand.u32 4294901760, %v3849_v28 }
 0x32c   : > { %vm3766_vm13 = vcmp.gt.f32.partialorder %v3409_v55, 0.0  ;;  %v3772_v47 = vmul.f32 0.01, %v3409_v55  ;;  %3691 = vmatpush.msra.mxu2 %v3512_v17  ;;  %3545 = vmatmul.f32.gmra.mxu3 %v8574_v34  ;;  %v8577_v17 = vld [vmem:[#allocation51_spill] sm:$0xff] }
 0x32d   : > { %3460 = vmatmul.f32.gmra.mxu2 %v8575_v54  ;;  %3734 = vmatpush.msra.mxu3 %v7375_v48  ;;  %v3851_v29 = vsub.f32 %v3849_v28, %v3850_v19 }
 0x32e   : > { %v3778_v46 = vsel %vm3766_vm13, %v3409_v55, %v3772_v47  ;;  %3695 = vmatpush.msra.mxu2 %v3518_v51  ;;  %v3856_v51 = vand.u32 4294901760, %v3855_v31 }
 0x32f   : > { %v3796_v30 = vsel %vm3794_vm14, %v3778_v46, 0  ;;  %3736 = vmatpush.msra.mxu3 %v7384_v44  ;;  %3605 = vmatmul.f32.gmra.mxu0 %v8576_v63  ;;  %v8578_v44 = vld [vmem:[#allocation45_spill] sm:$0xff]  ;;  %v3852_v0 = vand.u32 4294901760, %v3851_v29 }
 0x330   : > { %v3814_v24 = vand.u32 4294901760, %v3796_v30  ;;  %3699 = vmatpush.msra.mxu2 %v3524_v61  ;;  %3652 = vmatmul.f32.gmra.mxu1 %v8577_v17  ;;  %v3857_v61 = vsub.f32 %v3855_v31, %v3856_v51 }
 0x331   : > { %3738 = vmatpush.msra.mxu3 %v7396_v8 }
 0x332   : > { %v3843_v48 = vsub.f32 %v3796_v30, %v3814_v24  ;;  %3703 = vmatpush.msra.mxu2 %v3530_v4  ;;  %3815 = vmatpush.msrb.mxu0 %v3814_v24 }
 0x333   : > { %3740 = vmatpush.msra.mxu3 %v7408_v38 }
 0x334   : > { %3707 = vmatpush.msra.mxu2 %v3536_v40  ;;  %3549 = vmatmul.f32.gmra.mxu3 %v8578_v44  ;;  %v3844_v23 = vand.u32 4294901760, %v3843_v48 }
 0x335   : > { %3709 = vmatmul.f32.vlgmr.msra.gmra.mxu2 %v8570_v9  ;;  %3742 = vmatpush.msra.mxu3 %v7428_v58  ;;  %v3858_v58 = vand.u32 4294901760, %v3857_v61 }
 0x336   : > { %3817 = vmatpush.msrb.mxu0 %v3816_v21  ;;  %3880 = vmatpush.msrb.mxu2 %v3843_v48  ;;  %v3845_v8 = vsub.f32 %v3843_v48, %v3844_v23 }
 0x337   : > { %3744 = vmatpush.msra.mxu3 %v7445_v42 }
 0x338   : > { %3819 = vmatpush.msrb.mxu0 %v3818_v45  ;;  %3883 = vmatpush.msrb.mxu2 %v3849_v28  ;;  %v3846_v38 = vand.u32 4294901760, %v3845_v8 }
 0x339   : > { %3746 = vmatpush.msra.mxu3 %v7456_v16  ;;  %3825 = vmatmul.f32.vlgmr.msrb.gmra.mxu0 %v3824_v60 }
 0x33a   : > { %3935 = vmatpush.msra.mxu0 %v3844_v23  ;;  %3886 = vmatpush.msrb.mxu2 %v3855_v31 }
 0x33b   : > { %3847 = vmatpush.msrb.mxu1 %v3846_v38  ;;  %3748 = vmatpush.msra.mxu3 %v7470_v22 }
 0x33c   : > { %3939 = vmatpush.msra.mxu0 %v3850_v19  ;;  %3750 = vmatmul.f32.vlgmr.msra.gmra.mxu3 %v8570_v9 }
 0x33d   : > { %3907 = vmatpush.msrb.mxu3 %v3814_v24  ;;  %3853 = vmatpush.msrb.mxu1 %v3852_v0 }
 0x33e   : > { %3943 = vmatpush.msra.mxu0 %v3856_v51  ;;  %3713 = vmatmul.f32.gmra.mxu2 %v8574_v34 }
 0x33f   : > { %3859 = vmatpush.msrb.mxu1 %v3858_v58  ;;  %3909 = vmatpush.msrb.mxu3 %v3816_v21 }
 0x340   : > { %3861 = vmatmul.f32.vlgmr.msrb.gmra.mxu1 %v7608_v59 }
 0x341   : > { %3963 = vmatpush.msra.mxu1 %v3814_v24  ;;  %3911 = vmatpush.msrb.mxu3 %v3818_v45 }
 0x342   : > { %3945 = vmatmul.f32.vlgmr.msra.gmra.mxu0 %v7608_v59 }
 0x343   : > { %3965 = vmatpush.msra.mxu1 %v3816_v21 }
 0x344   : > { %3754 = vmatmul.f32.gmra.mxu3 %v8574_v34 }
 0x345   : > { %3967 = vmatpush.msra.mxu1 %v3818_v45 }
 0x346   : > { %3717 = vmatmul.f32.gmra.mxu2 %v8578_v44 }
 0x348   : > { %3969 = vmatmul.f32.vlgmr.msra.gmra.mxu1 %v7608_v59 }
 0x34c   : > { %3758 = vmatmul.f32.gmra.mxu3 %v8578_v44 }
 0x34e   : > { %3889 = vmatmul.f32.vlgmr.msrb.gmra.mxu2 %v7612_v49 }
 0x354   : > { %3915 = vmatmul.f32.vlgmr.msrb.gmra.mxu3 %v7615_v26 }
 0x39c   : > { %v3596_v3 = vpop.f32.mrf.mxu0 }
 0x39d   : > { %v3641_v50 = vpop.f32.mrf.mxu1 }
 0x3a0   : > { %v3445_v42 = vpop.f32.mrf.mxu2 }
 0x3a1   : > { %v3446_v18 = vadd.f32 %v3445_v42, %v7486_v32 }
 0x3a4   : > { %v3601_v11 = vpop.f32.mrf.mxu0 }
 0x3a5   : > { %v3647_v41 = vpop.f32.mrf.mxu1 }
 0x3a7   : > { %v3542_v16 = vpop.f32.mrf.mxu3 }
 0x3a8   : > { %v3453_v22 = vpop.f32.mrf.mxu2  ;;  %v3543_v27 = vadd.f32 %v3542_v16, %v3446_v18  ;;  %v3781_v16 = vld [vmem:[%s384_s22] sm:$0x3]  ;;  %v4179_v18 = vld [vmem:[%s7980_s7 + $0x58] sm:$0xff] }
 0x3a9   : > { %v3454_v35 = vadd.f32 %v3453_v22, %v7493_v1  ;;  %v3783_v22 = vstv %s3782_s23 }
 0x3aa   : > { %v3597_v56 = vadd.f32 %v3596_v3, %v3543_v27 }
 0x3ac   : > { %v3642_v15 = vadd.f32 %v3641_v50, %v3597_v56  ;;  %v3606_v1 = vpop.f32.mrf.mxu0  ;;  %v4181_v50 = vld [vmem:[%s7980_s7 + $0x68] sm:$0xff] }
 0x3ad   : > { %v3653_v33 = vpop.f32.mrf.mxu1 }
 0x3af   : > { %v3546_v4 = vpop.f32.mrf.mxu3 }
 0x3b0   : > { %v3461_v40 = vpop.f32.mrf.mxu2  ;;  %v3547_v62 = vadd.f32 %v3546_v4, %v3454_v35  ;;  %v7638_v4 = vmul.f32 %v3783_v22, %v3781_v16  ;;  %v4178_v35 = vld [vmem:[%s7980_s7 + $0x50] sm:$0xff]  ;;  %v4171_v22 = vld [vmem:[%s7980_s7 + $0x18] sm:$0xff] }
 0x3b1   : > { %v3462_v9 = vadd.f32 %v3461_v40, %v7533_v13  ;;  %v7669_v56 = vand.u32 4294901760, %v4178_v35 }
 0x3b2   : > { %v3602_v6 = vadd.f32 %v3601_v11, %v3547_v62  ;;  %v3786_v40 = vperm.slane %v7638_v4, 0  ;;  %v7667_v62 = vand.u32 4294901760, %v4179_v18 }
 0x3b4   : > { %v3648_v43 = vadd.f32 %v3647_v41, %v3602_v6  ;;  %v4177_v41 = vld [vmem:[%s7980_s7 + $0x48] sm:$0xff] }
 0x3b6   : > { %v3826_v12 = vpop.f32.mrf.mxu0 }
 0x3b7   : > { %v3550_v2 = vpop.f32.mrf.mxu3  ;;  %v3827_v7 = vadd.f32 %v3826_v12, %v3786_v40 }
 0x3b8   : > { %v3710_v52 = vpop.f32.mrf.mxu2  ;;  %v3551_v32 = vadd.f32 %v3550_v2, %v3462_v9 }
 0x3b9   : > { %v3711_v10 = vadd.f32 %v3710_v52, %v3642_v15  ;;  %v7654_v52 = vand.u32 4294901760, %v4181_v50  ;;  %v7687_v15 = vand.u32 4294901760, %v4177_v41 }
 0x3ba   : > { %v3607_v57 = vadd.f32 %v3606_v1, %v3551_v32  ;;  %v7694_v32 = vsub.f32 %v4179_v18, %v7667_v62  ;;  %v4169_v18 = vld [vmem:[%s7980_s7 + $0x8] sm:$0xff] }
 0x3bb   : > { %v7684_v9 = vsub.f32 %v4181_v50, %v7654_v52 }
 0x3bc   : > { %v3654_v45 = vadd.f32 %v3653_v33, %v3607_v57 }
 0x3bd   : > { %v3862_v3 = vpop.f32.mrf.mxu1 }
 0x3be   : > { %v3863_v27 = vadd.f32 %v3862_v3, %v3827_v7  ;;  %v4170_v3 = vld [vmem:[%s7980_s7 + $0x10] sm:$0xff] }
 0x3bf   : > { %v3751_v20 = vpop.f32.mrf.mxu3  ;;  %v3946_v33 = vpop.f32.mrf.mxu0 }
 0x3c0   : > { %v3752_v37 = vadd.f32 %v3751_v20, %v3711_v10  ;;  %v4176_v20 = vld [vmem:[%s7980_s7 + $0x40] sm:$0xff]  ;;  %v7697_v10 = vsub.f32 %v4178_v35, %v7669_v56 }
 0x3c1   : > { %v3714_v25 = vpop.f32.mrf.mxu2  ;;  %v7699_v1 = vand.u32 4294901760, %v4176_v20 }
 0x3c2   : > { %v3715_v5 = vadd.f32 %v3714_v25, %v3648_v43  ;;  %v3769_v21 = vmul.f32 0.01, %v3752_v37  ;;  %vm3763_vm1 = vcmp.gt.f32.partialorder %v3752_v37, 0.0 }
 0x3c4   : > { %v3775_v34 = vsel %vm3763_vm1, %v3752_v37, %v3769_v21  ;;  %v7708_v21 = vsub.f32 %v4177_v41, %v7687_v15 }
 0x3c5   : > { %v3990_v30 = vand.u32 4294901760, %v3775_v34 }
 0x3c7   : > { %v3755_v36 = vpop.f32.mrf.mxu3  ;;  %v4027_v19 = vsub.f32 %v3775_v34, %v3990_v30  ;;  %v7723_v34 = vpop.f32.mrf.mxu1 }
 0x3c8   : > { %v3756_v39 = vadd.f32 %v3755_v36, %v3715_v5  ;;  %v4247_v36 = vand.u32 4294901760, %v7684_v9 }
 0x3c9   : > { %v3718_v55 = vpop.f32.mrf.mxu2  ;;  %v4028_v8 = vand.u32 4294901760, %v4027_v19 }
 0x3ca   : > { %vm3765_vm0 = vcmp.gt.f32.partialorder %v3756_v39, 0.0  ;;  %v3771_v14 = vmul.f32 0.01, %v3756_v39  ;;  %v3719_v47 = vadd.f32 %v3718_v55, %v3654_v45 }
 0x3cb   : > { %v4029_v0 = vsub.f32 %v4027_v19, %v4028_v8 }
 0x3cc   : > { %v3777_v13 = vsel %vm3765_vm0, %v3756_v39, %v3771_v14 }
 0x3cd   : > { %v3988_v46 = vand.u32 4294901760, %v3777_v13  ;;  %v4030_v42 = vand.u32 4294901760, %v4029_v0 }
 0x3cf   : > { %v3759_v54 = vpop.f32.mrf.mxu3  ;;  %v4021_v31 = vsub.f32 %v3777_v13, %v3988_v46  ;;  %v4248_v13 = vsub.f32 %v7684_v9, %v4247_v36 }
 0x3d0   : > { %v3760_v28 = vadd.f32 %v3759_v54, %v3719_v47  ;;  %v4259_v47 = vand.u32 4294901760, %v7694_v32  ;;  %v3787_v54 = vperm.slane %v7638_v4, 1 }
 0x3d1   : > { %v4022_v23 = vand.u32 4294901760, %v4021_v31 }
 0x3d2   : > { %vm3767_vm2 = vcmp.gt.f32.partialorder %v3760_v28, 0.0  ;;  %v3773_v63 = vmul.f32 0.01, %v3760_v28 }
 0x3d3   : > { %v4023_v38 = vsub.f32 %v4021_v31, %v4022_v23 }
 0x3d4   : > { %v3779_v24 = vsel %vm3767_vm2, %v3760_v28, %v3773_v63  ;;  %v7728_v28 = vsub.f32 %v4176_v20, %v7699_v1  ;;  %v4174_v63 = vld [vmem:[%s7980_s7 + $0x30] sm:$0xff] }
 0x3d5   : > { %v3799_v17 = vsel %vm3794_vm14, %v3779_v24, 0  ;;  %v4024_v58 = vand.u32 4294901760, %v4023_v38 }
 0x3d6   : > { %v3986_v48 = vand.u32 4294901760, %v3799_v17 }
 0x3d7   : > { %v3916_v39 = vpop.f32.mrf.mxu3 }
 0x3d8   : > { %v4015_v44 = vsub.f32 %v3799_v17, %v3986_v48  ;;  %3987 = vmatpush.msra.mxu2 %v3986_v48  ;;  %4079 = vmatpush.msrb.mxu1 %v3986_v48 }
 0x3da   : > { %3989 = vmatpush.msra.mxu2 %v3988_v46  ;;  %4052 = vmatpush.msrb.mxu0 %v4015_v44  ;;  %v4016_v51 = vand.u32 4294901760, %v4015_v44 }
 0x3db   : > { %4081 = vmatpush.msrb.mxu1 %v3988_v46 }
 0x3dc   : > { %3991 = vmatpush.msra.mxu2 %v3990_v30  ;;  %4055 = vmatpush.msrb.mxu0 %v4021_v31  ;;  %v4017_v29 = vsub.f32 %v4015_v44, %v4016_v51 }
 0x3dd   : > { %4083 = vmatpush.msrb.mxu1 %v3990_v30  ;;  %3997 = vmatmul.f32.vlgmr.msra.gmra.mxu2 %v3824_v60  ;;  %v4180_v60 = vld [vmem:[%s7980_s7 + $0x60] sm:$0xff] }
 0x3de   : > { %4107 = vmatpush.msrb.mxu2 %v4016_v51  ;;  %4058 = vmatpush.msrb.mxu0 %v4027_v19  ;;  %v4018_v61 = vand.u32 4294901760, %v4017_v29  ;;  %v7665_v11 = vand.u32 4294901760, %v4180_v60  ;;  %v4173_v19 = vld [vmem:[%s7980_s7 + $0x28] sm:$0xff]  ;;  %v4172_v51 = vld [vmem:[%s7980_s7 + $0x20] sm:$0xff]  ;;  %v4260_v29 = vsub.f32 %v7694_v32, %v4259_v47 }
 0x3df   : > { %4061 = vmatmul.f32.vlgmr.msrb.gmra.mxu0 %v7612_v49  ;;  %4087 = vmatmul.f32.vlgmr.msrb.gmra.mxu1 %v7615_v26  ;;  %v3890_v49 = vpop.f32.mrf.mxu2  ;;  %v4182_v26 = vld [vmem:[%s7980_s7 + $0x70] sm:$0xff]  ;;  %v7764_v16 = vand.u32 4294901760, %v4173_v19  ;;  %v7778_v7 = vand.u32 4294901760, %v4172_v51 }
 0x3e0   : > { %4111 = vmatpush.msrb.mxu2 %v4022_v23  ;;  %4019 = vmatpush.msra.mxu3 %v4018_v61  ;;  %v7652_v53 = vand.u32 4294901760, %v4182_v26  ;;  %v7691_v43 = vsub.f32 %v4180_v60, %v7665_v11  ;;  %v3891_v57 = vadd.f32 %v3890_v49, %v3863_v27  ;;  %v4271_v23 = vand.u32 4294901760, %v7708_v21 }
 0x3e1   : > { %v7756_v61 = vand.u32 4294901760, %v4174_v63  ;;  %v7790_v50 = vsub.f32 %v4173_v19, %v7764_v16  ;;  %v7792_v60 = vand.u32 4294901760, %v4171_v22 }
 0x3e2   : > { %4115 = vmatpush.msrb.mxu2 %v4028_v8  ;;  %4025 = vmatpush.msra.mxu3 %v4024_v58  ;;  %v7681_v25 = vsub.f32 %v4182_v26, %v7652_v53  ;;  %v4253_v14 = vand.u32 4294901760, %v7691_v43  ;;  %v3917_v44 = vadd.f32 %v3916_v39, %v3891_v57  ;;  %v4249_v8 = vand.u32 4294901760, %v4248_v13 }
 0x3e3   : > { %v7776_v12 = vsub.f32 %v4174_v63, %v7756_v61  ;;  %v4272_v49 = vsub.f32 %v7708_v21, %v4271_v23  ;;  %v7800_v57 = vand.u32 4294901760, %v4170_v3  ;;  %v4168_v63 = vld [vmem:[%s7980_s7] sm:$0xff] }
 0x3e4   : > { %4031 = vmatpush.msra.mxu3 %v4030_v42  ;;  %v4241_v37 = vand.u32 4294901760, %v7681_v25  ;;  %v4277_v42 = vand.u32 4294901760, %v7728_v28  ;;  %v3947_v35 = vadd.f32 %v3946_v33, %v3917_v44  ;;  %v7807_v33 = vsub.f32 %v4172_v51, %v7778_v7 }
 0x3e5   : > { %4033 = vmatmul.f32.vlgmr.msra.gmra.mxu3 %v7608_v59  ;;  %4117 = vmatmul.f32.vlgmr.msrb.gmra.mxu2 %v7608_v59  ;;  %v4146_v44 = vstv %s7758_s16 }
 0x3e6   : > { %4135 = vmatpush.msrb.mxu3 %v3986_v48  ;;  %v4242_v45 = vsub.f32 %v7681_v25, %v4241_v37  ;;  %v4254_v48 = vsub.f32 %v7691_v43, %v4253_v14  ;;  %v4278_v20 = vsub.f32 %v7728_v28, %v4277_v42  ;;  %v3971_v19 = vadd.f32 %v7723_v34, %v3947_v35 }
 0x3e7   : > { %v7835_v34 = vand.u32 4294901760, %v4168_v63 }
 0x3e8   : > { %4137 = vmatpush.msrb.mxu3 %v3988_v46  ;;  %v4265_v46 = vand.u32 4294901760, %v7697_v10  ;;  %v4243_v17 = vand.u32 4294901760, %v4242_v45  ;;  %v4255_v4 = vand.u32 4294901760, %v4254_v48  ;;  %v4289_v45 = vand.u32 4294901760, %v7776_v12 }
 0x3e9   : > { %v7821_v48 = vsub.f32 %v4171_v22, %v7792_v60  ;;  %v4301_v22 = vand.u32 4294901760, %v7807_v33 }
 0x3ea   : > { %4139 = vmatpush.msrb.mxu3 %v3990_v30  ;;  %v4175_v30 = vld [vmem:[%s7980_s7 + $0x38] sm:$0xff]  ;;  %v4266_v58 = vsub.f32 %v7697_v10, %v4265_v46 }
 0x3eb   : > { %v7754_v38 = vand.u32 4294901760, %v4175_v30  ;;  %v4307_v35 = vand.u32 4294901760, %v7821_v48 }
 0x3ed   : > { %4141 = vmatmul.f32.vlgmr.msrb.gmra.mxu3 %v7608_v59  ;;  %v4183_v59 = vld [vmem:[%s7980_s7 + $0x78] sm:$0xff]  ;;  %v7772_v40 = vsub.f32 %v4175_v30, %v7754_v38  ;;  %v7809_v30 = vand.u32 4294901760, %v4169_v18 }
 0x3ee   : > { %v7650_v2 = vand.u32 4294901760, %v4183_v59 }
 0x3ef   : > { %v4283_v26 = vand.u32 4294901760, %v7772_v40 }
 0x3f0   : > { %v7678_v6 = vsub.f32 %v4183_v59, %v7650_v2  ;;  %4193 = vmatpush.msra.mxu0 %v7650_v2  ;;  %4389 = vmatpush.msra.mxu3 %v7650_v2  ;;  %v4261_v59 = vand.u32 4294901760, %v4260_v29  ;;  %v7826_v29 = vsub.f32 %v4170_v3, %v7800_v57 }
 0x3f2   : > { %v4235_v5 = vand.u32 4294901760, %v7678_v6  ;;  %4195 = vmatpush.msra.mxu0 %v7652_v53  ;;  %4336 = vmatpush.msra.mxu2 %v7678_v6 }
 0x3f3   : > { %4391 = vmatpush.msra.mxu3 %v7652_v53 }
 0x3f4   : > { %v4236_v55 = vsub.f32 %v7678_v6, %v4235_v5  ;;  %4197 = vmatpush.msra.mxu0 %v7654_v52  ;;  %4339 = vmatpush.msra.mxu2 %v7681_v25  ;;  %v4157_v25 = vstv %s5139_s28 }
 0x3f5   : > { %4393 = vmatpush.msra.mxu3 %v7654_v52 }
 0x3f6   : > { %v4237_v31 = vand.u32 4294901760, %v4236_v55  ;;  %4199 = vmatpush.msra.mxu0 %v7665_v11  ;;  %4342 = vmatpush.msra.mxu2 %v7684_v9  ;;  %v4267_v55 = vand.u32 4294901760, %v4266_v58  ;;  %v4290_v58 = vsub.f32 %v7776_v12, %v4289_v45 }
 0x3f7   : > { %4395 = vmatpush.msra.mxu3 %v7665_v11 }
 0x3f8   : > { %4238 = vmatpush.msra.mxu1 %v4237_v31  ;;  %4201 = vmatpush.msra.mxu0 %v7667_v62  ;;  %v4284_v31 = vsub.f32 %v7772_v40, %v4283_v26 }
 0x3f9   : > { %4345 = vmatpush.msra.mxu2 %v7691_v43  ;;  %4397 = vmatpush.msra.mxu3 %v7667_v62 }
 0x3fa   : > { %4244 = vmatpush.msra.mxu1 %v4243_v17  ;;  %4203 = vmatpush.msra.mxu0 %v7669_v56  ;;  %v4295_v17 = vand.u32 4294901760, %v7790_v50 }
 0x3fb   : > { %4348 = vmatpush.msra.mxu2 %v7694_v32  ;;  %4399 = vmatpush.msra.mxu3 %v7669_v56 }
 0x3fc   : > { %4250 = vmatpush.msra.mxu1 %v4249_v8  ;;  %4205 = vmatpush.msra.mxu0 %v7687_v15  ;;  %v4279_v8 = vand.u32 4294901760, %v4278_v20 }
 0x3fd   : > { %4351 = vmatpush.msra.mxu2 %v7697_v10  ;;  %4401 = vmatpush.msra.mxu3 %v7687_v15 }
 0x3fe   : > { %4256 = vmatpush.msra.mxu1 %v4255_v4  ;;  %4207 = vmatpush.msra.mxu0 %v7699_v1  ;;  %v7838_v4 = vsub.f32 %v4169_v18, %v7809_v30  ;;  %v4313_v18 = vand.u32 4294901760, %v7826_v29 }
 0x3ff   : > { %4354 = vmatpush.msra.mxu2 %v7708_v21  ;;  %4403 = vmatpush.msra.mxu3 %v7699_v1 }
 0x400   : > { %4262 = vmatpush.msra.mxu1 %v4261_v59  ;;  %4209 = vmatpush.msra.mxu0 %v7754_v38  ;;  %v4296_v59 = vsub.f32 %v7790_v50, %v4295_v17 }
 0x401   : > { %4357 = vmatpush.msra.mxu2 %v7728_v28  ;;  %4405 = vmatpush.msra.mxu3 %v7754_v38 }
 0x402   : > { %4268 = vmatpush.msra.mxu1 %v4267_v55  ;;  %4211 = vmatpush.msra.mxu0 %v7756_v61  ;;  %v4302_v55 = vsub.f32 %v7807_v33, %v4301_v22 }
 0x403   : > { %4360 = vmatpush.msra.mxu2 %v7772_v40  ;;  %4407 = vmatpush.msra.mxu3 %v7756_v61 }
 0x404   : > { %4213 = vmatpush.msra.mxu0 %v7764_v16 }
 0x405   : > { %4363 = vmatpush.msra.mxu2 %v7776_v12  ;;  %4409 = vmatpush.msra.mxu3 %v7764_v16  ;;  %v4681_v12 = vld [vmem:[%s7981_s8 + $0x10] sm:$0xf] }
 0x406   : > { %4215 = vmatpush.msra.mxu0 %v7778_v7 }
 0x407   : > { %4366 = vmatpush.msra.mxu2 %v7790_v50  ;;  %4411 = vmatpush.msra.mxu3 %v7778_v7 }
 0x408   : > { %4217 = vmatpush.msra.mxu0 %v7792_v60 }
 0x409   : > { %4369 = vmatpush.msra.mxu2 %v7807_v33  ;;  %4413 = vmatpush.msra.mxu3 %v7792_v60 }
 0x40a   : > { %4219 = vmatpush.msra.mxu0 %v7800_v57 }
 0x40b   : > { %4372 = vmatpush.msra.mxu2 %v7821_v48  ;;  %4415 = vmatpush.msra.mxu3 %v7800_v57 }
 0x40c   : > { %4221 = vmatpush.msra.mxu0 %v7809_v30 }
 0x40d   : > { %4375 = vmatpush.msra.mxu2 %v7826_v29  ;;  %4417 = vmatpush.msra.mxu3 %v7809_v30 }
 0x40e   : > { %4223 = vmatpush.msra.mxu0 %v7835_v34 }
 0x40f   : > { %4378 = vmatpush.msra.mxu2 %v7838_v4  ;;  %4419 = vmatpush.msra.mxu3 %v7835_v34 }
 0x410   : > { %4430 = vmatpush.msrb.mxu0 %v4235_v5 }
 0x412   : > { %4434 = vmatpush.msrb.mxu0 %v4241_v37 }
 0x414   : > { %4438 = vmatpush.msrb.mxu0 %v4247_v36 }
 0x416   : > { %4442 = vmatpush.msrb.mxu0 %v4253_v14 }
 0x418   : > { %4446 = vmatpush.msrb.mxu0 %v4259_v47 }
 0x41a   : > { %4450 = vmatpush.msrb.mxu0 %v4265_v46 }
 0x41c   : > { %4454 = vmatpush.msrb.mxu0 %v4271_v23 }
 0x41e   : > { %4458 = vmatpush.msrb.mxu0 %v4277_v42 }
 0x420   : > { %4462 = vmatpush.msrb.mxu0 %v4283_v26 }
 0x422   : > { %4466 = vmatpush.msrb.mxu0 %v4289_v45 }
 0x424   : > { %4470 = vmatpush.msrb.mxu0 %v4295_v17 }
 0x426   : > { %4474 = vmatpush.msrb.mxu0 %v4301_v22 }
 0x428   : > { %4478 = vmatpush.msrb.mxu0 %v4307_v35 }
 0x42a   : > { %4482 = vmatpush.msrb.mxu0 %v4313_v18 }
 0x45c   : > { %v4062_v41 = vpop.f32.mrf.mxu0  ;;  %v4088_v13 = vpop.f32.mrf.mxu1 }
 0x460   : > { %v3998_v24 = vpop.f32.mrf.mxu2 }
 0x461   : > { %v3999_v0 = vadd.f32 %v3998_v24, %v3787_v54  ;;  %v4273_v54 = vand.u32 4294901760, %v4272_v49  ;;  %v4285_v49 = vand.u32 4294901760, %v4284_v31  ;;  %v4308_v31 = vsub.f32 %v7821_v48, %v4307_v35  ;;  %v4682_v35 = vld [vmem:[%s7981_s8 + $0x18] sm:$0xf] }
 0x463   : > { %4274 = vmatpush.msra.mxu1 %v4273_v54 }
 0x465   : > { %4280 = vmatpush.msra.mxu1 %v4279_v8  ;;  %v4314_v8 = vsub.f32 %v7826_v29, %v4313_v18 }
 0x467   : > { %4286 = vmatpush.msra.mxu1 %v4285_v49 }
 0x468   : > { %v4034_v27 = vpop.f32.mrf.mxu3  ;;  %v4118_v51 = vpop.f32.mrf.mxu2 }
 0x469   : > { %v4035_v39 = vadd.f32 %v4034_v27, %v3999_v0  ;;  %v7847_v27 = vadd.f32 %v4146_v44, %v3971_v19  ;;  %v4319_v19 = vand.u32 4294901760, %v7838_v4 }
 0x46b   : > { %v4063_v24 = vadd.f32 %v4062_v41, %v4035_v39  ;;  %v4291_v39 = vand.u32 4294901760, %v4290_v58  ;;  %v4320_v49 = vsub.f32 %v7838_v4, %v4319_v19  ;;  %4486 = vmatpush.msrb.mxu0 %v4319_v19  ;;  %v4680_v19 = vld [vmem:[%s7981_s8 + $0x8] sm:$0xff] }
 0x46d   : > { %v4089_v0 = vadd.f32 %v4088_v13, %v4063_v24  ;;  %v7857_v13 = vsub.f32 %v4168_v63, %v7835_v34  ;;  %v4297_v24 = vand.u32 4294901760, %v4296_v59  ;;  %v4151_v63 = vsel %vm4150_vm3, %v7847_v27, -inf  ;;  %4292 = vmatpush.msra.mxu1 %v4291_v39 }
 0x46e   : > { %v4315_v59 = vand.u32 4294901760, %v4314_v8 }
 0x46f   : > { %v4119_v3 = vadd.f32 %v4118_v51, %v4089_v0  ;;  %v4303_v51 = vand.u32 4294901760, %v4302_v55  ;;  %v4325_v0 = vand.u32 4294901760, %v7857_v13  ;;  %4298 = vmatpush.msra.mxu1 %v4297_v24  ;;  %4381 = vmatpush.msra.mxu2 %v7857_v13 }
 0x470   : > { %v4142_v41 = vpop.f32.mrf.mxu3 }
 0x471   : > { %v4143_v20 = vadd.f32 %v4142_v41, %v4119_v3  ;;  %v4309_v3 = vand.u32 4294901760, %v4308_v31  ;;  %4304 = vmatpush.msra.mxu1 %v4303_v51  ;;  %v4326_v41 = vsub.f32 %v7857_v13, %v4325_v0  ;;  %4490 = vmatpush.msrb.mxu0 %v4325_v0  ;;  %v4691_v13 = vsel %vm3794_vm14, %v4682_v35, 0 }
 0x472   : > { %v4866_v24 = vand.u32 4294901760, %v4691_v13  ;;  %v4868_v51 = vand.u32 4294901760, %v4680_v19 }
 0x473   : > { %v7861_v54 = vadd.f32 %v4146_v44, %v4143_v20  ;;  %4310 = vmatpush.msra.mxu1 %v4309_v3  ;;  %v4321_v20 = vand.u32 4294901760, %v4320_v49  ;;  %v4327_v39 = vand.u32 4294901760, %v4326_v41 }
 0x475   : > { %v4153_v44 = vsel %vm4152_vm4, %v7861_v54, -inf  ;;  %4316 = vmatpush.msra.mxu1 %v4315_v59 }
 0x476   : > { %v4154_v58 = vmax.f32 %v4151_v63, %v4153_v44  ;;  %v4894_v44 = vsub.f32 %v4691_v13, %v4866_v24 }
 0x477   : > { %4322 = vmatpush.msra.mxu1 %v4321_v20 }
 0x478   : > { %4155 = vmax.xlane.f32.xlu0 %v4154_v58  ;;  %v4895_v0 = vand.u32 4294901760, %v4894_v44  ;;  %v4900_v58 = vsub.f32 %v4680_v19, %v4868_v51 }
 0x479   : > { %4328 = vmatpush.msra.mxu1 %v4327_v39 }
 0x47a   : > { %v4896_v49 = vsub.f32 %v4894_v44, %v4895_v0  ;;  %v4901_v59 = vand.u32 4294901760, %v4900_v58 }
 0x47b   : > { %4497 = vmatpush.msrb.mxu1 %v7650_v2  ;;  %v4184_v2 = vld [vmem:[%s7980_s7 + $0x80] sm:$0xf] }
 0x47d   : > { %4499 = vmatpush.msrb.mxu1 %v7652_v53  ;;  %v4190_v53 = vsel %vm3794_vm14, %v4184_v2, 0  ;;  %v4897_v2 = vand.u32 4294901760, %v4896_v49 }
 0x47f   : > { %4501 = vmatpush.msrb.mxu1 %v7654_v52  ;;  %v4548_v52 = vand.u32 4294901760, %v4190_v53 }
 0x481   : > { %4503 = vmatpush.msrb.mxu1 %v7665_v11  ;;  %4549 = vmatpush.msrb.mxu2 %v4548_v52  ;;  %v4575_v11 = vsub.f32 %v4190_v53, %v4548_v52  ;;  %v4902_v53 = vsub.f32 %v4900_v58, %v4901_v59 }
 0x483   : > { %4505 = vmatpush.msrb.mxu1 %v7667_v62  ;;  %v4576_v62 = vand.u32 4294901760, %v4575_v11 }
 0x485   : > { %4507 = vmatpush.msrb.mxu1 %v7669_v56  ;;  %v4577_v56 = vsub.f32 %v4575_v11, %v4576_v62 }
 0x487   : > { %4509 = vmatpush.msrb.mxu1 %v7687_v15  ;;  %v4578_v6 = vand.u32 4294901760, %v4577_v56  ;;  %v4903_v56 = vand.u32 4294901760, %v4902_v53 }
 0x489   : > { %4511 = vmatpush.msrb.mxu1 %v7699_v1  ;;  %4579 = vmatpush.msrb.mxu3 %v4578_v6 }
 0x48b   : > { %4513 = vmatpush.msrb.mxu1 %v7754_v38 }
 0x48d   : > { %4515 = vmatpush.msrb.mxu1 %v7756_v61 }
 0x48f   : > { %4517 = vmatpush.msrb.mxu1 %v7764_v16 }
 0x491   : > { %4519 = vmatpush.msrb.mxu1 %v7778_v7  ;;  %v4688_v7 = vsel %vm3794_vm14, %v4681_v12, 0 }
 0x492   : > { %v4707_v26 = vand.u32 4294901760, %v4688_v7 }
 0x493   : > { %4521 = vmatpush.msrb.mxu1 %v7792_v60  ;;  %v4679_v60 = vld [vmem:[%s7981_s8] sm:$0xff] }
 0x494   : > { %v4709_v45 = vand.u32 4294901760, %v4679_v60 }
 0x495   : > { %4523 = vmatpush.msrb.mxu1 %v7800_v57  ;;  %v4735_v57 = vsub.f32 %v4688_v7, %v4707_v26 }
 0x497   : > { %4525 = vmatpush.msrb.mxu1 %v7809_v30  ;;  %v4736_v33 = vand.u32 4294901760, %v4735_v57  ;;  %v4741_v30 = vsub.f32 %v4679_v60, %v4709_v45 }
 0x499   : > { %4527 = vmatpush.msrb.mxu1 %v7835_v34  ;;  %v4737_v17 = vsub.f32 %v4735_v57, %v4736_v33  ;;  %v4742_v48 = vand.u32 4294901760, %v4741_v30 }
 0x49b   : > { %v4738_v29 = vand.u32 4294901760, %v4737_v17  ;;  %v4743_v22 = vsub.f32 %v4741_v30, %v4742_v48 }
 0x49d   : > { %v4744_v4 = vand.u32 4294901760, %v4743_v22 }
 0x4eb   : > { %v4156_v9 = vpop.xlane.xlu0 %4155 }
 0x4ec   : > { %v4158_v15 = vmax.f32 %v4156_v9, %v4157_v25 }
 0x4ee   : > { %v4159_v43 = vsub.f32 %v7847_v27, %v4158_v15  ;;  %v4160_v32 = vsub.f32 %v7861_v54, %v4158_v15  ;;  %v4165_v10 = vsub.f32 %v4157_v25, %v4158_v15 }
 0x4f0   : > { %v4161_v1 = vmul.f32 1.442695, %v4159_v43  ;;  %v4163_v5 = vmul.f32 1.442695, %v4160_v32  ;;  %v4166_v50 = vmul.f32 1.442695, %v4165_v10 }
 0x4f2   : > { %5166 = vpow2.f32 %v4161_v1 }
 0x4f3   : > { %5168 = vpow2.f32 %v4163_v5 }
 0x4f4   : > { %5170 = vpow2.f32 %v4166_v50 }
 0x4f8   : > { %v7941_v37 = vpop.eup %5166 }
 0x4f9   : > { %v7943_v36 = vpop.eup %5168  ;;  %v4224_v14 = vand.u32 4294901760, %v7941_v37 }
 0x4fa   : > { %v4187_v21 = vsel %vm4185_vm5, %v7943_v36, 0  ;;  %v5171_v27 = vpop.eup %5170 }
 0x4fb   : > { %v4550_v47 = vand.u32 4294901760, %v4187_v21  ;;  %4330 = vmatmul.f32.vlgmr.msra.gmra.mxu1 %v4224_v14  ;;  %v4225_v46 = vsub.f32 %v7941_v37, %v4224_v14 }
 0x4fc   : > { %4792 = vmatpush.msra.mxu1 %v4707_v26 }
 0x4fd   : > { %v4551_v28 = vsub.f32 %v4187_v21, %v4550_v47  ;;  %4384 = vmatmul.f32.vlgmr.msra.gmra.mxu2 %v4225_v46  ;;  %v4226_v23 = vand.u32 4294901760, %v4225_v46 }
 0x4fe   : > { %4602 = vmatpush.msra.mxu2 %v4575_v11  ;;  %4794 = vmatpush.msra.mxu1 %v4709_v45 }
 0x4ff   : > { %4423 = vmatmul.f32.vlgmr.msra.gmra.mxu3 %v4226_v23  ;;  %v4227_v38 = vsub.f32 %v4225_v46, %v4226_v23  ;;  %v4552_v61 = vand.u32 4294901760, %v4551_v28 }
 0x500   : > { %4625 = vmatpush.msra.mxu3 %v4548_v52 }
 0x501   : > { %v4228_v42 = vand.u32 4294901760, %v4227_v38  ;;  %v4553_v16 = vsub.f32 %v4551_v28, %v4552_v61 }
 0x503   : > { %4229 = vmatmul.f32.vlgmr.msra.gmra.mxu0 %v4228_v42  ;;  %4529 = vmatmul.f32.vlgmr.msrb.gmra.mxu1 %v4224_v14  ;;  %v4554_v40 = vand.u32 4294901760, %v4553_v16 }
 0x504   : > { %4767 = vmatpush.msra.mxu0 %v4735_v57  ;;  %4898 = vmatpush.msrb.mxu1 %v4897_v2  ;;  %v5046_v2 = vlaneseq }
 0x505   : > { %4555 = vmatmul.f32.vlgmr.msrb.gmra.mxu2 %v4554_v40 }
 0x506   : > { %4651 = vmatpush.msrb.mxu2 %v4576_v62  ;;  %4770 = vmatpush.msra.mxu0 %v4741_v30  ;;  %vm5048_vm15 = vcmp.lt.s32.totalorder %v5046_v2, 132 }
 0x507   : > { %4581 = vmatmul.f32.vlgmr.msrb.gmra.mxu3 %v4550_v47  ;;  %4904 = vmatpush.msrb.mxu1 %v4903_v56 }
 0x508   : > { %4673 = vmatpush.msrb.mxu3 %v4548_v52 }
 0x50b   : > { %4492 = vmatmul.f32.vlgmr.msrb.gmra.mxu0 %v4224_v14 }
 0x50c   : > { %4867 = vmatpush.msrb.mxu0 %v4866_v24 }
 0x50d   : > { %4605 = vmatmul.f32.vlgmr.msra.gmra.mxu2 %v4551_v28 }
 0x50e   : > { %4708 = vmatpush.msra.mxu2 %v4707_v26  ;;  %4869 = vmatpush.msrb.mxu0 %v4868_v51 }
 0x50f   : > { %4629 = vmatmul.f32.vlgmr.msra.gmra.mxu3 %v4552_v61 }
 0x510   : > { %4710 = vmatpush.msra.mxu2 %v4709_v45  ;;  %4739 = vmatpush.msra.mxu3 %v4738_v29 }
 0x512   : > { %4745 = vmatpush.msra.mxu3 %v4744_v4 }
 0x515   : > { %4653 = vmatmul.f32.vlgmr.msrb.gmra.mxu2 %v4550_v47 }
 0x516   : > { %4819 = vmatpush.msrb.mxu2 %v4736_v33 }
 0x517   : > { %4675 = vmatmul.f32.vlgmr.msrb.gmra.mxu3 %v4550_v47 }
 0x518   : > { %4823 = vmatpush.msrb.mxu2 %v4742_v48  ;;  %4844 = vmatpush.msrb.mxu3 %v4707_v26 }
 0x51a   : > { %4846 = vmatpush.msrb.mxu3 %v4709_v45 }
 0x578   : > { %v4331_v34 = vpop.f32.mrf.mxu1 }
 0x580   : > { %v4230_v18 = vpop.f32.mrf.mxu0  ;;  %v4385_v55 = vpop.f32.mrf.mxu2 }
 0x581   : > { %v4231_v54 = vadd.f32 %v5171_v27, %v4230_v18  ;;  %v4530_v52 = vpop.f32.mrf.mxu1 }
 0x582   : > { %v4424_v31 = vpop.f32.mrf.mxu3 }
 0x583   : > { %v4332_v63 = vadd.f32 %v4331_v34, %v4231_v54 }
 0x585   : > { %v4386_v8 = vadd.f32 %v4385_v55, %v4332_v63 }
 0x587   : > { %v4425_v3 = vadd.f32 %v4424_v31, %v4386_v8 }
 0x588   : > { %v4493_v41 = vpop.f32.mrf.mxu0  ;;  %v4556_v20 = vpop.f32.mrf.mxu2 }
 0x589   : > { %v4494_v39 = vadd.f32 %v4493_v41, %v4425_v3 }
 0x58a   : > { %v4582_v11 = vpop.f32.mrf.mxu3 }
 0x58b   : > { %v4531_v62 = vadd.f32 %v4530_v52, %v4494_v39 }
 0x58d   : > { %v4557_v6 = vadd.f32 %v4556_v20, %v4531_v62 }
 0x58f   : > { %v4583_v25 = vadd.f32 %v4582_v11, %v4557_v6 }
 0x590   : > { %v4606_v9 = vpop.f32.mrf.mxu2 }
 0x591   : > { %v4607_v43 = vadd.f32 %v4606_v9, %v4583_v25 }
 0x592   : > { %v4630_v15 = vpop.f32.mrf.mxu3 }
 0x593   : > { %v4631_v32 = vadd.f32 %v4630_v15, %v4607_v43 }
 0x598   : > { %v4654_v10 = vpop.f32.mrf.mxu2 }
 0x599   : > { %v4655_v1 = vadd.f32 %v4654_v10, %v4631_v32 }
 0x59a   : > { %v4676_v5 = vpop.f32.mrf.mxu3 }
 0x59b   : > { %v4677_v14 = vadd.f32 %v4676_v5, %v4655_v1 }
 0x59d   : > { %v4685_v21 = vsel %vm4683_vm6, %v4677_v14, 0 }
 0x59e   : > { %v4711_v47 = vand.u32 4294901760, %v4685_v21 }
 0x5a0   : > { %v4712_v46 = vsub.f32 %v4685_v21, %v4711_v47  ;;  %4747 = vmatmul.f32.vlgmr.msra.gmra.mxu3 %v4711_v47 }
 0x5a1   : > { %4951 = vmatpush.msra.mxu3 %v4866_v24 }
 0x5a2   : > { %v4713_v28 = vand.u32 4294901760, %v4712_v46  ;;  %4773 = vmatmul.f32.vlgmr.msra.gmra.mxu0 %v4712_v46 }
 0x5a3   : > { %4953 = vmatpush.msra.mxu3 %v4868_v51  ;;  %4978 = vmatpush.msra.mxu0 %v4895_v0 }
 0x5a4   : > { %v4714_v23 = vsub.f32 %v4712_v46, %v4713_v28  ;;  %4798 = vmatmul.f32.vlgmr.msra.gmra.mxu1 %v4713_v28 }
 0x5a5   : > { %4982 = vmatpush.msra.mxu0 %v4901_v59  ;;  %5003 = vmatpush.msra.mxu1 %v4866_v24 }
 0x5a6   : > { %v4715_v38 = vand.u32 4294901760, %v4714_v23 }
 0x5a7   : > { %5005 = vmatpush.msra.mxu1 %v4868_v51 }
 0x5a8   : > { %4716 = vmatmul.f32.vlgmr.msra.gmra.mxu2 %v4715_v38  ;;  %4848 = vmatmul.f32.vlgmr.msrb.gmra.mxu3 %v4711_v47 }
 0x5a9   : > { %4926 = vmatpush.msra.mxu2 %v4894_v44 }
 0x5aa   : > { %4875 = vmatmul.f32.vlgmr.msrb.gmra.mxu0 %v4715_v38 }
 0x5ab   : > { %4929 = vmatpush.msra.mxu2 %v4900_v58 }
 0x5ac   : > { %4906 = vmatmul.f32.vlgmr.msrb.gmra.mxu1 %v4711_v47 }
 0x5b0   : > { %4825 = vmatmul.f32.vlgmr.msrb.gmra.mxu2 %v4711_v47  ;;  %4957 = vmatmul.f32.vlgmr.msra.gmra.mxu3 %v4713_v28 }
 0x5b2   : > { %4984 = vmatmul.f32.vlgmr.msra.gmra.mxu0 %v4711_v47 }
 0x5b4   : > { %5007 = vmatmul.f32.vlgmr.msra.gmra.mxu1 %v4711_v47 }
 0x5b8   : > { %4932 = vmatmul.f32.vlgmr.msra.gmra.mxu2 %v4712_v46 }
 0x61f   : > { %v4774_v42 = vpop.f32.mrf.mxu0 }
 0x621   : > { %v4799_v12 = vpop.f32.mrf.mxu1 }
 0x623   : > { %v4748_v61 = vpop.f32.mrf.mxu3 }
 0x627   : > { %v4876_v45 = vpop.f32.mrf.mxu0 }
 0x629   : > { %v4907_v30 = vpop.f32.mrf.mxu1 }
 0x62a   : > { %v4908_v17 = vadd.f32 %v4907_v30, %v4876_v45 }
 0x62b   : > { %v4717_v16 = vpop.f32.mrf.mxu2  ;;  %v4849_v50 = vpop.f32.mrf.mxu3 }
 0x62c   : > { %v4749_v40 = vadd.f32 %v4748_v61, %v4717_v16 }
 0x62e   : > { %v4775_v7 = vadd.f32 %v4774_v42, %v4749_v40 }
 0x62f   : > { %v4985_v35 = vpop.f32.mrf.mxu0 }
 0x630   : > { %v4800_v26 = vadd.f32 %v4799_v12, %v4775_v7 }
 0x631   : > { %v5008_v18 = vpop.f32.mrf.mxu1 }
 0x633   : > { %v4826_v60 = vpop.f32.mrf.mxu2  ;;  %v4958_v22 = vpop.f32.mrf.mxu3 }
 0x634   : > { %v4827_v57 = vadd.f32 %v4826_v60, %v4800_v26 }
 0x636   : > { %v4850_v33 = vadd.f32 %v4849_v50, %v4827_v57 }
 0x638   : > { %5172 = vrcp.f32 %v4850_v33  ;;  %vm5016_vm8 = vweird.f32 %v4850_v33  ;;  %v5022_v51 = vand.u32 2147483648, %v4850_v33  ;;  %v5020_v0 = vand.u32 2147483647, %v4850_v33 }
 0x63a   : > { %v5023_v41 = vor.u32 1.1754944e-38, %v5022_v51  ;;  %vm5021_vm13 = vcmp.eq.f32.partialorder %v5020_v0, 8.507059e+37 }
 0x63b   : > { %v4933_v48 = vpop.f32.mrf.mxu2 }
 0x63c   : > { %v4934_v29 = vadd.f32 %v4933_v48, %v4908_v17 }
 0x63e   : > { %v5173_v34 = vpop.eup %5172  ;;  %v4959_v4 = vadd.f32 %v4958_v22, %v4934_v29 }
 0x63f   : > { %v5012_v55 = vmul.f32 %v5173_v34, %v4850_v33  ;;  %vm5017_vm7 = vweird.f32 %v5173_v34 }
 0x640   : > { %v4986_v27 = vadd.f32 %v4985_v35, %v4959_v4  ;;  %vm5018_vm10 = vmor %vm5016_vm8, %vm5017_vm7 }
 0x641   : > { %v5013_v54 = vsub.f32 1.0, %v5012_v55 }
 0x642   : > { %v5009_v13 = vadd.f32 %v5008_v18, %v4986_v27 }
 0x643   : > { %v5014_v24 = vmul.f32 %v5173_v34, %v5013_v54 }
 0x644   : > { %5174 = vrcp.f32 %v5009_v13  ;;  %v5037_v8 = vand.u32 2147483648, %v5009_v13  ;;  %v5035_v3 = vand.u32 2147483647, %v5009_v13  ;;  %vm5031_vm11 = vweird.f32 %v5009_v13 }
 0x645   : > { %v5015_v63 = vadd.f32 %v5173_v34, %v5014_v24 }
 0x646   : > { %v5038_v20 = vor.u32 1.1754944e-38, %v5037_v8  ;;  %vm5036_vm14 = vcmp.eq.f32.partialorder %v5035_v3, 8.507059e+37 }
 0x647   : > { %v5019_v49 = vsel %vm5018_vm10, %v5173_v34, %v5015_v63 }
 0x648   : > { %v5024_v53 = vsel %vm5021_vm13, %v5023_v41, %v5019_v49 }
 0x649   : > { %v5025_v62 = vmul.f32 %v7941_v37, %v5024_v53 }
 0x64a   : > { %v5175_v31 = vpop.eup %5174 }
 0x64b   : > { %v5027_v19 = vmul.f32 %v5175_v31, %v5009_v13  ;;  %vm5032_vm9 = vweird.f32 %v5175_v31 }
 0x64c   : > { %vm5033_vm12 = vmor %vm5031_vm11, %vm5032_vm9 }
 0x64d   : > { %v5028_v44 = vsub.f32 1.0, %v5027_v19 }
 0x64f   : > { %v5029_v58 = vmul.f32 %v5175_v31, %v5028_v44 }
 0x651   : > { %v5030_v59 = vadd.f32 %v5175_v31, %v5029_v58 }
 0x653   : > { %v5034_v39 = vsel %vm5033_vm12, %v5175_v31, %v5030_v59 }
 0x654   : > { %v5039_v52 = vsel %vm5036_vm14, %v5038_v20, %v5034_v39 }
 0x655   : > { %v5040_v11 = vmul.f32 %v7943_v36, %v5039_v52 }
 0x657   : > { %v5043_v56 = vrot.slane %v5040_v11, 7 }
 0x659   : > { %v5044_v6 = vsel %vm4150_vm3, %v5025_v62, %v5043_v56 }
 0x65a   : > { %5050 = vst.msk [vmem:[%s388_s21] sm:$0x3] %vm5048_vm15, %v5044_v6 }
 0x65b PF: > { %s21_s13 = sadd.s32 1, %s5201_s13  }
 0x65c   : > { %p18_p7 = scmp.ge.s32.totalorder %s21_s13, 4  }
 0x65e   :  { %20 = sbr.rel (!%p18_p7) target bundleno = 1 (0x1), region = 98 }
 0x663   :  { %5070 = vsyncpa [#allocation3], 1 }
 0x664   :  { %5072 = vsyncpa [#allocation3 + $0x1], 1 }

</bundles_post_ra>
